<compile_context>
chip_gen: v7x
topology: tpu7x:2x2x1
jax: 0.10.0
libtpu: 0.0.40
codegen_flags: <defaults>
</compile_context>

<pallas_src>
import jax
import jax.numpy as jnp
from jax import lax
from jax.experimental import pallas as pl
from jax.experimental.pallas import tpu as pltpu

# ---------------- synthetic (small) T5-v1.1-style config ----------------
VOCAB      = 64
D_MODEL    = 32                  # logical hidden size
N_HEADS    = 4
D_KV       = 8                   # per-head dim
INNER      = N_HEADS * D_KV      # 32
D_FF       = 64
N_LAYERS   = 2
N_BUCKETS  = 8                   # relative_attention_num_buckets
MAX_DIST   = 16                  # relative_attention_max_distance
MAX_LENGTH = 8                   # stands in for max_length=77
EPS        = 1e-6

B  = 2                           # batch (folded into sublanes)
S  = MAX_LENGTH
BS = B * S                       # 16 rows

# Lane-dense padded feature sizes.  Weights are zero-padded once at init so
# activations are exactly zero in padded lanes; results restricted to
# [:D_MODEL] match the unpadded math.
D_PAD  = 128                     # hidden width
QKV_W  = 128                     # packed q|k|v width (3*INNER = 96, pad 128)
FF_W   = 128                     # packed wi0|wi1 width (2*D_FF = 128 exactly)
K_OFF  = INNER                   # 32
V_OFF  = 2 * INNER               # 64


# ----------------------------- fused kernel ------------------------------
def encoder_kernel(tok_ref, emb_ref, bias_ref, ln1_ref, wqkv_ref, wo_ref,
                   ln2_ref, wi_ref, woff_ref, lnf_ref, o_ref,
                   x_scr, ctx_scr):
    """Whole T5 encoder, batch folded into sublanes; hidden state on-chip."""
    f32, bf16 = jnp.float32, jnp.bfloat16

    # ---- fused embedding gather: token ids in SMEM, table in VMEM ----
    for i in range(BS):                                   # static, 16 rows
        tok = tok_ref[i]
        x_scr[pl.ds(i, 1), :] = emb_ref[pl.ds(tok, 1), :]
    x = x_scr[...]                                         # [BS, D_PAD] f32

    def rms(v, w):
        # T5 LayerNorm: no mean subtraction, no bias.  Padded lanes are zero
        # so summing over D_PAD equals summing over D_MODEL.
        var = jnp.sum(v * v, axis=-1, keepdims=True) * (1.0 / D_MODEL)
        return v * lax.rsqrt(var + EPS) * w

    for l in range(N_LAYERS):                              # static unroll
        # ---------------- self-attention ----------------
        xn = rms(x, ln1_ref[l])
        # ONE fused-head Q|K|V projection, K = 128 contraction, bf16 operands.
        qkv = jnp.dot(xn.astype(bf16), wqkv_ref[l],
                      preferred_element_type=f32)          # [BS, 128]
        wo_l = wo_ref[l]                                   # [INNER, D_PAD] bf16

        for b in range(B):                                 # per-batch attention
            r0 = b * S
            for h in range(N_HEADS):                       # static, tiny
                q_h = qkv[r0:r0 + S, h*D_KV:(h+1)*D_KV].astype(bf16)
                k_h = qkv[r0:r0 + S, K_OFF + h*D_KV:K_OFF + (h+1)*D_KV].astype(bf16)
                v_h = qkv[r0:r0 + S, V_OFF + h*D_KV:V_OFF + (h+1)*D_KV].astype(bf16)
                # T5: NO 1/sqrt(d_kv) scaling; additive relative-position bias.
                sc = lax.dot_general(q_h, k_h, (((1,), (1,)), ((), ())),
                                     preferred_element_type=f32)   # [S, S]
                sc = sc + bias_ref[h]
                m = jnp.max(sc, axis=-1, keepdims=True)
                p = jnp.exp(sc - m)
                denom = jnp.sum(p, axis=-1, keepdims=True)
                p = p * pl.reciprocal(denom, approx=True)  # EUP divide
                ctx = jnp.dot(p.astype(bf16), v_h,
                              preferred_element_type=f32)  # [S, D_KV]
                # pack head result -> one O-projection matmul afterwards
                ctx_scr[pl.ds(r0, S), pl.ds(h * D_KV, D_KV)] = ctx

        attn = jnp.dot(ctx_scr[...].astype(bf16), wo_l,
                       preferred_element_type=f32)         # [BS, D_PAD]
        x = x + attn

        # ---------------- gated-GELU FFN (T5 v1.1, packed wi0|wi1) --------
        xn = rms(x, ln2_ref[l])
        hup = jnp.dot(xn.astype(bf16), wi_ref[l],
                      preferred_element_type=f32)          # [BS, 128] h0|h1
        # lanes 0..63: gelu(h0) * h1 ; lanes 64..127 are garbage but woff
        # rows 64..127 are zero, so they never reach the residual.
        hg = jax.nn.gelu(hup, approximate=True) * pltpu.roll(hup, shift=D_FF, axis=1)
        x = x + jnp.dot(hg.astype(bf16), woff_ref[l],
                        preferred_element_type=f32)

    o_ref[...] = rms(x, lnf_ref[...])


# --------------------- plain-JAX glue (init-time only) -------------------
def _relative_position_bucket(rel_pos, num_buckets=N_BUCKETS,
                              max_distance=MAX_DIST):
    # bidirectional bucketing (encoder), matching HF T5.
    num_buckets = num_buckets // 2
    buckets = (rel_pos > 0).astype(jnp.int32) * num_buckets
    rel_pos = jnp.abs(rel_pos)
    max_exact = num_buckets // 2
    is_small = rel_pos < max_exact
    rel_if_large = max_exact + (
        jnp.log(jnp.maximum(rel_pos, 1).astype(jnp.float32) / max_exact)
        / jnp.log(max_distance / max_exact) * (num_buckets - max_exact)
    ).astype(jnp.int32)
    rel_if_large = jnp.minimum(rel_if_large, num_buckets - 1)
    return buckets + jnp.where(is_small, rel_pos, rel_if_large)


def compute_position_bias(rel_emb, seq_len):
    ctx = jnp.arange(seq_len)[:, None]
    mem = jnp.arange(seq_len)[None, :]
    buckets = _relative_position_bucket(mem - ctx)               # [S, S]
    bias = rel_emb[buckets]                                      # [S, S, H]
    return jnp.transpose(bias, (2, 0, 1)).astype(jnp.float32)    # [H, S, S]


def init_params(key):
    ks = jax.random.split(key, 2 + N_LAYERS)
    emb = jnp.zeros((VOCAB, D_PAD), jnp.float32).at[:, :D_MODEL].set(
        jax.random.normal(ks[0], (VOCAB, D_MODEL), jnp.float32) * 0.02)
    rel_emb = jax.random.normal(ks[1], (N_BUCKETS, N_HEADS), jnp.float32) * 0.02
    # Frozen params + static seq len -> precompute bias once (not per forward).
    pos_bias = compute_position_bias(rel_emb, S)

    ln_pad = jnp.zeros((1, D_PAD), jnp.float32).at[:, :D_MODEL].set(1.0)

    ln1, ln2, wqkv, wo, wi, woff = ([] for _ in range(6))
    for l in range(N_LAYERS):
        k = jax.random.split(ks[2 + l], 7)
        ln1.append(ln_pad)
        ln2.append(ln_pad)

        wq = jax.random.normal(k[0], (D_MODEL, INNER), jnp.float32) * 0.05
        wk = jax.random.normal(k[1], (D_MODEL, INNER), jnp.float32) * 0.05
        wv = jax.random.normal(k[2], (D_MODEL, INNER), jnp.float32) * 0.05
        wqkv.append(jnp.zeros((D_PAD, QKV_W), jnp.float32)
                    .at[:D_MODEL, 0:INNER].set(wq)
                    .at[:D_MODEL, K_OFF:K_OFF + INNER].set(wk)
                    .at[:D_MODEL, V_OFF:V_OFF + INNER].set(wv))

        wo.append(jnp.zeros((INNER, D_PAD), jnp.float32).at[:, :D_MODEL].set(
            jax.random.normal(k[3], (INNER, D_MODEL), jnp.float32) * 0.05))

        wi0 = jax.random.normal(k[4], (D_MODEL, D_FF), jnp.float32) * 0.05
        wi1 = jax.random.normal(k[5], (D_MODEL, D_FF), jnp.float32) * 0.05
        wi.append(jnp.zeros((D_PAD, FF_W), jnp.float32)
                  .at[:D_MODEL, :D_FF].set(wi0)
                  .at[:D_MODEL, D_FF:].set(wi1))

        woff.append(jnp.zeros((FF_W, D_PAD), jnp.float32)
                    .at[:D_FF, :D_MODEL].set(
            jax.random.normal(k[6], (D_FF, D_MODEL), jnp.float32) * 0.05))

    bf = lambda xs: jnp.stack(xs).astype(jnp.bfloat16)   # MXU operands in bf16
    return {
        'embedding': emb,                 # f32 [VOCAB, D_PAD]
        'pos_bias': pos_bias,             # f32 [H, S, S]
        'ln1': jnp.stack(ln1), 'ln2': jnp.stack(ln2),
        'wqkv': bf(wqkv), 'wo': bf(wo), 'wi': bf(wi), 'woff': bf(woff),
        'final_ln': ln_pad,
    }


@jax.jit
def t5_encoder_forward(tokens, params):
    """tokens: int32 [B, S] -> last_hidden_state float32 [B, S, D_MODEL]."""
    b, s = tokens.shape
    vspec = pl.BlockSpec(memory_space=pltpu.MemorySpace.VMEM)
    out = pl.pallas_call(
        encoder_kernel,
        out_shape=jax.ShapeDtypeStruct((BS, D_PAD), jnp.float32),
        in_specs=[
            pl.BlockSpec(memory_space=pltpu.MemorySpace.SMEM),   # token ids
            vspec,                                               # embedding
            vspec,                                               # position bias
            vspec, vspec, vspec,                                 # ln1, wqkv, wo
            vspec, vspec, vspec,                                 # ln2, wi, woff
            vspec,                                               # final_ln
        ],
        out_specs=vspec,
        scratch_shapes=[
            pltpu.VMEM((BS, D_PAD), jnp.float32),    # gathered embeddings
            pltpu.VMEM((BS, INNER), jnp.float32),    # packed per-head ctx
        ],
    )(tokens.reshape(BS), params['embedding'], params['pos_bias'],
      params['ln1'], params['wqkv'], params['wo'], params['ln2'],
      params['wi'], params['woff'], params['final_ln'])
    # drop lane padding & un-fold batch (tiny glue)
    return out[:, :D_MODEL].reshape(b, s, D_MODEL)


def frozen_text_vocal_embedder_forward(cond, params):
    """Mirrors FrozenTextVocalEmbedder.forward: cond dict in, dict out.

    cond['caption'] holds pre-tokenized int32 ids [B, MAX_LENGTH]
    (tokenizer is not reproducible in-kernel; see TODO at top of file).
    """
    tokens = cond['caption']
    z = t5_encoder_forward(tokens, params)   # == last_hidden_state, frozen
    return {'caption': z,
            'acoustic': cond['acoustic'],
            'name': cond['name'],
            'infer': cond['infer']}


if __name__ == "__main__":
    key = jax.random.PRNGKey(0)
    k_par, k_tok, k_ac = jax.random.split(key, 3)

    params = init_params(k_par)

    tokens = jax.random.randint(k_tok, (B, MAX_LENGTH), 0, VOCAB, dtype=jnp.int32)
    acoustic = jax.random.normal(k_ac, (B, 16), jnp.float32)

    cond = {'caption': tokens, 'acoustic': acoustic,
            'name': ['sample_0', 'sample_1'], 'infer': False}

    out = frozen_text_vocal_embedder_forward(cond, params)
    z = jax.block_until_ready(out['caption'])

    assert z.shape == (B, MAX_LENGTH, D_MODEL) and z.dtype == jnp.float32
    assert bool(jnp.all(jnp.isfinite(z)))
    print("KERNEL_OK")
</pallas_src>

<mosaic_0001>
module attributes {stable_mosaic.version = 11 : i64} {
  func.func @encoder_kernel(%arg0: memref<16xi32, #tpu.memory_space<smem>>, %arg1: memref<64x128xf32, #tpu.memory_space<vmem>>, %arg2: memref<4x8x8xf32, #tpu.memory_space<vmem>>, %arg3: memref<2x1x128xf32, #tpu.memory_space<vmem>>, %arg4: memref<2x128x128xbf16, #tpu.memory_space<vmem>>, %arg5: memref<2x32x128xbf16, #tpu.memory_space<vmem>>, %arg6: memref<2x1x128xf32, #tpu.memory_space<vmem>>, %arg7: memref<2x128x128xbf16, #tpu.memory_space<vmem>>, %arg8: memref<2x128x128xbf16, #tpu.memory_space<vmem>>, %arg9: memref<1x128xf32, #tpu.memory_space<vmem>>, %arg10: memref<16x128xf32, #tpu.memory_space<vmem>>, %arg11: memref<16x128xf32, #tpu.memory_space<vmem>>, %arg12: memref<16x32xf32, #tpu.memory_space<vmem>>) attributes {dimension_semantics = [], scalar_prefetch = 0 : i64, scratch_operands = 2 : i64, tpu.core_type = #tpu.core_type<tc>} {
    %c0 = arith.constant 0 : index
    %0 = memref.load %arg0[%c0] : memref<16xi32, #tpu.memory_space<smem>>
    %1 = arith.index_cast %0 : i32 to index
    %c0_0 = arith.constant 0 : index
    %2 = vector.load %arg1[%1, %c0_0] : memref<64x128xf32, #tpu.memory_space<vmem>>, vector<1x128xf32>
    %c0_1 = arith.constant 0 : index
    %c0_2 = arith.constant 0 : index
    %3 = vector.load %arg11[%c0_1, %c0_2] : memref<16x128xf32, #tpu.memory_space<vmem>>, vector<1x128xf32>
    tpu.vector_store %arg11[%c0_1, %c0_2], %2 {strides = array<i32>} : memref<16x128xf32, #tpu.memory_space<vmem>>, vector<1x128xf32>,
    %c1 = arith.constant 1 : index
    %4 = memref.load %arg0[%c1] : memref<16xi32, #tpu.memory_space<smem>>
    %5 = arith.index_cast %4 : i32 to index
    %c0_3 = arith.constant 0 : index
    %6 = vector.load %arg1[%5, %c0_3] : memref<64x128xf32, #tpu.memory_space<vmem>>, vector<1x128xf32>
    %c1_4 = arith.constant 1 : index
    %c0_5 = arith.constant 0 : index
    %7 = vector.load %arg11[%c1_4, %c0_5] : memref<16x128xf32, #tpu.memory_space<vmem>>, vector<1x128xf32>
    tpu.vector_store %arg11[%c1_4, %c0_5], %6 {strides = array<i32>} : memref<16x128xf32, #tpu.memory_space<vmem>>, vector<1x128xf32>,
    %c2 = arith.constant 2 : index
    %8 = memref.load %arg0[%c2] : memref<16xi32, #tpu.memory_space<smem>>
    %9 = arith.index_cast %8 : i32 to index
    %c0_6 = arith.constant 0 : index
    %10 = vector.load %arg1[%9, %c0_6] : memref<64x128xf32, #tpu.memory_space<vmem>>, vector<1x128xf32>
    %c2_7 = arith.constant 2 : index
    %c0_8 = arith.constant 0 : index
    %11 = vector.load %arg11[%c2_7, %c0_8] : memref<16x128xf32, #tpu.memory_space<vmem>>, vector<1x128xf32>
    tpu.vector_store %arg11[%c2_7, %c0_8], %10 {strides = array<i32>} : memref<16x128xf32, #tpu.memory_space<vmem>>, vector<1x128xf32>,
    %c3 = arith.constant 3 : index
    %12 = memref.load %arg0[%c3] : memref<16xi32, #tpu.memory_space<smem>>
    %13 = arith.index_cast %12 : i32 to index
    %c0_9 = arith.constant 0 : index
    %14 = vector.load %arg1[%13, %c0_9] : memref<64x128xf32, #tpu.memory_space<vmem>>, vector<1x128xf32>
    %c3_10 = arith.constant 3 : index
    %c0_11 = arith.constant 0 : index
    %15 = vector.load %arg11[%c3_10, %c0_11] : memref<16x128xf32, #tpu.memory_space<vmem>>, vector<1x128xf32>
    tpu.vector_store %arg11[%c3_10, %c0_11], %14 {strides = array<i32>} : memref<16x128xf32, #tpu.memory_space<vmem>>, vector<1x128xf32>,
    %c4 = arith.constant 4 : index
    %16 = memref.load %arg0[%c4] : memref<16xi32, #tpu.memory_space<smem>>
    %17 = arith.index_cast %16 : i32 to index
    %c0_12 = arith.constant 0 : index
    %18 = vector.load %arg1[%17, %c0_12] : memref<64x128xf32, #tpu.memory_space<vmem>>, vector<1x128xf32>
    %c4_13 = arith.constant 4 : index
    %c0_14 = arith.constant 0 : index
    %19 = vector.load %arg11[%c4_13, %c0_14] : memref<16x128xf32, #tpu.memory_space<vmem>>, vector<1x128xf32>
    tpu.vector_store %arg11[%c4_13, %c0_14], %18 {strides = array<i32>} : memref<16x128xf32, #tpu.memory_space<vmem>>, vector<1x128xf32>,
    %c5 = arith.constant 5 : index
    %20 = memref.load %arg0[%c5] : memref<16xi32, #tpu.memory_space<smem>>
    %21 = arith.index_cast %20 : i32 to index
    %c0_15 = arith.constant 0 : index
    %22 = vector.load %arg1[%21, %c0_15] : memref<64x128xf32, #tpu.memory_space<vmem>>, vector<1x128xf32>
    %c5_16 = arith.constant 5 : index
    %c0_17 = arith.constant 0 : index
    %23 = vector.load %arg11[%c5_16, %c0_17] : memref<16x128xf32, #tpu.memory_space<vmem>>, vector<1x128xf32>
    tpu.vector_store %arg11[%c5_16, %c0_17], %22 {strides = array<i32>} : memref<16x128xf32, #tpu.memory_space<vmem>>, vector<1x128xf32>,
    %c6 = arith.constant 6 : index
    %24 = memref.load %arg0[%c6] : memref<16xi32, #tpu.memory_space<smem>>
    %25 = arith.index_cast %24 : i32 to index
    %c0_18 = arith.constant 0 : index
    %26 = vector.load %arg1[%25, %c0_18] : memref<64x128xf32, #tpu.memory_space<vmem>>, vector<1x128xf32>
    %c6_19 = arith.constant 6 : index
    %c0_20 = arith.constant 0 : index
    %27 = vector.load %arg11[%c6_19, %c0_20] : memref<16x128xf32, #tpu.memory_space<vmem>>, vector<1x128xf32>
    tpu.vector_store %arg11[%c6_19, %c0_20], %26 {strides = array<i32>} : memref<16x128xf32, #tpu.memory_space<vmem>>, vector<1x128xf32>,
    %c7 = arith.constant 7 : index
    %28 = memref.load %arg0[%c7] : memref<16xi32, #tpu.memory_space<smem>>
    %29 = arith.index_cast %28 : i32 to index
    %c0_21 = arith.constant 0 : index
    %30 = vector.load %arg1[%29, %c0_21] : memref<64x128xf32, #tpu.memory_space<vmem>>, vector<1x128xf32>
    %c7_22 = arith.constant 7 : index
    %c0_23 = arith.constant 0 : index
    %31 = vector.load %arg11[%c7_22, %c0_23] : memref<16x128xf32, #tpu.memory_space<vmem>>, vector<1x128xf32>
    tpu.vector_store %arg11[%c7_22, %c0_23], %30 {strides = array<i32>} : memref<16x128xf32, #tpu.memory_space<vmem>>, vector<1x128xf32>,
    %c8 = arith.constant 8 : index
    %32 = memref.load %arg0[%c8] : memref<16xi32, #tpu.memory_space<smem>>
    %33 = arith.index_cast %32 : i32 to index
    %c0_24 = arith.constant 0 : index
    %34 = vector.load %arg1[%33, %c0_24] : memref<64x128xf32, #tpu.memory_space<vmem>>, vector<1x128xf32>
    %c8_25 = arith.constant 8 : index
    %c0_26 = arith.constant 0 : index
    %35 = vector.load %arg11[%c8_25, %c0_26] : memref<16x128xf32, #tpu.memory_space<vmem>>, vector<1x128xf32>
    tpu.vector_store %arg11[%c8_25, %c0_26], %34 {strides = array<i32>} : memref<16x128xf32, #tpu.memory_space<vmem>>, vector<1x128xf32>,
    %c9 = arith.constant 9 : index
    %36 = memref.load %arg0[%c9] : memref<16xi32, #tpu.memory_space<smem>>
    %37 = arith.index_cast %36 : i32 to index
    %c0_27 = arith.constant 0 : index
    %38 = vector.load %arg1[%37, %c0_27] : memref<64x128xf32, #tpu.memory_space<vmem>>, vector<1x128xf32>
    %c9_28 = arith.constant 9 : index
    %c0_29 = arith.constant 0 : index
    %39 = vector.load %arg11[%c9_28, %c0_29] : memref<16x128xf32, #tpu.memory_space<vmem>>, vector<1x128xf32>
    tpu.vector_store %arg11[%c9_28, %c0_29], %38 {strides = array<i32>} : memref<16x128xf32, #tpu.memory_space<vmem>>, vector<1x128xf32>,
    %c10 = arith.constant 10 : index
    %40 = memref.load %arg0[%c10] : memref<16xi32, #tpu.memory_space<smem>>
    %41 = arith.index_cast %40 : i32 to index
    %c0_30 = arith.constant 0 : index
    %42 = vector.load %arg1[%41, %c0_30] : memref<64x128xf32, #tpu.memory_space<vmem>>, vector<1x128xf32>
    %c10_31 = arith.constant 10 : index
    %c0_32 = arith.constant 0 : index
    %43 = vector.load %arg11[%c10_31, %c0_32] : memref<16x128xf32, #tpu.memory_space<vmem>>, vector<1x128xf32>
    tpu.vector_store %arg11[%c10_31, %c0_32], %42 {strides = array<i32>} : memref<16x128xf32, #tpu.memory_space<vmem>>, vector<1x128xf32>,
    %c11 = arith.constant 11 : index
    %44 = memref.load %arg0[%c11] : memref<16xi32, #tpu.memory_space<smem>>
    %45 = arith.index_cast %44 : i32 to index
    %c0_33 = arith.constant 0 : index
    %46 = vector.load %arg1[%45, %c0_33] : memref<64x128xf32, #tpu.memory_space<vmem>>, vector<1x128xf32>
    %c11_34 = arith.constant 11 : index
    %c0_35 = arith.constant 0 : index
    %47 = vector.load %arg11[%c11_34, %c0_35] : memref<16x128xf32, #tpu.memory_space<vmem>>, vector<1x128xf32>
    tpu.vector_store %arg11[%c11_34, %c0_35], %46 {strides = array<i32>} : memref<16x128xf32, #tpu.memory_space<vmem>>, vector<1x128xf32>,
    %c12 = arith.constant 12 : index
    %48 = memref.load %arg0[%c12] : memref<16xi32, #tpu.memory_space<smem>>
    %49 = arith.index_cast %48 : i32 to index
    %c0_36 = arith.constant 0 : index
    %50 = vector.load %arg1[%49, %c0_36] : memref<64x128xf32, #tpu.memory_space<vmem>>, vector<1x128xf32>
    %c12_37 = arith.constant 12 : index
    %c0_38 = arith.constant 0 : index
    %51 = vector.load %arg11[%c12_37, %c0_38] : memref<16x128xf32, #tpu.memory_space<vmem>>, vector<1x128xf32>
    tpu.vector_store %arg11[%c12_37, %c0_38], %50 {strides = array<i32>} : memref<16x128xf32, #tpu.memory_space<vmem>>, vector<1x128xf32>,
    %c13 = arith.constant 13 : index
    %52 = memref.load %arg0[%c13] : memref<16xi32, #tpu.memory_space<smem>>
    %53 = arith.index_cast %52 : i32 to index
    %c0_39 = arith.constant 0 : index
    %54 = vector.load %arg1[%53, %c0_39] : memref<64x128xf32, #tpu.memory_space<vmem>>, vector<1x128xf32>
    %c13_40 = arith.constant 13 : index
    %c0_41 = arith.constant 0 : index
    %55 = vector.load %arg11[%c13_40, %c0_41] : memref<16x128xf32, #tpu.memory_space<vmem>>, vector<1x128xf32>
    tpu.vector_store %arg11[%c13_40, %c0_41], %54 {strides = array<i32>} : memref<16x128xf32, #tpu.memory_space<vmem>>, vector<1x128xf32>,
    %c14 = arith.constant 14 : index
    %56 = memref.load %arg0[%c14] : memref<16xi32, #tpu.memory_space<smem>>
    %57 = arith.index_cast %56 : i32 to index
    %c0_42 = arith.constant 0 : index
    %58 = vector.load %arg1[%57, %c0_42] : memref<64x128xf32, #tpu.memory_space<vmem>>, vector<1x128xf32>
    %c14_43 = arith.constant 14 : index
    %c0_44 = arith.constant 0 : index
    %59 = vector.load %arg11[%c14_43, %c0_44] : memref<16x128xf32, #tpu.memory_space<vmem>>, vector<1x128xf32>
    tpu.vector_store %arg11[%c14_43, %c0_44], %58 {strides = array<i32>} : memref<16x128xf32, #tpu.memory_space<vmem>>, vector<1x128xf32>,
    %c15 = arith.constant 15 : index
    %60 = memref.load %arg0[%c15] : memref<16xi32, #tpu.memory_space<smem>>
    %61 = arith.index_cast %60 : i32 to index
    %c0_45 = arith.constant 0 : index
    %62 = vector.load %arg1[%61, %c0_45] : memref<64x128xf32, #tpu.memory_space<vmem>>, vector<1x128xf32>
    %c15_46 = arith.constant 15 : index
    %c0_47 = arith.constant 0 : index
    %63 = vector.load %arg11[%c15_46, %c0_47] : memref<16x128xf32, #tpu.memory_space<vmem>>, vector<1x128xf32>
    tpu.vector_store %arg11[%c15_46, %c0_47], %62 {strides = array<i32>} : memref<16x128xf32, #tpu.memory_space<vmem>>, vector<1x128xf32>,
    %c0_48 = arith.constant 0 : index
    %c0_49 = arith.constant 0 : index
    %64 = vector.load %arg11[%c0_48, %c0_49] : memref<16x128xf32, #tpu.memory_space<vmem>>, vector<16x128xf32>
    %c0_50 = arith.constant 0 : index
    %c0_51 = arith.constant 0 : index
    %c0_52 = arith.constant 0 : index
    %65 = vector.load %arg3[%c0_50, %c0_51, %c0_52] : memref<2x1x128xf32, #tpu.memory_space<vmem>>, vector<1x1x128xf32>
    %66 = vector.shape_cast %65 : vector<1x1x128xf32> to vector<1x128xf32>
    %67 = arith.mulf %64, %64 : vector<16x128xf32>
    %cst = arith.constant dense<0.000000e+00> : vector<16xf32>
    %68 = vector.multi_reduction <add>, %67, %cst [1] : vector<16x128xf32> to vector<16xf32>
    %69 = vector.shape_cast %68 : vector<16xf32> to vector<16x1xf32>
    %cst_53 = arith.constant 3.125000e-02 : f32
    %70 = vector.broadcast %cst_53 : f32 to vector<16x1xf32>
    %71 = arith.mulf %69, %70 : vector<16x1xf32>
    %cst_54 = arith.constant 9.99999997E-7 : f32
    %72 = vector.broadcast %cst_54 : f32 to vector<16x1xf32>
    %73 = arith.addf %71, %72 : vector<16x1xf32>
    %74 = math.rsqrt %73 : vector<16x1xf32>
    %75 = vector.broadcast %74 : vector<16x1xf32> to vector<16x128xf32>
    %76 = arith.mulf %64, %75 : vector<16x128xf32>
    %77 = vector.broadcast %66 : vector<1x128xf32> to vector<16x128xf32>
    %78 = arith.mulf %76, %77 : vector<16x128xf32>
    %79 = arith.truncf %78 : vector<16x128xf32> to vector<16x128xbf16>
    %c0_55 = arith.constant 0 : index
    %c0_56 = arith.constant 0 : index
    %c0_57 = arith.constant 0 : index
    %80 = vector.load %arg4[%c0_55, %c0_56, %c0_57] : memref<2x128x128xbf16, #tpu.memory_space<vmem>>, vector<1x128x128xbf16>
    %81 = vector.shape_cast %80 : vector<1x128x128xbf16> to vector<128x128xbf16>
    %cst_58 = arith.constant dense<0.000000e+00> : vector<16x128xf32>
    %82 = tpu.matmul %79, %81, %cst_58 {dimension_numbers = #tpu.dot_dimension_numbers<[1], [0], [0], [1], [0, 0, 1, 1], [], []>} : vector<16x128xbf16>, vector<128x128xbf16>, vector<16x128xf32> -> vector<16x128xf32>
    %c0_59 = arith.constant 0 : index
    %c0_60 = arith.constant 0 : index
    %c0_61 = arith.constant 0 : index
    %83 = vector.load %arg5[%c0_59, %c0_60, %c0_61] : memref<2x32x128xbf16, #tpu.memory_space<vmem>>, vector<1x32x128xbf16>
    %84 = vector.shape_cast %83 : vector<1x32x128xbf16> to vector<32x128xbf16>
    %85 = vector.extract_strided_slice %82 {offsets = [0, 0], sizes = [8, 8], strides = [1, 1]} : vector<16x128xf32> to vector<8x8xf32>
    %86 = arith.truncf %85 : vector<8x8xf32> to vector<8x8xbf16>
    %87 = vector.extract_strided_slice %82 {offsets = [0, 32], sizes = [8, 8], strides = [1, 1]} : vector<16x128xf32> to vector<8x8xf32>
    %88 = arith.truncf %87 : vector<8x8xf32> to vector<8x8xbf16>
    %89 = vector.extract_strided_slice %82 {offsets = [0, 64], sizes = [8, 8], strides = [1, 1]} : vector<16x128xf32> to vector<8x8xf32>
    %90 = arith.truncf %89 : vector<8x8xf32> to vector<8x8xbf16>
    %cst_62 = arith.constant dense<0.000000e+00> : vector<8x8xf32>
    %91 = tpu.matmul %86, %88, %cst_62 {dimension_numbers = #tpu.dot_dimension_numbers<[1], [1], [0], [0], [0, 0, 1, 0], [], []>} : vector<8x8xbf16>, vector<8x8xbf16>, vector<8x8xf32> -> vector<8x8xf32>
    %c0_63 = arith.constant 0 : index
    %c0_64 = arith.constant 0 : index
    %c0_65 = arith.constant 0 : index
    %92 = vector.load %arg2[%c0_63, %c0_64, %c0_65] : memref<4x8x8xf32, #tpu.memory_space<vmem>>, vector<1x8x8xf32>
    %93 = vector.shape_cast %92 : vector<1x8x8xf32> to vector<8x8xf32>
    %94 = arith.addf %91, %93 : vector<8x8xf32>
    %cst_66 = arith.constant dense<0xFF800000> : vector<8xf32>
    %95 = vector.multi_reduction <maximumf>, %94, %cst_66 [1] : vector<8x8xf32> to vector<8xf32>
    %96 = vector.shape_cast %95 : vector<8xf32> to vector<8x1xf32>
    %97 = vector.broadcast %96 : vector<8x1xf32> to vector<8x8xf32>
    %98 = arith.subf %94, %97 : vector<8x8xf32>
    %99 = math.exp %98 : vector<8x8xf32>
    %cst_67 = arith.constant dense<0.000000e+00> : vector<8xf32>
    %100 = vector.multi_reduction <add>, %99, %cst_67 [1] : vector<8x8xf32> to vector<8xf32>
    %101 = vector.shape_cast %100 : vector<8xf32> to vector<8x1xf32>
    %102 = tpu.reciprocal %101 {approx = true} : vector<8x1xf32> -> vector<8x1xf32>
    %103 = vector.broadcast %102 : vector<8x1xf32> to vector<8x8xf32>
    %104 = arith.mulf %99, %103 : vector<8x8xf32>
    %105 = arith.truncf %104 : vector<8x8xf32> to vector<8x8xbf16>
    %cst_68 = arith.constant dense<0.000000e+00> : vector<8x8xf32>
    %106 = tpu.matmul %105, %90, %cst_68 {dimension_numbers = #tpu.dot_dimension_numbers<[1], [0], [0], [1], [0, 0, 1, 1], [], []>} : vector<8x8xbf16>, vector<8x8xbf16>, vector<8x8xf32> -> vector<8x8xf32>
    %c0_69 = arith.constant 0 : index
    %c0_70 = arith.constant 0 : index
    %107 = vector.load %arg12[%c0_69, %c0_70] : memref<16x32xf32, #tpu.memory_space<vmem>>, vector<8x8xf32>
    tpu.vector_store %arg12[%c0_69, %c0_70], %106 {strides = array<i32>} : memref<16x32xf32, #tpu.memory_space<vmem>>, vector<8x8xf32>,
    %108 = vector.extract_strided_slice %82 {offsets = [0, 8], sizes = [8, 8], strides = [1, 1]} : vector<16x128xf32> to vector<8x8xf32>
    %109 = arith.truncf %108 : vector<8x8xf32> to vector<8x8xbf16>
    %110 = vector.extract_strided_slice %82 {offsets = [0, 40], sizes = [8, 8], strides = [1, 1]} : vector<16x128xf32> to vector<8x8xf32>
    %111 = arith.truncf %110 : vector<8x8xf32> to vector<8x8xbf16>
    %112 = vector.extract_strided_slice %82 {offsets = [0, 72], sizes = [8, 8], strides = [1, 1]} : vector<16x128xf32> to vector<8x8xf32>
    %113 = arith.truncf %112 : vector<8x8xf32> to vector<8x8xbf16>
    %cst_71 = arith.constant dense<0.000000e+00> : vector<8x8xf32>
    %114 = tpu.matmul %109, %111, %cst_71 {dimension_numbers = #tpu.dot_dimension_numbers<[1], [1], [0], [0], [0, 0, 1, 0], [], []>} : vector<8x8xbf16>, vector<8x8xbf16>, vector<8x8xf32> -> vector<8x8xf32>
    %c1_72 = arith.constant 1 : index
    %c0_73 = arith.constant 0 : index
    %c0_74 = arith.constant 0 : index
    %115 = vector.load %arg2[%c1_72, %c0_73, %c0_74] : memref<4x8x8xf32, #tpu.memory_space<vmem>>, vector<1x8x8xf32>
    %116 = vector.shape_cast %115 : vector<1x8x8xf32> to vector<8x8xf32>
    %117 = arith.addf %114, %116 : vector<8x8xf32>
    %cst_75 = arith.constant dense<0xFF800000> : vector<8xf32>
    %118 = vector.multi_reduction <maximumf>, %117, %cst_75 [1] : vector<8x8xf32> to vector<8xf32>
    %119 = vector.shape_cast %118 : vector<8xf32> to vector<8x1xf32>
    %120 = vector.broadcast %119 : vector<8x1xf32> to vector<8x8xf32>
    %121 = arith.subf %117, %120 : vector<8x8xf32>
    %122 = math.exp %121 : vector<8x8xf32>
    %cst_76 = arith.constant dense<0.000000e+00> : vector<8xf32>
    %123 = vector.multi_reduction <add>, %122, %cst_76 [1] : vector<8x8xf32> to vector<8xf32>
    %124 = vector.shape_cast %123 : vector<8xf32> to vector<8x1xf32>
    %125 = tpu.reciprocal %124 {approx = true} : vector<8x1xf32> -> vector<8x1xf32>
    %126 = vector.broadcast %125 : vector<8x1xf32> to vector<8x8xf32>
    %127 = arith.mulf %122, %126 : vector<8x8xf32>
    %128 = arith.truncf %127 : vector<8x8xf32> to vector<8x8xbf16>
    %cst_77 = arith.constant dense<0.000000e+00> : vector<8x8xf32>
    %129 = tpu.matmul %128, %113, %cst_77 {dimension_numbers = #tpu.dot_dimension_numbers<[1], [0], [0], [1], [0, 0, 1, 1], [], []>} : vector<8x8xbf16>, vector<8x8xbf16>, vector<8x8xf32> -> vector<8x8xf32>
    %c0_78 = arith.constant 0 : index
    %c8_79 = arith.constant 8 : index
    %130 = vector.load %arg12[%c0_78, %c8_79] : memref<16x32xf32, #tpu.memory_space<vmem>>, vector<8x8xf32>
    tpu.vector_store %arg12[%c0_78, %c8_79], %129 {strides = array<i32>} : memref<16x32xf32, #tpu.memory_space<vmem>>, vector<8x8xf32>,
    %131 = vector.extract_strided_slice %82 {offsets = [0, 16], sizes = [8, 8], strides = [1, 1]} : vector<16x128xf32> to vector<8x8xf32>
    %132 = arith.truncf %131 : vector<8x8xf32> to vector<8x8xbf16>
    %133 = vector.extract_strided_slice %82 {offsets = [0, 48], sizes = [8, 8], strides = [1, 1]} : vector<16x128xf32> to vector<8x8xf32>
    %134 = arith.truncf %133 : vector<8x8xf32> to vector<8x8xbf16>
    %135 = vector.extract_strided_slice %82 {offsets = [0, 80], sizes = [8, 8], strides = [1, 1]} : vector<16x128xf32> to vector<8x8xf32>
    %136 = arith.truncf %135 : vector<8x8xf32> to vector<8x8xbf16>
    %cst_80 = arith.constant dense<0.000000e+00> : vector<8x8xf32>
    %137 = tpu.matmul %132, %134, %cst_80 {dimension_numbers = #tpu.dot_dimension_numbers<[1], [1], [0], [0], [0, 0, 1, 0], [], []>} : vector<8x8xbf16>, vector<8x8xbf16>, vector<8x8xf32> -> vector<8x8xf32>
    %c2_81 = arith.constant 2 : index
    %c0_82 = arith.constant 0 : index
    %c0_83 = arith.constant 0 : index
    %138 = vector.load %arg2[%c2_81, %c0_82, %c0_83] : memref<4x8x8xf32, #tpu.memory_space<vmem>>, vector<1x8x8xf32>
    %139 = vector.shape_cast %138 : vector<1x8x8xf32> to vector<8x8xf32>
    %140 = arith.addf %137, %139 : vector<8x8xf32>
    %cst_84 = arith.constant dense<0xFF800000> : vector<8xf32>
    %141 = vector.multi_reduction <maximumf>, %140, %cst_84 [1] : vector<8x8xf32> to vector<8xf32>
    %142 = vector.shape_cast %141 : vector<8xf32> to vector<8x1xf32>
    %143 = vector.broadcast %142 : vector<8x1xf32> to vector<8x8xf32>
    %144 = arith.subf %140, %143 : vector<8x8xf32>
    %145 = math.exp %144 : vector<8x8xf32>
    %cst_85 = arith.constant dense<0.000000e+00> : vector<8xf32>
    %146 = vector.multi_reduction <add>, %145, %cst_85 [1] : vector<8x8xf32> to vector<8xf32>
    %147 = vector.shape_cast %146 : vector<8xf32> to vector<8x1xf32>
    %148 = tpu.reciprocal %147 {approx = true} : vector<8x1xf32> -> vector<8x1xf32>
    %149 = vector.broadcast %148 : vector<8x1xf32> to vector<8x8xf32>
    %150 = arith.mulf %145, %149 : vector<8x8xf32>
    %151 = arith.truncf %150 : vector<8x8xf32> to vector<8x8xbf16>
    %cst_86 = arith.constant dense<0.000000e+00> : vector<8x8xf32>
    %152 = tpu.matmul %151, %136, %cst_86 {dimension_numbers = #tpu.dot_dimension_numbers<[1], [0], [0], [1], [0, 0, 1, 1], [], []>} : vector<8x8xbf16>, vector<8x8xbf16>, vector<8x8xf32> -> vector<8x8xf32>
    %c0_87 = arith.constant 0 : index
    %c16 = arith.constant 16 : index
    %153 = vector.load %arg12[%c0_87, %c16] : memref<16x32xf32, #tpu.memory_space<vmem>>, vector<8x8xf32>
    tpu.vector_store %arg12[%c0_87, %c16], %152 {strides = array<i32>} : memref<16x32xf32, #tpu.memory_space<vmem>>, vector<8x8xf32>,
    %154 = vector.extract_strided_slice %82 {offsets = [0, 24], sizes = [8, 8], strides = [1, 1]} : vector<16x128xf32> to vector<8x8xf32>
    %155 = arith.truncf %154 : vector<8x8xf32> to vector<8x8xbf16>
    %156 = vector.extract_strided_slice %82 {offsets = [0, 56], sizes = [8, 8], strides = [1, 1]} : vector<16x128xf32> to vector<8x8xf32>
    %157 = arith.truncf %156 : vector<8x8xf32> to vector<8x8xbf16>
    %158 = vector.extract_strided_slice %82 {offsets = [0, 88], sizes = [8, 8], strides = [1, 1]} : vector<16x128xf32> to vector<8x8xf32>
    %159 = arith.truncf %158 : vector<8x8xf32> to vector<8x8xbf16>
    %cst_88 = arith.constant dense<0.000000e+00> : vector<8x8xf32>
    %160 = tpu.matmul %155, %157, %cst_88 {dimension_numbers = #tpu.dot_dimension_numbers<[1], [1], [0], [0], [0, 0, 1, 0], [], []>} : vector<8x8xbf16>, vector<8x8xbf16>, vector<8x8xf32> -> vector<8x8xf32>
    %c3_89 = arith.constant 3 : index
    %c0_90 = arith.constant 0 : index
    %c0_91 = arith.constant 0 : index
    %161 = vector.load %arg2[%c3_89, %c0_90, %c0_91] : memref<4x8x8xf32, #tpu.memory_space<vmem>>, vector<1x8x8xf32>
    %162 = vector.shape_cast %161 : vector<1x8x8xf32> to vector<8x8xf32>
    %163 = arith.addf %160, %162 : vector<8x8xf32>
    %cst_92 = arith.constant dense<0xFF800000> : vector<8xf32>
    %164 = vector.multi_reduction <maximumf>, %163, %cst_92 [1] : vector<8x8xf32> to vector<8xf32>
    %165 = vector.shape_cast %164 : vector<8xf32> to vector<8x1xf32>
    %166 = vector.broadcast %165 : vector<8x1xf32> to vector<8x8xf32>
    %167 = arith.subf %163, %166 : vector<8x8xf32>
    %168 = math.exp %167 : vector<8x8xf32>
    %cst_93 = arith.constant dense<0.000000e+00> : vector<8xf32>
    %169 = vector.multi_reduction <add>, %168, %cst_93 [1] : vector<8x8xf32> to vector<8xf32>
    %170 = vector.shape_cast %169 : vector<8xf32> to vector<8x1xf32>
    %171 = tpu.reciprocal %170 {approx = true} : vector<8x1xf32> -> vector<8x1xf32>
    %172 = vector.broadcast %171 : vector<8x1xf32> to vector<8x8xf32>
    %173 = arith.mulf %168, %172 : vector<8x8xf32>
    %174 = arith.truncf %173 : vector<8x8xf32> to vector<8x8xbf16>
    %cst_94 = arith.constant dense<0.000000e+00> : vector<8x8xf32>
    %175 = tpu.matmul %174, %159, %cst_94 {dimension_numbers = #tpu.dot_dimension_numbers<[1], [0], [0], [1], [0, 0, 1, 1], [], []>} : vector<8x8xbf16>, vector<8x8xbf16>, vector<8x8xf32> -> vector<8x8xf32>
    %c0_95 = arith.constant 0 : index
    %c24 = arith.constant 24 : index
    %176 = vector.load %arg12[%c0_95, %c24] : memref<16x32xf32, #tpu.memory_space<vmem>>, vector<8x8xf32>
    tpu.vector_store %arg12[%c0_95, %c24], %175 {strides = array<i32>} : memref<16x32xf32, #tpu.memory_space<vmem>>, vector<8x8xf32>,
    %177 = vector.extract_strided_slice %82 {offsets = [8, 0], sizes = [8, 8], strides = [1, 1]} : vector<16x128xf32> to vector<8x8xf32>
    %178 = arith.truncf %177 : vector<8x8xf32> to vector<8x8xbf16>
    %179 = vector.extract_strided_slice %82 {offsets = [8, 32], sizes = [8, 8], strides = [1, 1]} : vector<16x128xf32> to vector<8x8xf32>
    %180 = arith.truncf %179 : vector<8x8xf32> to vector<8x8xbf16>
    %181 = vector.extract_strided_slice %82 {offsets = [8, 64], sizes = [8, 8], strides = [1, 1]} : vector<16x128xf32> to vector<8x8xf32>
    %182 = arith.truncf %181 : vector<8x8xf32> to vector<8x8xbf16>
    %cst_96 = arith.constant dense<0.000000e+00> : vector<8x8xf32>
    %183 = tpu.matmul %178, %180, %cst_96 {dimension_numbers = #tpu.dot_dimension_numbers<[1], [1], [0], [0], [0, 0, 1, 0], [], []>} : vector<8x8xbf16>, vector<8x8xbf16>, vector<8x8xf32> -> vector<8x8xf32>
    %c0_97 = arith.constant 0 : index
    %c0_98 = arith.constant 0 : index
    %c0_99 = arith.constant 0 : index
    %184 = vector.load %arg2[%c0_97, %c0_98, %c0_99] : memref<4x8x8xf32, #tpu.memory_space<vmem>>, vector<1x8x8xf32>
    %185 = vector.shape_cast %184 : vector<1x8x8xf32> to vector<8x8xf32>
    %186 = arith.addf %183, %185 : vector<8x8xf32>
    %cst_100 = arith.constant dense<0xFF800000> : vector<8xf32>
    %187 = vector.multi_reduction <maximumf>, %186, %cst_100 [1] : vector<8x8xf32> to vector<8xf32>
    %188 = vector.shape_cast %187 : vector<8xf32> to vector<8x1xf32>
    %189 = vector.broadcast %188 : vector<8x1xf32> to vector<8x8xf32>
    %190 = arith.subf %186, %189 : vector<8x8xf32>
    %191 = math.exp %190 : vector<8x8xf32>
    %cst_101 = arith.constant dense<0.000000e+00> : vector<8xf32>
    %192 = vector.multi_reduction <add>, %191, %cst_101 [1] : vector<8x8xf32> to vector<8xf32>
    %193 = vector.shape_cast %192 : vector<8xf32> to vector<8x1xf32>
    %194 = tpu.reciprocal %193 {approx = true} : vector<8x1xf32> -> vector<8x1xf32>
    %195 = vector.broadcast %194 : vector<8x1xf32> to vector<8x8xf32>
    %196 = arith.mulf %191, %195 : vector<8x8xf32>
    %197 = arith.truncf %196 : vector<8x8xf32> to vector<8x8xbf16>
    %cst_102 = arith.constant dense<0.000000e+00> : vector<8x8xf32>
    %198 = tpu.matmul %197, %182, %cst_102 {dimension_numbers = #tpu.dot_dimension_numbers<[1], [0], [0], [1], [0, 0, 1, 1], [], []>} : vector<8x8xbf16>, vector<8x8xbf16>, vector<8x8xf32> -> vector<8x8xf32>
    %c8_103 = arith.constant 8 : index
    %c0_104 = arith.constant 0 : index
    %199 = vector.load %arg12[%c8_103, %c0_104] : memref<16x32xf32, #tpu.memory_space<vmem>>, vector<8x8xf32>
    tpu.vector_store %arg12[%c8_103, %c0_104], %198 {strides = array<i32>} : memref<16x32xf32, #tpu.memory_space<vmem>>, vector<8x8xf32>,
    %200 = vector.extract_strided_slice %82 {offsets = [8, 8], sizes = [8, 8], strides = [1, 1]} : vector<16x128xf32> to vector<8x8xf32>
    %201 = arith.truncf %200 : vector<8x8xf32> to vector<8x8xbf16>
    %202 = vector.extract_strided_slice %82 {offsets = [8, 40], sizes = [8, 8], strides = [1, 1]} : vector<16x128xf32> to vector<8x8xf32>
    %203 = arith.truncf %202 : vector<8x8xf32> to vector<8x8xbf16>
    %204 = vector.extract_strided_slice %82 {offsets = [8, 72], sizes = [8, 8], strides = [1, 1]} : vector<16x128xf32> to vector<8x8xf32>
    %205 = arith.truncf %204 : vector<8x8xf32> to vector<8x8xbf16>
    %cst_105 = arith.constant dense<0.000000e+00> : vector<8x8xf32>
    %206 = tpu.matmul %201, %203, %cst_105 {dimension_numbers = #tpu.dot_dimension_numbers<[1], [1], [0], [0], [0, 0, 1, 0], [], []>} : vector<8x8xbf16>, vector<8x8xbf16>, vector<8x8xf32> -> vector<8x8xf32>
    %c1_106 = arith.constant 1 : index
    %c0_107 = arith.constant 0 : index
    %c0_108 = arith.constant 0 : index
    %207 = vector.load %arg2[%c1_106, %c0_107, %c0_108] : memref<4x8x8xf32, #tpu.memory_space<vmem>>, vector<1x8x8xf32>
    %208 = vector.shape_cast %207 : vector<1x8x8xf32> to vector<8x8xf32>
    %209 = arith.addf %206, %208 : vector<8x8xf32>
    %cst_109 = arith.constant dense<0xFF800000> : vector<8xf32>
    %210 = vector.multi_reduction <maximumf>, %209, %cst_109 [1] : vector<8x8xf32> to vector<8xf32>
    %211 = vector.shape_cast %210 : vector<8xf32> to vector<8x1xf32>
    %212 = vector.broadcast %211 : vector<8x1xf32> to vector<8x8xf32>
    %213 = arith.subf %209, %212 : vector<8x8xf32>
    %214 = math.exp %213 : vector<8x8xf32>
    %cst_110 = arith.constant dense<0.000000e+00> : vector<8xf32>
    %215 = vector.multi_reduction <add>, %214, %cst_110 [1] : vector<8x8xf32> to vector<8xf32>
    %216 = vector.shape_cast %215 : vector<8xf32> to vector<8x1xf32>
    %217 = tpu.reciprocal %216 {approx = true} : vector<8x1xf32> -> vector<8x1xf32>
    %218 = vector.broadcast %217 : vector<8x1xf32> to vector<8x8xf32>
    %219 = arith.mulf %214, %218 : vector<8x8xf32>
    %220 = arith.truncf %219 : vector<8x8xf32> to vector<8x8xbf16>
    %cst_111 = arith.constant dense<0.000000e+00> : vector<8x8xf32>
    %221 = tpu.matmul %220, %205, %cst_111 {dimension_numbers = #tpu.dot_dimension_numbers<[1], [0], [0], [1], [0, 0, 1, 1], [], []>} : vector<8x8xbf16>, vector<8x8xbf16>, vector<8x8xf32> -> vector<8x8xf32>
    %c8_112 = arith.constant 8 : index
    %c8_113 = arith.constant 8 : index
    %222 = vector.load %arg12[%c8_112, %c8_113] : memref<16x32xf32, #tpu.memory_space<vmem>>, vector<8x8xf32>
    tpu.vector_store %arg12[%c8_112, %c8_113], %221 {strides = array<i32>} : memref<16x32xf32, #tpu.memory_space<vmem>>, vector<8x8xf32>,
    %223 = vector.extract_strided_slice %82 {offsets = [8, 16], sizes = [8, 8], strides = [1, 1]} : vector<16x128xf32> to vector<8x8xf32>
    %224 = arith.truncf %223 : vector<8x8xf32> to vector<8x8xbf16>
    %225 = vector.extract_strided_slice %82 {offsets = [8, 48], sizes = [8, 8], strides = [1, 1]} : vector<16x128xf32> to vector<8x8xf32>
    %226 = arith.truncf %225 : vector<8x8xf32> to vector<8x8xbf16>
    %227 = vector.extract_strided_slice %82 {offsets = [8, 80], sizes = [8, 8], strides = [1, 1]} : vector<16x128xf32> to vector<8x8xf32>
    %228 = arith.truncf %227 : vector<8x8xf32> to vector<8x8xbf16>
    %cst_114 = arith.constant dense<0.000000e+00> : vector<8x8xf32>
    %229 = tpu.matmul %224, %226, %cst_114 {dimension_numbers = #tpu.dot_dimension_numbers<[1], [1], [0], [0], [0, 0, 1, 0], [], []>} : vector<8x8xbf16>, vector<8x8xbf16>, vector<8x8xf32> -> vector<8x8xf32>
    %c2_115 = arith.constant 2 : index
    %c0_116 = arith.constant 0 : index
    %c0_117 = arith.constant 0 : index
    %230 = vector.load %arg2[%c2_115, %c0_116, %c0_117] : memref<4x8x8xf32, #tpu.memory_space<vmem>>, vector<1x8x8xf32>
    %231 = vector.shape_cast %230 : vector<1x8x8xf32> to vector<8x8xf32>
    %232 = arith.addf %229, %231 : vector<8x8xf32>
    %cst_118 = arith.constant dense<0xFF800000> : vector<8xf32>
    %233 = vector.multi_reduction <maximumf>, %232, %cst_118 [1] : vector<8x8xf32> to vector<8xf32>
    %234 = vector.shape_cast %233 : vector<8xf32> to vector<8x1xf32>
    %235 = vector.broadcast %234 : vector<8x1xf32> to vector<8x8xf32>
    %236 = arith.subf %232, %235 : vector<8x8xf32>
    %237 = math.exp %236 : vector<8x8xf32>
    %cst_119 = arith.constant dense<0.000000e+00> : vector<8xf32>
    %238 = vector.multi_reduction <add>, %237, %cst_119 [1] : vector<8x8xf32> to vector<8xf32>
    %239 = vector.shape_cast %238 : vector<8xf32> to vector<8x1xf32>
    %240 = tpu.reciprocal %239 {approx = true} : vector<8x1xf32> -> vector<8x1xf32>
    %241 = vector.broadcast %240 : vector<8x1xf32> to vector<8x8xf32>
    %242 = arith.mulf %237, %241 : vector<8x8xf32>
    %243 = arith.truncf %242 : vector<8x8xf32> to vector<8x8xbf16>
    %cst_120 = arith.constant dense<0.000000e+00> : vector<8x8xf32>
    %244 = tpu.matmul %243, %228, %cst_120 {dimension_numbers = #tpu.dot_dimension_numbers<[1], [0], [0], [1], [0, 0, 1, 1], [], []>} : vector<8x8xbf16>, vector<8x8xbf16>, vector<8x8xf32> -> vector<8x8xf32>
    %c8_121 = arith.constant 8 : index
    %c16_122 = arith.constant 16 : index
    %245 = vector.load %arg12[%c8_121, %c16_122] : memref<16x32xf32, #tpu.memory_space<vmem>>, vector<8x8xf32>
    tpu.vector_store %arg12[%c8_121, %c16_122], %244 {strides = array<i32>} : memref<16x32xf32, #tpu.memory_space<vmem>>, vector<8x8xf32>,
    %246 = vector.extract_strided_slice %82 {offsets = [8, 24], sizes = [8, 8], strides = [1, 1]} : vector<16x128xf32> to vector<8x8xf32>
    %247 = arith.truncf %246 : vector<8x8xf32> to vector<8x8xbf16>
    %248 = vector.extract_strided_slice %82 {offsets = [8, 56], sizes = [8, 8], strides = [1, 1]} : vector<16x128xf32> to vector<8x8xf32>
    %249 = arith.truncf %248 : vector<8x8xf32> to vector<8x8xbf16>
    %250 = vector.extract_strided_slice %82 {offsets = [8, 88], sizes = [8, 8], strides = [1, 1]} : vector<16x128xf32> to vector<8x8xf32>
    %251 = arith.truncf %250 : vector<8x8xf32> to vector<8x8xbf16>
    %cst_123 = arith.constant dense<0.000000e+00> : vector<8x8xf32>
    %252 = tpu.matmul %247, %249, %cst_123 {dimension_numbers = #tpu.dot_dimension_numbers<[1], [1], [0], [0], [0, 0, 1, 0], [], []>} : vector<8x8xbf16>, vector<8x8xbf16>, vector<8x8xf32> -> vector<8x8xf32>
    %c3_124 = arith.constant 3 : index
    %c0_125 = arith.constant 0 : index
    %c0_126 = arith.constant 0 : index
    %253 = vector.load %arg2[%c3_124, %c0_125, %c0_126] : memref<4x8x8xf32, #tpu.memory_space<vmem>>, vector<1x8x8xf32>
    %254 = vector.shape_cast %253 : vector<1x8x8xf32> to vector<8x8xf32>
    %255 = arith.addf %252, %254 : vector<8x8xf32>
    %cst_127 = arith.constant dense<0xFF800000> : vector<8xf32>
    %256 = vector.multi_reduction <maximumf>, %255, %cst_127 [1] : vector<8x8xf32> to vector<8xf32>
    %257 = vector.shape_cast %256 : vector<8xf32> to vector<8x1xf32>
    %258 = vector.broadcast %257 : vector<8x1xf32> to vector<8x8xf32>
    %259 = arith.subf %255, %258 : vector<8x8xf32>
    %260 = math.exp %259 : vector<8x8xf32>
    %cst_128 = arith.constant dense<0.000000e+00> : vector<8xf32>
    %261 = vector.multi_reduction <add>, %260, %cst_128 [1] : vector<8x8xf32> to vector<8xf32>
    %262 = vector.shape_cast %261 : vector<8xf32> to vector<8x1xf32>
    %263 = tpu.reciprocal %262 {approx = true} : vector<8x1xf32> -> vector<8x1xf32>
    %264 = vector.broadcast %263 : vector<8x1xf32> to vector<8x8xf32>
    %265 = arith.mulf %260, %264 : vector<8x8xf32>
    %266 = arith.truncf %265 : vector<8x8xf32> to vector<8x8xbf16>
    %cst_129 = arith.constant dense<0.000000e+00> : vector<8x8xf32>
    %267 = tpu.matmul %266, %251, %cst_129 {dimension_numbers = #tpu.dot_dimension_numbers<[1], [0], [0], [1], [0, 0, 1, 1], [], []>} : vector<8x8xbf16>, vector<8x8xbf16>, vector<8x8xf32> -> vector<8x8xf32>
    %c8_130 = arith.constant 8 : index
    %c24_131 = arith.constant 24 : index
    %268 = vector.load %arg12[%c8_130, %c24_131] : memref<16x32xf32, #tpu.memory_space<vmem>>, vector<8x8xf32>
    tpu.vector_store %arg12[%c8_130, %c24_131], %267 {strides = array<i32>} : memref<16x32xf32, #tpu.memory_space<vmem>>, vector<8x8xf32>,
    %c0_132 = arith.constant 0 : index
    %c0_133 = arith.constant 0 : index
    %269 = vector.load %arg12[%c0_132, %c0_133] : memref<16x32xf32, #tpu.memory_space<vmem>>, vector<16x32xf32>
    %270 = arith.truncf %269 : vector<16x32xf32> to vector<16x32xbf16>
    %cst_134 = arith.constant dense<0.000000e+00> : vector<16x128xf32>
    %271 = tpu.matmul %270, %84, %cst_134 {dimension_numbers = #tpu.dot_dimension_numbers<[1], [0], [0], [1], [0, 0, 1, 1], [], []>} : vector<16x32xbf16>, vector<32x128xbf16>, vector<16x128xf32> -> vector<16x128xf32>
    %272 = arith.addf %64, %271 : vector<16x128xf32>
    %c0_135 = arith.constant 0 : index
    %c0_136 = arith.constant 0 : index
    %c0_137 = arith.constant 0 : index
    %273 = vector.load %arg6[%c0_135, %c0_136, %c0_137] : memref<2x1x128xf32, #tpu.memory_space<vmem>>, vector<1x1x128xf32>
    %274 = vector.shape_cast %273 : vector<1x1x128xf32> to vector<1x128xf32>
    %275 = arith.mulf %272, %272 : vector<16x128xf32>
    %cst_138 = arith.constant dense<0.000000e+00> : vector<16xf32>
    %276 = vector.multi_reduction <add>, %275, %cst_138 [1] : vector<16x128xf32> to vector<16xf32>
    %277 = vector.shape_cast %276 : vector<16xf32> to vector<16x1xf32>
    %cst_139 = arith.constant 3.125000e-02 : f32
    %278 = vector.broadcast %cst_139 : f32 to vector<16x1xf32>
    %279 = arith.mulf %277, %278 : vector<16x1xf32>
    %cst_140 = arith.constant 9.99999997E-7 : f32
    %280 = vector.broadcast %cst_140 : f32 to vector<16x1xf32>
    %281 = arith.addf %279, %280 : vector<16x1xf32>
    %282 = math.rsqrt %281 : vector<16x1xf32>
    %283 = vector.broadcast %282 : vector<16x1xf32> to vector<16x128xf32>
    %284 = arith.mulf %272, %283 : vector<16x128xf32>
    %285 = vector.broadcast %274 : vector<1x128xf32> to vector<16x128xf32>
    %286 = arith.mulf %284, %285 : vector<16x128xf32>
    %287 = arith.truncf %286 : vector<16x128xf32> to vector<16x128xbf16>
    %c0_141 = arith.constant 0 : index
    %c0_142 = arith.constant 0 : index
    %c0_143 = arith.constant 0 : index
    %288 = vector.load %arg7[%c0_141, %c0_142, %c0_143] : memref<2x128x128xbf16, #tpu.memory_space<vmem>>, vector<1x128x128xbf16>
    %289 = vector.shape_cast %288 : vector<1x128x128xbf16> to vector<128x128xbf16>
    %cst_144 = arith.constant dense<0.000000e+00> : vector<16x128xf32>
    %290 = tpu.matmul %287, %289, %cst_144 {dimension_numbers = #tpu.dot_dimension_numbers<[1], [0], [0], [1], [0, 0, 1, 1], [], []>} : vector<16x128xbf16>, vector<128x128xbf16>, vector<16x128xf32> -> vector<16x128xf32>
    %291 = arith.mulf %290, %290 : vector<16x128xf32>
    %292 = arith.mulf %290, %291 : vector<16x128xf32>
    %cst_145 = arith.constant 4.471500e-02 : f32
    %293 = vector.broadcast %cst_145 : f32 to vector<16x128xf32>
    %294 = arith.mulf %293, %292 : vector<16x128xf32>
    %295 = arith.addf %290, %294 : vector<16x128xf32>
    %cst_146 = arith.constant 0.797884583 : f32
    %296 = vector.broadcast %cst_146 : f32 to vector<16x128xf32>
    %297 = arith.mulf %296, %295 : vector<16x128xf32>
    %298 = math.tanh %297 : vector<16x128xf32>
    %cst_147 = arith.constant 1.000000e+00 : f32
    %299 = vector.broadcast %cst_147 : f32 to vector<16x128xf32>
    %300 = arith.addf %299, %298 : vector<16x128xf32>
    %cst_148 = arith.constant 5.000000e-01 : f32
    %301 = vector.broadcast %cst_148 : f32 to vector<16x128xf32>
    %302 = arith.mulf %301, %300 : vector<16x128xf32>
    %303 = arith.mulf %290, %302 : vector<16x128xf32>
    %c64_i32 = arith.constant 64 : i32
    %304 = tpu.dynamic_rotate %290 by %c64_i32 dim 1 : vector<16x128xf32>, i32 -> vector<16x128xf32>
    %305 = arith.mulf %303, %304 : vector<16x128xf32>
    %306 = arith.truncf %305 : vector<16x128xf32> to vector<16x128xbf16>
    %c0_149 = arith.constant 0 : index
    %c0_150 = arith.constant 0 : index
    %c0_151 = arith.constant 0 : index
    %307 = vector.load %arg8[%c0_149, %c0_150, %c0_151] : memref<2x128x128xbf16, #tpu.memory_space<vmem>>, vector<1x128x128xbf16>
    %308 = vector.shape_cast %307 : vector<1x128x128xbf16> to vector<128x128xbf16>
    %cst_152 = arith.constant dense<0.000000e+00> : vector<16x128xf32>
    %309 = tpu.matmul %306, %308, %cst_152 {dimension_numbers = #tpu.dot_dimension_numbers<[1], [0], [0], [1], [0, 0, 1, 1], [], []>} : vector<16x128xbf16>, vector<128x128xbf16>, vector<16x128xf32> -> vector<16x128xf32>
    %310 = arith.addf %272, %309 : vector<16x128xf32>
    %c1_153 = arith.constant 1 : index
    %c0_154 = arith.constant 0 : index
    %c0_155 = arith.constant 0 : index
    %311 = vector.load %arg3[%c1_153, %c0_154, %c0_155] : memref<2x1x128xf32, #tpu.memory_space<vmem>>, vector<1x1x128xf32>
    %312 = vector.shape_cast %311 : vector<1x1x128xf32> to vector<1x128xf32>
    %313 = arith.mulf %310, %310 : vector<16x128xf32>
    %cst_156 = arith.constant dense<0.000000e+00> : vector<16xf32>
    %314 = vector.multi_reduction <add>, %313, %cst_156 [1] : vector<16x128xf32> to vector<16xf32>
    %315 = vector.shape_cast %314 : vector<16xf32> to vector<16x1xf32>
    %cst_157 = arith.constant 3.125000e-02 : f32
    %316 = vector.broadcast %cst_157 : f32 to vector<16x1xf32>
    %317 = arith.mulf %315, %316 : vector<16x1xf32>
    %cst_158 = arith.constant 9.99999997E-7 : f32
    %318 = vector.broadcast %cst_158 : f32 to vector<16x1xf32>
    %319 = arith.addf %317, %318 : vector<16x1xf32>
    %320 = math.rsqrt %319 : vector<16x1xf32>
    %321 = vector.broadcast %320 : vector<16x1xf32> to vector<16x128xf32>
    %322 = arith.mulf %310, %321 : vector<16x128xf32>
    %323 = vector.broadcast %312 : vector<1x128xf32> to vector<16x128xf32>
    %324 = arith.mulf %322, %323 : vector<16x128xf32>
    %325 = arith.truncf %324 : vector<16x128xf32> to vector<16x128xbf16>
    %c1_159 = arith.constant 1 : index
    %c0_160 = arith.constant 0 : index
    %c0_161 = arith.constant 0 : index
    %326 = vector.load %arg4[%c1_159, %c0_160, %c0_161] : memref<2x128x128xbf16, #tpu.memory_space<vmem>>, vector<1x128x128xbf16>
    %327 = vector.shape_cast %326 : vector<1x128x128xbf16> to vector<128x128xbf16>
    %cst_162 = arith.constant dense<0.000000e+00> : vector<16x128xf32>
    %328 = tpu.matmul %325, %327, %cst_162 {dimension_numbers = #tpu.dot_dimension_numbers<[1], [0], [0], [1], [0, 0, 1, 1], [], []>} : vector<16x128xbf16>, vector<128x128xbf16>, vector<16x128xf32> -> vector<16x128xf32>
    %c1_163 = arith.constant 1 : index
    %c0_164 = arith.constant 0 : index
    %c0_165 = arith.constant 0 : index
    %329 = vector.load %arg5[%c1_163, %c0_164, %c0_165] : memref<2x32x128xbf16, #tpu.memory_space<vmem>>, vector<1x32x128xbf16>
    %330 = vector.shape_cast %329 : vector<1x32x128xbf16> to vector<32x128xbf16>
    %331 = vector.extract_strided_slice %328 {offsets = [0, 0], sizes = [8, 8], strides = [1, 1]} : vector<16x128xf32> to vector<8x8xf32>
    %332 = arith.truncf %331 : vector<8x8xf32> to vector<8x8xbf16>
    %333 = vector.extract_strided_slice %328 {offsets = [0, 32], sizes = [8, 8], strides = [1, 1]} : vector<16x128xf32> to vector<8x8xf32>
    %334 = arith.truncf %333 : vector<8x8xf32> to vector<8x8xbf16>
    %335 = vector.extract_strided_slice %328 {offsets = [0, 64], sizes = [8, 8], strides = [1, 1]} : vector<16x128xf32> to vector<8x8xf32>
    %336 = arith.truncf %335 : vector<8x8xf32> to vector<8x8xbf16>
    %cst_166 = arith.constant dense<0.000000e+00> : vector<8x8xf32>
    %337 = tpu.matmul %332, %334, %cst_166 {dimension_numbers = #tpu.dot_dimension_numbers<[1], [1], [0], [0], [0, 0, 1, 0], [], []>} : vector<8x8xbf16>, vector<8x8xbf16>, vector<8x8xf32> -> vector<8x8xf32>
    %c0_167 = arith.constant 0 : index
    %c0_168 = arith.constant 0 : index
    %c0_169 = arith.constant 0 : index
    %338 = vector.load %arg2[%c0_167, %c0_168, %c0_169] : memref<4x8x8xf32, #tpu.memory_space<vmem>>, vector<1x8x8xf32>
    %339 = vector.shape_cast %338 : vector<1x8x8xf32> to vector<8x8xf32>
    %340 = arith.addf %337, %339 : vector<8x8xf32>
    %cst_170 = arith.constant dense<0xFF800000> : vector<8xf32>
    %341 = vector.multi_reduction <maximumf>, %340, %cst_170 [1] : vector<8x8xf32> to vector<8xf32>
    %342 = vector.shape_cast %341 : vector<8xf32> to vector<8x1xf32>
    %343 = vector.broadcast %342 : vector<8x1xf32> to vector<8x8xf32>
    %344 = arith.subf %340, %343 : vector<8x8xf32>
    %345 = math.exp %344 : vector<8x8xf32>
    %cst_171 = arith.constant dense<0.000000e+00> : vector<8xf32>
    %346 = vector.multi_reduction <add>, %345, %cst_171 [1] : vector<8x8xf32> to vector<8xf32>
    %347 = vector.shape_cast %346 : vector<8xf32> to vector<8x1xf32>
    %348 = tpu.reciprocal %347 {approx = true} : vector<8x1xf32> -> vector<8x1xf32>
    %349 = vector.broadcast %348 : vector<8x1xf32> to vector<8x8xf32>
    %350 = arith.mulf %345, %349 : vector<8x8xf32>
    %351 = arith.truncf %350 : vector<8x8xf32> to vector<8x8xbf16>
    %cst_172 = arith.constant dense<0.000000e+00> : vector<8x8xf32>
    %352 = tpu.matmul %351, %336, %cst_172 {dimension_numbers = #tpu.dot_dimension_numbers<[1], [0], [0], [1], [0, 0, 1, 1], [], []>} : vector<8x8xbf16>, vector<8x8xbf16>, vector<8x8xf32> -> vector<8x8xf32>
    %c0_173 = arith.constant 0 : index
    %c0_174 = arith.constant 0 : index
    %353 = vector.load %arg12[%c0_173, %c0_174] : memref<16x32xf32, #tpu.memory_space<vmem>>, vector<8x8xf32>
    tpu.vector_store %arg12[%c0_173, %c0_174], %352 {strides = array<i32>} : memref<16x32xf32, #tpu.memory_space<vmem>>, vector<8x8xf32>,
    %354 = vector.extract_strided_slice %328 {offsets = [0, 8], sizes = [8, 8], strides = [1, 1]} : vector<16x128xf32> to vector<8x8xf32>
    %355 = arith.truncf %354 : vector<8x8xf32> to vector<8x8xbf16>
    %356 = vector.extract_strided_slice %328 {offsets = [0, 40], sizes = [8, 8], strides = [1, 1]} : vector<16x128xf32> to vector<8x8xf32>
    %357 = arith.truncf %356 : vector<8x8xf32> to vector<8x8xbf16>
    %358 = vector.extract_strided_slice %328 {offsets = [0, 72], sizes = [8, 8], strides = [1, 1]} : vector<16x128xf32> to vector<8x8xf32>
    %359 = arith.truncf %358 : vector<8x8xf32> to vector<8x8xbf16>
    %cst_175 = arith.constant dense<0.000000e+00> : vector<8x8xf32>
    %360 = tpu.matmul %355, %357, %cst_175 {dimension_numbers = #tpu.dot_dimension_numbers<[1], [1], [0], [0], [0, 0, 1, 0], [], []>} : vector<8x8xbf16>, vector<8x8xbf16>, vector<8x8xf32> -> vector<8x8xf32>
    %c1_176 = arith.constant 1 : index
    %c0_177 = arith.constant 0 : index
    %c0_178 = arith.constant 0 : index
    %361 = vector.load %arg2[%c1_176, %c0_177, %c0_178] : memref<4x8x8xf32, #tpu.memory_space<vmem>>, vector<1x8x8xf32>
    %362 = vector.shape_cast %361 : vector<1x8x8xf32> to vector<8x8xf32>
    %363 = arith.addf %360, %362 : vector<8x8xf32>
    %cst_179 = arith.constant dense<0xFF800000> : vector<8xf32>
    %364 = vector.multi_reduction <maximumf>, %363, %cst_179 [1] : vector<8x8xf32> to vector<8xf32>
    %365 = vector.shape_cast %364 : vector<8xf32> to vector<8x1xf32>
    %366 = vector.broadcast %365 : vector<8x1xf32> to vector<8x8xf32>
    %367 = arith.subf %363, %366 : vector<8x8xf32>
    %368 = math.exp %367 : vector<8x8xf32>
    %cst_180 = arith.constant dense<0.000000e+00> : vector<8xf32>
    %369 = vector.multi_reduction <add>, %368, %cst_180 [1] : vector<8x8xf32> to vector<8xf32>
    %370 = vector.shape_cast %369 : vector<8xf32> to vector<8x1xf32>
    %371 = tpu.reciprocal %370 {approx = true} : vector<8x1xf32> -> vector<8x1xf32>
    %372 = vector.broadcast %371 : vector<8x1xf32> to vector<8x8xf32>
    %373 = arith.mulf %368, %372 : vector<8x8xf32>
    %374 = arith.truncf %373 : vector<8x8xf32> to vector<8x8xbf16>
    %cst_181 = arith.constant dense<0.000000e+00> : vector<8x8xf32>
    %375 = tpu.matmul %374, %359, %cst_181 {dimension_numbers = #tpu.dot_dimension_numbers<[1], [0], [0], [1], [0, 0, 1, 1], [], []>} : vector<8x8xbf16>, vector<8x8xbf16>, vector<8x8xf32> -> vector<8x8xf32>
    %c0_182 = arith.constant 0 : index
    %c8_183 = arith.constant 8 : index
    %376 = vector.load %arg12[%c0_182, %c8_183] : memref<16x32xf32, #tpu.memory_space<vmem>>, vector<8x8xf32>
    tpu.vector_store %arg12[%c0_182, %c8_183], %375 {strides = array<i32>} : memref<16x32xf32, #tpu.memory_space<vmem>>, vector<8x8xf32>,
    %377 = vector.extract_strided_slice %328 {offsets = [0, 16], sizes = [8, 8], strides = [1, 1]} : vector<16x128xf32> to vector<8x8xf32>
    %378 = arith.truncf %377 : vector<8x8xf32> to vector<8x8xbf16>
    %379 = vector.extract_strided_slice %328 {offsets = [0, 48], sizes = [8, 8], strides = [1, 1]} : vector<16x128xf32> to vector<8x8xf32>
    %380 = arith.truncf %379 : vector<8x8xf32> to vector<8x8xbf16>
    %381 = vector.extract_strided_slice %328 {offsets = [0, 80], sizes = [8, 8], strides = [1, 1]} : vector<16x128xf32> to vector<8x8xf32>
    %382 = arith.truncf %381 : vector<8x8xf32> to vector<8x8xbf16>
    %cst_184 = arith.constant dense<0.000000e+00> : vector<8x8xf32>
    %383 = tpu.matmul %378, %380, %cst_184 {dimension_numbers = #tpu.dot_dimension_numbers<[1], [1], [0], [0], [0, 0, 1, 0], [], []>} : vector<8x8xbf16>, vector<8x8xbf16>, vector<8x8xf32> -> vector<8x8xf32>
    %c2_185 = arith.constant 2 : index
    %c0_186 = arith.constant 0 : index
    %c0_187 = arith.constant 0 : index
    %384 = vector.load %arg2[%c2_185, %c0_186, %c0_187] : memref<4x8x8xf32, #tpu.memory_space<vmem>>, vector<1x8x8xf32>
    %385 = vector.shape_cast %384 : vector<1x8x8xf32> to vector<8x8xf32>
    %386 = arith.addf %383, %385 : vector<8x8xf32>
    %cst_188 = arith.constant dense<0xFF800000> : vector<8xf32>
    %387 = vector.multi_reduction <maximumf>, %386, %cst_188 [1] : vector<8x8xf32> to vector<8xf32>
    %388 = vector.shape_cast %387 : vector<8xf32> to vector<8x1xf32>
    %389 = vector.broadcast %388 : vector<8x1xf32> to vector<8x8xf32>
    %390 = arith.subf %386, %389 : vector<8x8xf32>
    %391 = math.exp %390 : vector<8x8xf32>
    %cst_189 = arith.constant dense<0.000000e+00> : vector<8xf32>
    %392 = vector.multi_reduction <add>, %391, %cst_189 [1] : vector<8x8xf32> to vector<8xf32>
    %393 = vector.shape_cast %392 : vector<8xf32> to vector<8x1xf32>
    %394 = tpu.reciprocal %393 {approx = true} : vector<8x1xf32> -> vector<8x1xf32>
    %395 = vector.broadcast %394 : vector<8x1xf32> to vector<8x8xf32>
    %396 = arith.mulf %391, %395 : vector<8x8xf32>
    %397 = arith.truncf %396 : vector<8x8xf32> to vector<8x8xbf16>
    %cst_190 = arith.constant dense<0.000000e+00> : vector<8x8xf32>
    %398 = tpu.matmul %397, %382, %cst_190 {dimension_numbers = #tpu.dot_dimension_numbers<[1], [0], [0], [1], [0, 0, 1, 1], [], []>} : vector<8x8xbf16>, vector<8x8xbf16>, vector<8x8xf32> -> vector<8x8xf32>
    %c0_191 = arith.constant 0 : index
    %c16_192 = arith.constant 16 : index
    %399 = vector.load %arg12[%c0_191, %c16_192] : memref<16x32xf32, #tpu.memory_space<vmem>>, vector<8x8xf32>
    tpu.vector_store %arg12[%c0_191, %c16_192], %398 {strides = array<i32>} : memref<16x32xf32, #tpu.memory_space<vmem>>, vector<8x8xf32>,
    %400 = vector.extract_strided_slice %328 {offsets = [0, 24], sizes = [8, 8], strides = [1, 1]} : vector<16x128xf32> to vector<8x8xf32>
    %401 = arith.truncf %400 : vector<8x8xf32> to vector<8x8xbf16>
    %402 = vector.extract_strided_slice %328 {offsets = [0, 56], sizes = [8, 8], strides = [1, 1]} : vector<16x128xf32> to vector<8x8xf32>
    %403 = arith.truncf %402 : vector<8x8xf32> to vector<8x8xbf16>
    %404 = vector.extract_strided_slice %328 {offsets = [0, 88], sizes = [8, 8], strides = [1, 1]} : vector<16x128xf32> to vector<8x8xf32>
    %405 = arith.truncf %404 : vector<8x8xf32> to vector<8x8xbf16>
    %cst_193 = arith.constant dense<0.000000e+00> : vector<8x8xf32>
    %406 = tpu.matmul %401, %403, %cst_193 {dimension_numbers = #tpu.dot_dimension_numbers<[1], [1], [0], [0], [0, 0, 1, 0], [], []>} : vector<8x8xbf16>, vector<8x8xbf16>, vector<8x8xf32> -> vector<8x8xf32>
    %c3_194 = arith.constant 3 : index
    %c0_195 = arith.constant 0 : index
    %c0_196 = arith.constant 0 : index
    %407 = vector.load %arg2[%c3_194, %c0_195, %c0_196] : memref<4x8x8xf32, #tpu.memory_space<vmem>>, vector<1x8x8xf32>
    %408 = vector.shape_cast %407 : vector<1x8x8xf32> to vector<8x8xf32>
    %409 = arith.addf %406, %408 : vector<8x8xf32>
    %cst_197 = arith.constant dense<0xFF800000> : vector<8xf32>
    %410 = vector.multi_reduction <maximumf>, %409, %cst_197 [1] : vector<8x8xf32> to vector<8xf32>
    %411 = vector.shape_cast %410 : vector<8xf32> to vector<8x1xf32>
    %412 = vector.broadcast %411 : vector<8x1xf32> to vector<8x8xf32>
    %413 = arith.subf %409, %412 : vector<8x8xf32>
    %414 = math.exp %413 : vector<8x8xf32>
    %cst_198 = arith.constant dense<0.000000e+00> : vector<8xf32>
    %415 = vector.multi_reduction <add>, %414, %cst_198 [1] : vector<8x8xf32> to vector<8xf32>
    %416 = vector.shape_cast %415 : vector<8xf32> to vector<8x1xf32>
    %417 = tpu.reciprocal %416 {approx = true} : vector<8x1xf32> -> vector<8x1xf32>
    %418 = vector.broadcast %417 : vector<8x1xf32> to vector<8x8xf32>
    %419 = arith.mulf %414, %418 : vector<8x8xf32>
    %420 = arith.truncf %419 : vector<8x8xf32> to vector<8x8xbf16>
    %cst_199 = arith.constant dense<0.000000e+00> : vector<8x8xf32>
    %421 = tpu.matmul %420, %405, %cst_199 {dimension_numbers = #tpu.dot_dimension_numbers<[1], [0], [0], [1], [0, 0, 1, 1], [], []>} : vector<8x8xbf16>, vector<8x8xbf16>, vector<8x8xf32> -> vector<8x8xf32>
    %c0_200 = arith.constant 0 : index
    %c24_201 = arith.constant 24 : index
    %422 = vector.load %arg12[%c0_200, %c24_201] : memref<16x32xf32, #tpu.memory_space<vmem>>, vector<8x8xf32>
    tpu.vector_store %arg12[%c0_200, %c24_201], %421 {strides = array<i32>} : memref<16x32xf32, #tpu.memory_space<vmem>>, vector<8x8xf32>,
    %423 = vector.extract_strided_slice %328 {offsets = [8, 0], sizes = [8, 8], strides = [1, 1]} : vector<16x128xf32> to vector<8x8xf32>
    %424 = arith.truncf %423 : vector<8x8xf32> to vector<8x8xbf16>
    %425 = vector.extract_strided_slice %328 {offsets = [8, 32], sizes = [8, 8], strides = [1, 1]} : vector<16x128xf32> to vector<8x8xf32>
    %426 = arith.truncf %425 : vector<8x8xf32> to vector<8x8xbf16>
    %427 = vector.extract_strided_slice %328 {offsets = [8, 64], sizes = [8, 8], strides = [1, 1]} : vector<16x128xf32> to vector<8x8xf32>
    %428 = arith.truncf %427 : vector<8x8xf32> to vector<8x8xbf16>
    %cst_202 = arith.constant dense<0.000000e+00> : vector<8x8xf32>
    %429 = tpu.matmul %424, %426, %cst_202 {dimension_numbers = #tpu.dot_dimension_numbers<[1], [1], [0], [0], [0, 0, 1, 0], [], []>} : vector<8x8xbf16>, vector<8x8xbf16>, vector<8x8xf32> -> vector<8x8xf32>
    %c0_203 = arith.constant 0 : index
    %c0_204 = arith.constant 0 : index
    %c0_205 = arith.constant 0 : index
    %430 = vector.load %arg2[%c0_203, %c0_204, %c0_205] : memref<4x8x8xf32, #tpu.memory_space<vmem>>, vector<1x8x8xf32>
    %431 = vector.shape_cast %430 : vector<1x8x8xf32> to vector<8x8xf32>
    %432 = arith.addf %429, %431 : vector<8x8xf32>
    %cst_206 = arith.constant dense<0xFF800000> : vector<8xf32>
    %433 = vector.multi_reduction <maximumf>, %432, %cst_206 [1] : vector<8x8xf32> to vector<8xf32>
    %434 = vector.shape_cast %433 : vector<8xf32> to vector<8x1xf32>
    %435 = vector.broadcast %434 : vector<8x1xf32> to vector<8x8xf32>
    %436 = arith.subf %432, %435 : vector<8x8xf32>
    %437 = math.exp %436 : vector<8x8xf32>
    %cst_207 = arith.constant dense<0.000000e+00> : vector<8xf32>
    %438 = vector.multi_reduction <add>, %437, %cst_207 [1] : vector<8x8xf32> to vector<8xf32>
    %439 = vector.shape_cast %438 : vector<8xf32> to vector<8x1xf32>
    %440 = tpu.reciprocal %439 {approx = true} : vector<8x1xf32> -> vector<8x1xf32>
    %441 = vector.broadcast %440 : vector<8x1xf32> to vector<8x8xf32>
    %442 = arith.mulf %437, %441 : vector<8x8xf32>
    %443 = arith.truncf %442 : vector<8x8xf32> to vector<8x8xbf16>
    %cst_208 = arith.constant dense<0.000000e+00> : vector<8x8xf32>
    %444 = tpu.matmul %443, %428, %cst_208 {dimension_numbers = #tpu.dot_dimension_numbers<[1], [0], [0], [1], [0, 0, 1, 1], [], []>} : vector<8x8xbf16>, vector<8x8xbf16>, vector<8x8xf32> -> vector<8x8xf32>
    %c8_209 = arith.constant 8 : index
    %c0_210 = arith.constant 0 : index
    %445 = vector.load %arg12[%c8_209, %c0_210] : memref<16x32xf32, #tpu.memory_space<vmem>>, vector<8x8xf32>
    tpu.vector_store %arg12[%c8_209, %c0_210], %444 {strides = array<i32>} : memref<16x32xf32, #tpu.memory_space<vmem>>, vector<8x8xf32>,
    %446 = vector.extract_strided_slice %328 {offsets = [8, 8], sizes = [8, 8], strides = [1, 1]} : vector<16x128xf32> to vector<8x8xf32>
    %447 = arith.truncf %446 : vector<8x8xf32> to vector<8x8xbf16>
    %448 = vector.extract_strided_slice %328 {offsets = [8, 40], sizes = [8, 8], strides = [1, 1]} : vector<16x128xf32> to vector<8x8xf32>
    %449 = arith.truncf %448 : vector<8x8xf32> to vector<8x8xbf16>
    %450 = vector.extract_strided_slice %328 {offsets = [8, 72], sizes = [8, 8], strides = [1, 1]} : vector<16x128xf32> to vector<8x8xf32>
    %451 = arith.truncf %450 : vector<8x8xf32> to vector<8x8xbf16>
    %cst_211 = arith.constant dense<0.000000e+00> : vector<8x8xf32>
    %452 = tpu.matmul %447, %449, %cst_211 {dimension_numbers = #tpu.dot_dimension_numbers<[1], [1], [0], [0], [0, 0, 1, 0], [], []>} : vector<8x8xbf16>, vector<8x8xbf16>, vector<8x8xf32> -> vector<8x8xf32>
    %c1_212 = arith.constant 1 : index
    %c0_213 = arith.constant 0 : index
    %c0_214 = arith.constant 0 : index
    %453 = vector.load %arg2[%c1_212, %c0_213, %c0_214] : memref<4x8x8xf32, #tpu.memory_space<vmem>>, vector<1x8x8xf32>
    %454 = vector.shape_cast %453 : vector<1x8x8xf32> to vector<8x8xf32>
    %455 = arith.addf %452, %454 : vector<8x8xf32>
    %cst_215 = arith.constant dense<0xFF800000> : vector<8xf32>
    %456 = vector.multi_reduction <maximumf>, %455, %cst_215 [1] : vector<8x8xf32> to vector<8xf32>
    %457 = vector.shape_cast %456 : vector<8xf32> to vector<8x1xf32>
    %458 = vector.broadcast %457 : vector<8x1xf32> to vector<8x8xf32>
    %459 = arith.subf %455, %458 : vector<8x8xf32>
    %460 = math.exp %459 : vector<8x8xf32>
    %cst_216 = arith.constant dense<0.000000e+00> : vector<8xf32>
    %461 = vector.multi_reduction <add>, %460, %cst_216 [1] : vector<8x8xf32> to vector<8xf32>
    %462 = vector.shape_cast %461 : vector<8xf32> to vector<8x1xf32>
    %463 = tpu.reciprocal %462 {approx = true} : vector<8x1xf32> -> vector<8x1xf32>
    %464 = vector.broadcast %463 : vector<8x1xf32> to vector<8x8xf32>
    %465 = arith.mulf %460, %464 : vector<8x8xf32>
    %466 = arith.truncf %465 : vector<8x8xf32> to vector<8x8xbf16>
    %cst_217 = arith.constant dense<0.000000e+00> : vector<8x8xf32>
    %467 = tpu.matmul %466, %451, %cst_217 {dimension_numbers = #tpu.dot_dimension_numbers<[1], [0], [0], [1], [0, 0, 1, 1], [], []>} : vector<8x8xbf16>, vector<8x8xbf16>, vector<8x8xf32> -> vector<8x8xf32>
    %c8_218 = arith.constant 8 : index
    %c8_219 = arith.constant 8 : index
    %468 = vector.load %arg12[%c8_218, %c8_219] : memref<16x32xf32, #tpu.memory_space<vmem>>, vector<8x8xf32>
    tpu.vector_store %arg12[%c8_218, %c8_219], %467 {strides = array<i32>} : memref<16x32xf32, #tpu.memory_space<vmem>>, vector<8x8xf32>,
    %469 = vector.extract_strided_slice %328 {offsets = [8, 16], sizes = [8, 8], strides = [1, 1]} : vector<16x128xf32> to vector<8x8xf32>
    %470 = arith.truncf %469 : vector<8x8xf32> to vector<8x8xbf16>
    %471 = vector.extract_strided_slice %328 {offsets = [8, 48], sizes = [8, 8], strides = [1, 1]} : vector<16x128xf32> to vector<8x8xf32>
    %472 = arith.truncf %471 : vector<8x8xf32> to vector<8x8xbf16>
    %473 = vector.extract_strided_slice %328 {offsets = [8, 80], sizes = [8, 8], strides = [1, 1]} : vector<16x128xf32> to vector<8x8xf32>
    %474 = arith.truncf %473 : vector<8x8xf32> to vector<8x8xbf16>
    %cst_220 = arith.constant dense<0.000000e+00> : vector<8x8xf32>
    %475 = tpu.matmul %470, %472, %cst_220 {dimension_numbers = #tpu.dot_dimension_numbers<[1], [1], [0], [0], [0, 0, 1, 0], [], []>} : vector<8x8xbf16>, vector<8x8xbf16>, vector<8x8xf32> -> vector<8x8xf32>
    %c2_221 = arith.constant 2 : index
    %c0_222 = arith.constant 0 : index
    %c0_223 = arith.constant 0 : index
    %476 = vector.load %arg2[%c2_221, %c0_222, %c0_223] : memref<4x8x8xf32, #tpu.memory_space<vmem>>, vector<1x8x8xf32>
    %477 = vector.shape_cast %476 : vector<1x8x8xf32> to vector<8x8xf32>
    %478 = arith.addf %475, %477 : vector<8x8xf32>
    %cst_224 = arith.constant dense<0xFF800000> : vector<8xf32>
    %479 = vector.multi_reduction <maximumf>, %478, %cst_224 [1] : vector<8x8xf32> to vector<8xf32>
    %480 = vector.shape_cast %479 : vector<8xf32> to vector<8x1xf32>
    %481 = vector.broadcast %480 : vector<8x1xf32> to vector<8x8xf32>
    %482 = arith.subf %478, %481 : vector<8x8xf32>
    %483 = math.exp %482 : vector<8x8xf32>
    %cst_225 = arith.constant dense<0.000000e+00> : vector<8xf32>
    %484 = vector.multi_reduction <add>, %483, %cst_225 [1] : vector<8x8xf32> to vector<8xf32>
    %485 = vector.shape_cast %484 : vector<8xf32> to vector<8x1xf32>
    %486 = tpu.reciprocal %485 {approx = true} : vector<8x1xf32> -> vector<8x1xf32>
    %487 = vector.broadcast %486 : vector<8x1xf32> to vector<8x8xf32>
    %488 = arith.mulf %483, %487 : vector<8x8xf32>
    %489 = arith.truncf %488 : vector<8x8xf32> to vector<8x8xbf16>
    %cst_226 = arith.constant dense<0.000000e+00> : vector<8x8xf32>
    %490 = tpu.matmul %489, %474, %cst_226 {dimension_numbers = #tpu.dot_dimension_numbers<[1], [0], [0], [1], [0, 0, 1, 1], [], []>} : vector<8x8xbf16>, vector<8x8xbf16>, vector<8x8xf32> -> vector<8x8xf32>
    %c8_227 = arith.constant 8 : index
    %c16_228 = arith.constant 16 : index
    %491 = vector.load %arg12[%c8_227, %c16_228] : memref<16x32xf32, #tpu.memory_space<vmem>>, vector<8x8xf32>
    tpu.vector_store %arg12[%c8_227, %c16_228], %490 {strides = array<i32>} : memref<16x32xf32, #tpu.memory_space<vmem>>, vector<8x8xf32>,
    %492 = vector.extract_strided_slice %328 {offsets = [8, 24], sizes = [8, 8], strides = [1, 1]} : vector<16x128xf32> to vector<8x8xf32>
    %493 = arith.truncf %492 : vector<8x8xf32> to vector<8x8xbf16>
    %494 = vector.extract_strided_slice %328 {offsets = [8, 56], sizes = [8, 8], strides = [1, 1]} : vector<16x128xf32> to vector<8x8xf32>
    %495 = arith.truncf %494 : vector<8x8xf32> to vector<8x8xbf16>
    %496 = vector.extract_strided_slice %328 {offsets = [8, 88], sizes = [8, 8], strides = [1, 1]} : vector<16x128xf32> to vector<8x8xf32>
    %497 = arith.truncf %496 : vector<8x8xf32> to vector<8x8xbf16>
    %cst_229 = arith.constant dense<0.000000e+00> : vector<8x8xf32>
    %498 = tpu.matmul %493, %495, %cst_229 {dimension_numbers = #tpu.dot_dimension_numbers<[1], [1], [0], [0], [0, 0, 1, 0], [], []>} : vector<8x8xbf16>, vector<8x8xbf16>, vector<8x8xf32> -> vector<8x8xf32>
    %c3_230 = arith.constant 3 : index
    %c0_231 = arith.constant 0 : index
    %c0_232 = arith.constant 0 : index
    %499 = vector.load %arg2[%c3_230, %c0_231, %c0_232] : memref<4x8x8xf32, #tpu.memory_space<vmem>>, vector<1x8x8xf32>
    %500 = vector.shape_cast %499 : vector<1x8x8xf32> to vector<8x8xf32>
    %501 = arith.addf %498, %500 : vector<8x8xf32>
    %cst_233 = arith.constant dense<0xFF800000> : vector<8xf32>
    %502 = vector.multi_reduction <maximumf>, %501, %cst_233 [1] : vector<8x8xf32> to vector<8xf32>
    %503 = vector.shape_cast %502 : vector<8xf32> to vector<8x1xf32>
    %504 = vector.broadcast %503 : vector<8x1xf32> to vector<8x8xf32>
    %505 = arith.subf %501, %504 : vector<8x8xf32>
    %506 = math.exp %505 : vector<8x8xf32>
    %cst_234 = arith.constant dense<0.000000e+00> : vector<8xf32>
    %507 = vector.multi_reduction <add>, %506, %cst_234 [1] : vector<8x8xf32> to vector<8xf32>
    %508 = vector.shape_cast %507 : vector<8xf32> to vector<8x1xf32>
    %509 = tpu.reciprocal %508 {approx = true} : vector<8x1xf32> -> vector<8x1xf32>
    %510 = vector.broadcast %509 : vector<8x1xf32> to vector<8x8xf32>
    %511 = arith.mulf %506, %510 : vector<8x8xf32>
    %512 = arith.truncf %511 : vector<8x8xf32> to vector<8x8xbf16>
    %cst_235 = arith.constant dense<0.000000e+00> : vector<8x8xf32>
    %513 = tpu.matmul %512, %497, %cst_235 {dimension_numbers = #tpu.dot_dimension_numbers<[1], [0], [0], [1], [0, 0, 1, 1], [], []>} : vector<8x8xbf16>, vector<8x8xbf16>, vector<8x8xf32> -> vector<8x8xf32>
    %c8_236 = arith.constant 8 : index
    %c24_237 = arith.constant 24 : index
    %514 = vector.load %arg12[%c8_236, %c24_237] : memref<16x32xf32, #tpu.memory_space<vmem>>, vector<8x8xf32>
    tpu.vector_store %arg12[%c8_236, %c24_237], %513 {strides = array<i32>} : memref<16x32xf32, #tpu.memory_space<vmem>>, vector<8x8xf32>,
    %c0_238 = arith.constant 0 : index
    %c0_239 = arith.constant 0 : index
    %515 = vector.load %arg12[%c0_238, %c0_239] : memref<16x32xf32, #tpu.memory_space<vmem>>, vector<16x32xf32>
    %516 = arith.truncf %515 : vector<16x32xf32> to vector<16x32xbf16>
    %cst_240 = arith.constant dense<0.000000e+00> : vector<16x128xf32>
    %517 = tpu.matmul %516, %330, %cst_240 {dimension_numbers = #tpu.dot_dimension_numbers<[1], [0], [0], [1], [0, 0, 1, 1], [], []>} : vector<16x32xbf16>, vector<32x128xbf16>, vector<16x128xf32> -> vector<16x128xf32>
    %518 = arith.addf %310, %517 : vector<16x128xf32>
    %c1_241 = arith.constant 1 : index
    %c0_242 = arith.constant 0 : index
    %c0_243 = arith.constant 0 : index
    %519 = vector.load %arg6[%c1_241, %c0_242, %c0_243] : memref<2x1x128xf32, #tpu.memory_space<vmem>>, vector<1x1x128xf32>
    %520 = vector.shape_cast %519 : vector<1x1x128xf32> to vector<1x128xf32>
    %521 = arith.mulf %518, %518 : vector<16x128xf32>
    %cst_244 = arith.constant dense<0.000000e+00> : vector<16xf32>
    %522 = vector.multi_reduction <add>, %521, %cst_244 [1] : vector<16x128xf32> to vector<16xf32>
    %523 = vector.shape_cast %522 : vector<16xf32> to vector<16x1xf32>
    %cst_245 = arith.constant 3.125000e-02 : f32
    %524 = vector.broadcast %cst_245 : f32 to vector<16x1xf32>
    %525 = arith.mulf %523, %524 : vector<16x1xf32>
    %cst_246 = arith.constant 9.99999997E-7 : f32
    %526 = vector.broadcast %cst_246 : f32 to vector<16x1xf32>
    %527 = arith.addf %525, %526 : vector<16x1xf32>
    %528 = math.rsqrt %527 : vector<16x1xf32>
    %529 = vector.broadcast %528 : vector<16x1xf32> to vector<16x128xf32>
    %530 = arith.mulf %518, %529 : vector<16x128xf32>
    %531 = vector.broadcast %520 : vector<1x128xf32> to vector<16x128xf32>
    %532 = arith.mulf %530, %531 : vector<16x128xf32>
    %533 = arith.truncf %532 : vector<16x128xf32> to vector<16x128xbf16>
    %c1_247 = arith.constant 1 : index
    %c0_248 = arith.constant 0 : index
    %c0_249 = arith.constant 0 : index
    %534 = vector.load %arg7[%c1_247, %c0_248, %c0_249] : memref<2x128x128xbf16, #tpu.memory_space<vmem>>, vector<1x128x128xbf16>
    %535 = vector.shape_cast %534 : vector<1x128x128xbf16> to vector<128x128xbf16>
    %cst_250 = arith.constant dense<0.000000e+00> : vector<16x128xf32>
    %536 = tpu.matmul %533, %535, %cst_250 {dimension_numbers = #tpu.dot_dimension_numbers<[1], [0], [0], [1], [0, 0, 1, 1], [], []>} : vector<16x128xbf16>, vector<128x128xbf16>, vector<16x128xf32> -> vector<16x128xf32>
    %537 = arith.mulf %536, %536 : vector<16x128xf32>
    %538 = arith.mulf %536, %537 : vector<16x128xf32>
    %cst_251 = arith.constant 4.471500e-02 : f32
    %539 = vector.broadcast %cst_251 : f32 to vector<16x128xf32>
    %540 = arith.mulf %539, %538 : vector<16x128xf32>
    %541 = arith.addf %536, %540 : vector<16x128xf32>
    %cst_252 = arith.constant 0.797884583 : f32
    %542 = vector.broadcast %cst_252 : f32 to vector<16x128xf32>
    %543 = arith.mulf %542, %541 : vector<16x128xf32>
    %544 = math.tanh %543 : vector<16x128xf32>
    %cst_253 = arith.constant 1.000000e+00 : f32
    %545 = vector.broadcast %cst_253 : f32 to vector<16x128xf32>
    %546 = arith.addf %545, %544 : vector<16x128xf32>
    %cst_254 = arith.constant 5.000000e-01 : f32
    %547 = vector.broadcast %cst_254 : f32 to vector<16x128xf32>
    %548 = arith.mulf %547, %546 : vector<16x128xf32>
    %549 = arith.mulf %536, %548 : vector<16x128xf32>
    %c64_i32_255 = arith.constant 64 : i32
    %550 = tpu.dynamic_rotate %536 by %c64_i32_255 dim 1 : vector<16x128xf32>, i32 -> vector<16x128xf32>
    %551 = arith.mulf %549, %550 : vector<16x128xf32>
    %552 = arith.truncf %551 : vector<16x128xf32> to vector<16x128xbf16>
    %c1_256 = arith.constant 1 : index
    %c0_257 = arith.constant 0 : index
    %c0_258 = arith.constant 0 : index
    %553 = vector.load %arg8[%c1_256, %c0_257, %c0_258] : memref<2x128x128xbf16, #tpu.memory_space<vmem>>, vector<1x128x128xbf16>
    %554 = vector.shape_cast %553 : vector<1x128x128xbf16> to vector<128x128xbf16>
    %cst_259 = arith.constant dense<0.000000e+00> : vector<16x128xf32>
    %555 = tpu.matmul %552, %554, %cst_259 {dimension_numbers = #tpu.dot_dimension_numbers<[1], [0], [0], [1], [0, 0, 1, 1], [], []>} : vector<16x128xbf16>, vector<128x128xbf16>, vector<16x128xf32> -> vector<16x128xf32>
    %556 = arith.addf %518, %555 : vector<16x128xf32>
    %c0_260 = arith.constant 0 : index
    %c0_261 = arith.constant 0 : index
    %557 = vector.load %arg9[%c0_260, %c0_261] : memref<1x128xf32, #tpu.memory_space<vmem>>, vector<1x128xf32>
    %558 = arith.mulf %556, %556 : vector<16x128xf32>
    %cst_262 = arith.constant dense<0.000000e+00> : vector<16xf32>
    %559 = vector.multi_reduction <add>, %558, %cst_262 [1] : vector<16x128xf32> to vector<16xf32>
    %560 = vector.shape_cast %559 : vector<16xf32> to vector<16x1xf32>
    %cst_263 = arith.constant 3.125000e-02 : f32
    %561 = vector.broadcast %cst_263 : f32 to vector<16x1xf32>
    %562 = arith.mulf %560, %561 : vector<16x1xf32>
    %cst_264 = arith.constant 9.99999997E-7 : f32
    %563 = vector.broadcast %cst_264 : f32 to vector<16x1xf32>
    %564 = arith.addf %562, %563 : vector<16x1xf32>
    %565 = math.rsqrt %564 : vector<16x1xf32>
    %566 = vector.broadcast %565 : vector<16x1xf32> to vector<16x128xf32>
    %567 = arith.mulf %556, %566 : vector<16x128xf32>
    %568 = vector.broadcast %557 : vector<1x128xf32> to vector<16x128xf32>
    %569 = arith.mulf %567, %568 : vector<16x128xf32>
    %c0_265 = arith.constant 0 : index
    %c0_266 = arith.constant 0 : index
    %570 = vector.load %arg10[%c0_265, %c0_266] : memref<16x128xf32, #tpu.memory_space<vmem>>, vector<16x128xf32>
    tpu.vector_store %arg10[%c0_265, %c0_266], %569 {strides = array<i32>} : memref<16x128xf32, #tpu.memory_space<vmem>>, vector<16x128xf32>,
    return
  }
}

</mosaic_0001>

<bundles_post_ra>
// kernel: t5_encoder_forward.1
= control target key start
LH: loop header
LB: loop body
LE: loop exit
PB: predicated region body
PF: predicated region fallthrough
CT: control target
= control target key end

     0   :  { %15 = vsyncpa [#allocation6], 0  ;;  %s4608_s0 = inlined_call_operand.vmem [shape: s32[16], index: 0, kind: input, shape index: {}]   ;;  %s4609_s1 = inlined_call_operand.hbm [shape: f32[64,128], index: 1, kind: input, shape index: {}]   ;;  %s4610_s2 = inlined_call_operand.hbm [shape: f32[4,8,8], index: 2, kind: input, shape index: {}]   ;;  %s4611_s3 = inlined_call_operand.vmem [shape: f32[2,1,128], index: 3, kind: input, shape index: {}]   ;;  %s4612_s4 = inlined_call_operand.hbm [shape: bf16[2,128,128], index: 4, kind: input, shape index: {}]   ;;  %s4613_s5 = inlined_call_operand.hbm [shape: bf16[2,32,128], index: 5, kind: input, shape index: {}]   ;;  %s4614_s6 = inlined_call_operand.vmem [shape: f32[2,1,128], index: 6, kind: input, shape index: {}]   ;;  %s4615_s7 = inlined_call_operand.hbm [shape: bf16[2,128,128], index: 7, kind: input, shape index: {}]   ;;  %s4616_s8 = inlined_call_operand.hbm [shape: bf16[2,128,128], index: 8, kind: input, shape index: {}]   ;;  %s4617_s9 = inlined_call_operand.vmem [shape: f32[1,128], index: 9, kind: input, shape index: {}]   ;;  %s4618_s10 = inlined_call_operand.vmem [shape: f32[16,128], index: 10, kind: output, shape index: {}]  }
   0x1   :  { %16 = vsyncpa [#allocation5], 0 }
   0x2   :  { %17 = vsyncpa [#allocation9], 0 }
   0x3   :  { %18 = vsyncpa [#allocation12], 0 }
   0x4   :  { %19 = vsyncpa [#allocation15], 0  ;;  %s3896_s13 = smov [#allocation8]   ;;  %s3742_s17 = scalar_lea.hbm %s4610_s2, 512 }
   0x5   :  { %s47_s14 = sshll.u32 %s3896_s13, 4  ;;  %p3743_p0 = scmp.ne.s32.totalorder %s4610_s2, %s3742_s17  ;;  %s48_s14 = int_to_ptr.vmem [resolvable:$true] %s47_s14 }
   0x6   :  { %p3746_p1 = scmp.lt.u32.totalorder %s3742_s17, %s4610_s2 }
   0x8   :  { %p3748_p2 = pnand %p3746_p1, %p3743_p0 }
   0xa   :  { %3751 = shalt.err (!%p3748_p2)
}
   0xb   :  { %s3752_s22 = scalar_lea.vmem %s48_s14, 512  ;;  %p3757_p4 = scmp.lt.s32.totalorder %s48_s14, %s48_s14 }
   0xc   :  { %p3753_p3 = scmp.ne.s32.totalorder %s48_s14, %s3752_s22  ;;  %p3758_p5 = scmp.lt.s32.totalorder %s3752_s22, %s3752_s22 }
   0xe   :  { %p3759_p6 = por %p3758_p5, %p3757_p4 }
  0x10   :  { %p3760_p7 = pnand %p3759_p6, %p3753_p3 }
  0x12   :  { %3763 = shalt.err (!%p3760_p7)
}
  0x13   :  { %s3897_s23 = smov 128   ;;  %s3898_s24 = smov 8  }
  0x14   :  { %53 = dma.hbm_to_vmem [thread:$0]  %s4610_s2, 512, %s48_s14, [#allocation9], %s3897_s23, %s3897_s23, %s3898_s24  }
  0x15   :  { %s3899_s27 = smov [#allocation11]   ;;  %s26_s11 = sshll.u32 %s4608_s0, 4  ;;  %s27_s11 = int_to_ptr.vmem [resolvable:$true] %s26_s11 }
  0x16   :  { %s73_s28 = sshll.u32 %s3899_s27, 4  ;;  %s3764_s15 = scalar_lea.hbm %s4613_s5, 512  ;;  %s74_s28 = int_to_ptr.vmem [resolvable:$true] %s73_s28 }
  0x17   :  { %p3765_p8 = scmp.ne.s32.totalorder %s4613_s5, %s3764_s15  ;;  %p3768_p9 = scmp.lt.u32.totalorder %s3764_s15, %s4613_s5 }
  0x19   :  { %p3770_p10 = pnand %p3768_p9, %p3765_p8 }
  0x1b   :  { %3773 = shalt.err (!%p3770_p10)
}
  0x1c   :  { %s3774_s2 = scalar_lea.vmem %s74_s28, 512  ;;  %p3779_p12 = scmp.lt.s32.totalorder %s74_s28, %s74_s28 }
  0x1d   :  { %p3775_p11 = scmp.ne.s32.totalorder %s74_s28, %s3774_s2  ;;  %p3780_p13 = scmp.lt.s32.totalorder %s3774_s2, %s3774_s2 }
  0x1f   :  { %p3781_p0 = por %p3780_p13, %p3779_p12 }
  0x21   :  { %p3782_p1 = pnand %p3781_p0, %p3775_p11 }
  0x23   :  { %3785 = shalt.err (!%p3782_p1)
}
  0x24   :  { %s3900_s0 = smov 64   ;;  %s3901_s14 = smov 4  }
  0x25   :  { %79 = dma.hbm_to_vmem [thread:$0]  %s4613_s5, 512, %s74_s28, [#allocation12], %s3900_s0, %s3900_s0, %s3901_s14  }
  0x26   :  { %s3786_s22 = scalar_lea.vmem %s27_s11, 16  ;;  %p3791_p3 = scmp.lt.s32.totalorder %s27_s11, %s27_s11 }
  0x27   :  { %p3787_p2 = scmp.ne.s32.totalorder %s27_s11, %s3786_s22  ;;  %p3792_p4 = scmp.lt.s32.totalorder %s3786_s22, %s3786_s22 }
  0x29   :  { %p3793_p5 = por %p3792_p4, %p3791_p3 }
  0x2b   :  { %p3794_p6 = pnand %p3793_p5, %p3787_p2 }
  0x2d   :  { %3797 = shalt.err (!%p3794_p6)
}
  0x2e   :  { %s3902_s25 = smov [#allocation4]   ;;  %s3903_s26 = smov [#allocation7]  }
  0x2f   :  { %29 = dma.vmem_to_smem %s27_s11, 16, %s3902_s25, [#allocation6]  }
  0x30   :  { %s35_s27 = sshll.u32 %s3903_s26, 4  ;;  %s3904_s29 = smov [#allocation10]   ;;  %s36_s27 = int_to_ptr.vmem [resolvable:$true] %s35_s27 }
  0x31   :  { %s61_s30 = sshll.u32 %s3904_s29, 4  ;;  %s3798_s15 = scalar_lea.hbm %s4609_s1, 1024  ;;  %s62_s30 = int_to_ptr.vmem [resolvable:$true] %s61_s30 }
  0x32   :  { %p3799_p7 = scmp.ne.s32.totalorder %s4609_s1, %s3798_s15  ;;  %p3802_p8 = scmp.lt.u32.totalorder %s3798_s15, %s4609_s1 }
  0x34   :  { %p3804_p9 = pnand %p3802_p8, %p3799_p7 }
  0x36   :  { %3807 = shalt.err (!%p3804_p9)
}
  0x37   :  { %s3808_s11 = scalar_lea.vmem %s36_s27, 1024  ;;  %p3813_p11 = scmp.lt.s32.totalorder %s36_s27, %s36_s27 }
  0x38   :  { %p3809_p10 = scmp.ne.s32.totalorder %s36_s27, %s3808_s11  ;;  %p3814_p12 = scmp.lt.s32.totalorder %s3808_s11, %s3808_s11 }
  0x3a   :  { %p3815_p13 = por %p3814_p12, %p3813_p11 }
  0x3c   :  { %p3816_p0 = pnand %p3815_p13, %p3809_p10 }
  0x3e   :  { %3819 = shalt.err (!%p3816_p0)
}
  0x3f   :  { %41 = dma.hbm_to_vmem [thread:$0]  %s4609_s1, 1024, %s36_s27, [#allocation5], %s3897_s23, %s3897_s23, %s3898_s24  }
  0x40   :  { %s3820_s21 = scalar_lea.hbm %s4612_s4, 2048 }
  0x41   :  { %p3821_p1 = scmp.ne.s32.totalorder %s4612_s4, %s3820_s21  ;;  %p3824_p2 = scmp.lt.u32.totalorder %s3820_s21, %s4612_s4 }
  0x43   :  { %p3826_p3 = pnand %p3824_p2, %p3821_p1 }
  0x45   :  { %3829 = shalt.err (!%p3826_p3)
}
  0x46   :  { %s3830_s12 = scalar_lea.vmem %s62_s30, 2048  ;;  %p3835_p5 = scmp.lt.s32.totalorder %s62_s30, %s62_s30 }
  0x47   :  { %p3831_p4 = scmp.ne.s32.totalorder %s62_s30, %s3830_s12  ;;  %p3836_p6 = scmp.lt.s32.totalorder %s3830_s12, %s3830_s12 }
  0x49   :  { %p3837_p7 = por %p3836_p6, %p3835_p5 }
  0x4b   :  { %p3838_p8 = pnand %p3837_p7, %p3831_p4 }
  0x4d   :  { %3841 = shalt.err (!%p3838_p8)
}
  0x4e   :  { %67 = dma.hbm_to_vmem [thread:$0]  %s4612_s4, 2048, %s62_s30, [#allocation9], %s3900_s0, %s3900_s0, %s3901_s14  }
  0x4f   :  { %s3905_s27 = smov [#allocation13]   ;;  %s3906_s15 = smov [#allocation14]  }
  0x50   :  { %s87_s13 = sshll.u32 %s3905_s27, 4  ;;  %s99_s16 = sshll.u32 %s3906_s15, 4  ;;  %s88_s13 = int_to_ptr.vmem [resolvable:$true] %s87_s13  ;;  %s100_s16 = int_to_ptr.vmem [resolvable:$true] %s99_s16 }
  0x51   :  { %s3842_s17 = scalar_lea.hbm %s4615_s7, 2048 }
  0x52   :  { %p3843_p9 = scmp.ne.s32.totalorder %s4615_s7, %s3842_s17  ;;  %p3846_p10 = scmp.lt.u32.totalorder %s3842_s17, %s4615_s7 }
  0x54   :  { %p3848_p11 = pnand %p3846_p10, %p3843_p9 }
  0x56   :  { %3851 = shalt.err (!%p3848_p11)
}
  0x57   :  { %s3852_s4 = scalar_lea.vmem %s88_s13, 2048  ;;  %p3857_p13 = scmp.lt.s32.totalorder %s88_s13, %s88_s13 }
  0x58   :  { %p3853_p12 = scmp.ne.s32.totalorder %s88_s13, %s3852_s4  ;;  %p3858_p0 = scmp.lt.s32.totalorder %s3852_s4, %s3852_s4 }
  0x5a   :  { %p3859_p1 = por %p3858_p0, %p3857_p13 }
  0x5c   :  { %p3860_p2 = pnand %p3859_p1, %p3853_p12 }
  0x5e   :  { %3863 = shalt.err (!%p3860_p2)
}
  0x5f   :  { %93 = dma.hbm_to_vmem [thread:$0]  %s4615_s7, 2048, %s88_s13, [#allocation12], %s3900_s0, %s3900_s0, %s3901_s14  }
  0x60   :  { %s3864_s25 = scalar_lea.hbm %s4616_s8, 2048 }
  0x61   :  { %p3865_p3 = scmp.ne.s32.totalorder %s4616_s8, %s3864_s25  ;;  %p3868_p4 = scmp.lt.u32.totalorder %s3864_s25, %s4616_s8 }
  0x63   :  { %p3870_p5 = pnand %p3868_p4, %p3865_p3 }
  0x65   :  { %3873 = shalt.err (!%p3870_p5)
}
  0x66   :  { %s3874_s23 = scalar_lea.vmem %s100_s16, 2048  ;;  %p3879_p7 = scmp.lt.s32.totalorder %s100_s16, %s100_s16 }
  0x67   :  { %p3875_p6 = scmp.ne.s32.totalorder %s100_s16, %s3874_s23  ;;  %p3880_p8 = scmp.lt.s32.totalorder %s3874_s23, %s3874_s23 }
  0x69   :  { %p3881_p9 = por %p3880_p8, %p3879_p7 }
  0x6b   :  { %p3882_p10 = pnand %p3881_p9, %p3875_p6 }
  0x6d   :  { %3885 = shalt.err (!%p3882_p10)
}
  0x6e   :  { %105 = dma.hbm_to_vmem [thread:$0]  %s4616_s8, 2048, %s100_s16, [#allocation15], %s3900_s0, %s3900_s0, %s3901_s14  }
  0x6f   :  { %3886 = dma.done.wait [#allocation6], 16  }
  0x70   :  { %3887 = vsyncadd [#allocation6], 4294967280 }
  0x71   :  { %3888 = dma.done.wait [#allocation5], 1024  }
  0x72   :  { %3889 = vsyncadd [#allocation5], 4294966272 }
  0x73   :  { %3890 = dma.done.wait [#allocation9], 2560  }
  0x74   :  { %3891 = vsyncadd [#allocation9], 4294964736 }
  0x75   :  { %3892 = dma.done.wait [#allocation12], 2560  }
  0x76   :  { %3893 = vsyncadd [#allocation12], 4294964736 }
  0x77   :  { %3894 = dma.done.wait [#allocation15], 2048  }
  0x78   :  { %3895 = vsyncadd [#allocation15], 4294965248 }
  0x79   :  { %129 = sfence }
  0x7a   :  { %s131_s13 = sld [smem:[#allocation4]]  ;;  %s3012_s15 = sld [smem:[#allocation4 + $0x1]]  ;;  %v3597_v0 = vld [vmem:[#allocation10] sm:$0xff]   ;;  %v3907_v1 = vmov 0.0   ;;  %v3598_v2 = vld [vmem:[#allocation10 + $0x8] sm:$0xff]   ;;  %v3599_v23 = vld [vmem:[#allocation10 + $0x10] sm:$0xff]  }
  0x7b   :  { %s3013_s5 = sld [smem:[#allocation4 + $0x2]]  ;;  %s3014_s28 = sld [smem:[#allocation4 + $0x3]]  ;;  %3244 = vmatprep.subr.bf16.mxu0 %v3907_v1  ;;  %3264 = vmatprep.subr.bf16.mxu1 %v3907_v1  ;;  %v3600_v24 = vld [vmem:[#allocation10 + $0x18] sm:$0xff]   ;;  %v3601_v25 = vld [vmem:[#allocation10 + $0x20] sm:$0xff]   ;;  %vm3908_vm0 = vmmov 0   ;;  %v3602_v26 = vld [vmem:[#allocation10 + $0x28] sm:$0xff]  }
  0x7c   :  { %s3015_s8 = sld [smem:[#allocation4 + $0x4]]  ;;  %s3016_s14 = sld [smem:[#allocation4 + $0x5]]  ;;  %3245 = vmatpush3.bf16.msra.mxu0 %v3597_v0  ;;  %3260 = vmatprep.mubr.msk.bf16.mxu0 %vm3908_vm0, %v3907_v1  ;;  %v3603_v27 = vld [vmem:[#allocation10 + $0x30] sm:$0xff]   ;;  %v3604_v28 = vld [vmem:[#allocation10 + $0x38] sm:$0xff]   ;;  %v3027_v38 = vld [vmem:[%s4611_s3] ss:$0 sm:$0xff] }
  0x7d   :  { %s4071_s16 = sld [smem:[#allocation4 + $0x6]]  ;;  %s4073_s17 = sld [smem:[#allocation4 + $0x7]]  ;;  %3246 = vmatprep.subr.bf16.mxu0 %v3907_v1  ;;  %3266 = vmatprep.mubr.msk.bf16.mxu1 %vm3908_vm0, %v3907_v1  ;;  %vm335_vm1 = vcmask 64512   ;;  %vm399_vm2 = vcmask 1043456   ;;  %v4125_v52 = vld [vmem:[#allocation8] sm:$0xff]  ;;  %vm560_vm3 = vcmask 130112  }
  0x7e   :  { %s4076_s11 = sld [smem:[#allocation4 + $0x8]]  ;;  %s4078_s18 = sld [smem:[#allocation4 + $0x9]]  ;;  %vm678_vm4 = vcmask 195712   ;;  %vm796_vm5 = vcmask 261312   ;;  %vm1273_vm6 = vcmask 261120  }
  0x7f   :  { %s4080_s19 = sld [smem:[#allocation4 + $0xa]]  ;;  %s4082_s2 = sld [smem:[#allocation4 + $0xb]] }
  0x80   :  { %s132_s4 = scalar_lea.vmem [#allocation7], %s131_s13  ;;  %s136_s30 = scalar_lea.vmem [#allocation7], %s3012_s15  ;;  %3247 = vmatpush3.bf16.msra.mxu0 %v3598_v2 }
  0x81   :  { %v133_v3 = vld [vmem:[%s132_s4] sm:$0x1]  ;;  %s140_s20 = scalar_lea.vmem [#allocation7], %s3013_s5  ;;  %s144_s21 = scalar_lea.vmem [#allocation7], %s3014_s28  ;;  %3248 = vmatprep.subr.bf16.mxu0 %v3907_v1 }
  0x82   :  { %v137_v4 = vld [vmem:[%s136_s30] sm:$0x1]  ;;  %134 = vst [vmem:[#allocation2] sm:$0x1] %v133_v3  ;;  %s148_s22 = scalar_lea.vmem [#allocation7], %s3015_s8  ;;  %s152_s25 = scalar_lea.vmem [#allocation7], %s3016_s14 }
  0x83   :  { %138 = vst [vmem:[#allocation2 + $0x1] sm:$0x1] %v137_v4  ;;  %v141_v5 = vld [vmem:[%s140_s20] sm:$0x1]  ;;  %s156_s26 = scalar_lea.vmem [#allocation7], %s4071_s16  ;;  %s160_s29 = scalar_lea.vmem [#allocation7], %s4073_s17 }
  0x84   :  { %v145_v6 = vld [vmem:[%s144_s21] sm:$0x1]  ;;  %142 = vst [vmem:[#allocation2 + $0x2] sm:$0x1] %v141_v5  ;;  %s164_s12 = scalar_lea.vmem [#allocation7], %s4076_s11  ;;  %s168_s1 = scalar_lea.vmem [#allocation7], %s4078_s18  ;;  %3249 = vmatpush3.bf16.msra.mxu0 %v3599_v23 }
  0x85   :  { %146 = vst [vmem:[#allocation2 + $0x3] sm:$0x1] %v145_v6  ;;  %v149_v7 = vld [vmem:[%s148_s22] sm:$0x1]  ;;  %s172_s23 = scalar_lea.vmem [#allocation7], %s4080_s19  ;;  %s176_s7 = scalar_lea.vmem [#allocation7], %s4082_s2  ;;  %3250 = vmatprep.subr.bf16.mxu0 %v3907_v1 }
  0x86   :  { %v153_v8 = vld [vmem:[%s152_s25] sm:$0x1]  ;;  %150 = vst [vmem:[#allocation2 + $0x4] sm:$0x1] %v149_v7  ;;  %s3023_s27 = sld [smem:[#allocation4 + $0xc]]  ;;  %s3024_s13 = sld [smem:[#allocation4 + $0xd]] }
  0x87   :  { %154 = vst [vmem:[#allocation2 + $0x5] sm:$0x1] %v153_v8  ;;  %v157_v9 = vld [vmem:[%s156_s26] sm:$0x1]  ;;  %s3025_s15 = sld [smem:[#allocation4 + $0xe]]  ;;  %s3026_s5 = sld [smem:[#allocation4 + $0xf]] }
  0x88   :  { %v161_v10 = vld [vmem:[%s160_s29] sm:$0x1]  ;;  %158 = vst [vmem:[#allocation2 + $0x6] sm:$0x1] %v157_v9  ;;  %3251 = vmatpush3.bf16.msra.mxu0 %v3600_v24  ;;  %s3909_s18 = smov 96   ;;  %s3910_s19 = smov 80  }
  0x89   :  { %162 = vst [vmem:[#allocation2 + $0x7] sm:$0x1] %v161_v10  ;;  %v165_v11 = vld [vmem:[%s164_s12] sm:$0x1]  ;;  %3252 = vmatprep.subr.bf16.mxu0 %v3907_v1  ;;  %s3911_s2 = smov 88   ;;  %s3912_s4 = smov 72  }
  0x8a   :  { %v169_v12 = vld [vmem:[%s168_s1] sm:$0x1]  ;;  %166 = vst [vmem:[#allocation2 + $0x8] sm:$0x1] %v165_v11  ;;  %s3913_s30 = smov 120   ;;  %s3914_s20 = smov 112  }
  0x8b   :  { %170 = vst [vmem:[#allocation2 + $0x9] sm:$0x1] %v169_v12  ;;  %v173_v13 = vld [vmem:[%s172_s23] sm:$0x1]  ;;  %s3915_s21 = smov 104   ;;  %s3916_s22 = smov 56  }
  0x8c   :  { %v177_v14 = vld [vmem:[%s176_s7] sm:$0x1]  ;;  %174 = vst [vmem:[#allocation2 + $0xa] sm:$0x1] %v173_v13  ;;  %s180_s28 = scalar_lea.vmem [#allocation7], %s3023_s27  ;;  %s184_s8 = scalar_lea.vmem [#allocation7], %s3024_s13  ;;  %3253 = vmatpush3.bf16.msra.mxu0 %v3601_v25 }
  0x8d   :  { %178 = vst [vmem:[#allocation2 + $0xb] sm:$0x1] %v177_v14  ;;  %v181_v17 = vld [vmem:[%s180_s28] sm:$0x1]  ;;  %s188_s14 = scalar_lea.vmem [#allocation7], %s3025_s15  ;;  %s192_s16 = scalar_lea.vmem [#allocation7], %s3026_s5  ;;  %3254 = vmatprep.subr.bf16.mxu0 %v3907_v1 }
  0x8e   :  { %182 = vst [vmem:[#allocation2 + $0xc] sm:$0x1] %v181_v17  ;;  %v185_v18 = vld [vmem:[%s184_s8] sm:$0x1]  ;;  %s3917_s25 = smov 48   ;;  %s3918_s26 = smov 40  }
  0x8f   :  { %v189_v19 = vld [vmem:[%s188_s14] sm:$0x1]  ;;  %186 = vst [vmem:[#allocation2 + $0xd] sm:$0x1] %v185_v18  ;;  %s3919_s29 = smov 16   ;;  %s3920_s12 = smov 24  }
  0x90   :  { %v195_v15 = vld [vmem:[#allocation2] sm:$0xff]  ;;  %190 = vst [vmem:[#allocation2 + $0xe] sm:$0x1] %v189_v19  ;;  %3255 = vmatpush3.bf16.msra.mxu0 %v3602_v26 }
  0x91   :  { %v198_v16 = vmul.f32 %v195_v15, %v195_v15  ;;  %v193_v20 = vld [vmem:[%s192_s16] sm:$0x1]  ;;  %3256 = vmatprep.subr.bf16.mxu0 %v3907_v1 }
  0x92   :  { %194 = vst [vmem:[#allocation2 + $0xf] sm:$0x1] %v193_v20 }
  0x93   :  { %200 = vadd.xlane.f32.xlu0 %v198_v16 }
  0x94   :  { %3257 = vmatpush3.bf16.msra.mxu0 %v3603_v27  ;;  %v563_v27 = vld [vmem:[#allocation8 + $0x10] sm:$0xff] }
  0x95   :  { %3258 = vmatprep.subr.bf16.mxu0 %v3907_v1 }
  0x98   :  { %3259 = vmatpush3.bf16.msra.mxu0 %v3604_v28 }
  0x99   :  { %v4091_v21 = vld [vmem:[#allocation2 + $0x8] sm:$0xff]  ;;  %3288 = vmatprep.subr.bf16.mxu0 %v3907_v1 }
  0x9a   :  { %v199_v22 = vmul.f32 %v4091_v21, %v4091_v21 }
  0x9c   :  { %202 = vadd.xlane.f32.xlu0 %v199_v22 }
 0x120   :  { %v201_v29 = vpop.xlane.xlu0 %200 }
 0x121   :  { %v204_v30 = vmul.f32 0.03125, %v201_v29 }
 0x123   :  { %v206_v31 = vadd.f32 1e-06, %v204_v30 }
 0x125   :  { %3649 = vrsqrt.f32 %v206_v31 }
 0x129   :  { %v203_v32 = vpop.xlane.xlu0 %202 }
 0x12a   :  { %v205_v33 = vmul.f32 0.03125, %v203_v32 }
 0x12c   :  { %v207_v34 = vadd.f32 1e-06, %v205_v33 }
 0x12e   :  { %3651 = vrsqrt.f32 %v207_v34 }
 0x12f   :  { %v3650_v35 = vpop.eup %3649 }
 0x130   :  { %v210_v36 = vmul.f32 %v3650_v35, %v195_v15 }
 0x132   :  { %v218_v40 = vmul.f32 %v3027_v38, %v210_v36 }
 0x138   :  { %v3652_v37 = vpop.eup %3651 }
 0x139   :  { %v211_v39 = vmul.f32 %v3652_v37, %v4091_v21 }
 0x13b   :  { %v219_v41 = vmul.f32 %v3027_v38, %v211_v39  ;;  %v445_v38 = vld [vmem:[#allocation8 + $0x8] sm:$0xff]  ;;  %v681_v39 = vld [vmem:[#allocation8 + $0x18] sm:$0xff] }
 0x13d   :  { %v220_v42 = vpack.c.bf16 %v219_v41, %v218_v40 }
 0x13f   :  { %3261 = vmatmul.mubr.bf16.vlgmr.msra.gmra.mrb[0].mxu0 %v220_v42 }
 0x140   :  { %3290 = vmatprep.mubr.msk.bf16.mxu0 %vm3908_vm0, %v3907_v1 }
 0x212   :  { %v319_v43 = vpop.f32.mrb[0].mxu0 }
 0x213   :  { %v4111_v44 = vpack.c.bf16 %v319_v43, %v319_v43  ;;  %v3262_v45 = vpop.f32.mrb[1].mxu0 }
 0x214   :  { %v322_v46 = vpop.f32.mrb[2].mxu0 }
 0x215   :  { %394 = vrot.lane.b32.xlu0 %v4111_v44, %s3900_s0  ;;  %333 = vrot.lane.b32.xlu1 %v4111_v44, %s3909_s18  ;;  %v3263_v47 = vpop.f32.mrb[3].mxu0  ;;  %v4131_v59 = vpack.c.bf16 %v322_v46, %v322_v46 }
 0x287   :  { %v334_v48 = vpop.permute.xlu1 %333  ;;  %v395_v50 = vpop.permute.xlu0 %394 }
 0x288   :  { %v340_v49 = vsel %vm335_vm1, %v334_v48, 0  ;;  %v401_v51 = vsel %vm399_vm2, %v395_v50, 0 }
 0x289   :  { %3265 = vmatpush3.bf16.xpose.msra.mxu1 %v340_v49 }
 0x28a   :  { %3270 = vmatprep.subr.bf16.mxu1 %v3907_v1 }
 0x290   :  { %3267 = vmatmul.mubr.msk.bf16.vlgmr.msra.gmra.mrb[0].mxu1 %vm335_vm1, %v4111_v44 }
 0x291   :  { %3271 = vmatpush3.bf16.msra.mxu1 %v401_v51  ;;  %3272 = vmatprep.mubr.msk.bf16.mxu1 %vm3908_vm0, %v3907_v1 }
 0x292   :  { %3276 = vmatprep.subr.bf16.mxu1 %v3907_v1 }
 0x363   :  { %v376_v53 = vpop.f32.mrb[0].mxu1 }
 0x364   :  { %v377_v54 = vadd.f32 %v376_v53, %v4125_v52  ;;  %v3268_v55 = vpop.f32.mrb[1].mxu1 }
 0x365   :  { %v379_v56 = vpop.f32.mrb[2].mxu1 }
 0x366   :  { %v3269_v57 = vpop.f32.mrb[3].mxu1  ;;  %v382_v58 = vsel %vm335_vm1, %v377_v54, -inf }
 0x367   :  { %383 = vmax.xlane.f32.xlu1 %v382_v58 }
 0x378   :  { %566 = vrot.lane.b32.xlu1 %v4111_v44, %s3910_s19 }
 0x37c   :  { %913 = vrot.lane.b32.xlu1 %v4131_v59, %s3911_s2 }
 0x380   :  { %1029 = vrot.lane.b32.xlu1 %v4131_v59, %s3910_s19 }
 0x384   :  { %1145 = vrot.lane.b32.xlu1 %v4131_v59, %s3912_s4 }
 0x3f4   :  { %v384_v60 = vpop.xlane.xlu1 %383 }
 0x3f5   :  { %v385_v61 = vsub.f32 %v377_v54, %v384_v60 }
 0x3f7   :  { %v386_v62 = vmul.f32 1.442695, %v385_v61 }
 0x3f8   :  { %v567_v63 = vpop.permute.xlu1 %566 }
 0x3f9   :  { %3653 = vpow2.f32 %v386_v62  ;;  %v572_v0 = vsel %vm335_vm1, %v567_v63, 0 }
 0x3fa   :  { %3289 = vmatpush3.bf16.xpose.msra.mxu0 %v572_v0 }
 0x3fb   :  { %3300 = vmatprep.subr.bf16.mxu0 %v3907_v1 }
 0x3fc   :  { %v914_v17 = vpop.permute.xlu1 %913 }
 0x3fd   :  { %v919_v18 = vsel %vm335_vm1, %v914_v17, 0 }
 0x400   :  { %v1030_v19 = vpop.permute.xlu1 %1029 }
 0x401   :  { %v1035_v22 = vsel %vm335_vm1, %v1030_v19, 0 }
 0x403   :  { %v3654_v2 = vpop.eup %3653 }
 0x404   :  { %v388_v3 = vsel %vm335_vm1, %v3654_v2, 0.0  ;;  %v1146_v23 = vpop.permute.xlu1 %1145 }
 0x405   :  { %389 = vadd.xlane.f32.xlu0 %v388_v3  ;;  %v1151_v25 = vsel %vm335_vm1, %v1146_v23, 0 }
 0x41b   :  { %448 = vrot.lane.b32.xlu0 %v4111_v44, %s3911_s2 }
 0x41f   :  { %446 = vrot.lane.b32.xlu0 %v4111_v44, %s3913_s30 }
 0x423   :  { %564 = vrot.lane.b32.xlu0 %v4111_v44, %s3914_s20 }
 0x427   :  { %684 = vrot.lane.b32.xlu0 %v4111_v44, %s3912_s4 }
 0x42b   :  { %682 = vrot.lane.b32.xlu0 %v4111_v44, %s3915_s21 }
 0x42f   :  { %801 = vrot.lane.b32.xlu0 %v4131_v59, %s3909_s18 }
 0x433   :  { %911 = vrot.lane.b32.xlu0 %v4131_v59, %s3913_s30 }
 0x437   :  { %1027 = vrot.lane.b32.xlu0 %v4131_v59, %s3914_s20 }
 0x43b   :  { %1143 = vrot.lane.b32.xlu0 %v4131_v59, %s3915_s21 }
 0x492   :  { %v390_v4 = vpop.xlane.xlu0 %389 }
 0x493   :  { %3655 = vrcp.f32 %v390_v4 }
 0x496   :  { %v449_v5 = vpop.permute.xlu0 %448 }
 0x497   :  { %v454_v11 = vsel %vm335_vm1, %v449_v5, 0 }
 0x49a   :  { %v447_v6 = vpop.permute.xlu0 %446 }
 0x49d   :  { %v3656_v7 = vpop.eup %3655 }
 0x49e   :  { %v565_v8 = vpop.permute.xlu0 %564  ;;  %v392_v9 = vmul.f32 %v3656_v7, %v3654_v2 }
 0x49f   :  { %3291 = vmatmul.mubr.msk.bf16.vlgmr.msra.gmra.mrb[4].mxu0 %vm335_vm1, %v565_v8 }
 0x4a0   :  { %v393_v10 = vpack.c.bf16 %v392_v9, %v392_v9  ;;  %3302 = vmatprep.mubr.msk.bf16.mxu0 %vm3908_vm0, %v3907_v1 }
 0x4a2   :  { %3273 = vmatmul.mubr.msk.bf16.vlgmr.msra.gmra.mrb[4].mxu1 %vm335_vm1, %v393_v10  ;;  %v685_v12 = vpop.permute.xlu0 %684 }
 0x4a3   :  { %3277 = vmatpush3.bf16.xpose.msra.mxu1 %v454_v11  ;;  %v690_v13 = vsel %vm335_vm1, %v685_v12, 0  ;;  %3278 = vmatprep.mubr.msk.bf16.mxu1 %vm3908_vm0, %v3907_v1 }
 0x4a4   :  { %3301 = vmatpush3.bf16.xpose.msra.mxu0 %v690_v13  ;;  %3282 = vmatprep.subr.bf16.mxu1 %v3907_v1 }
 0x4a5   :  { %3312 = vmatprep.subr.bf16.mxu0 %v3907_v1 }
 0x4a6   :  { %v683_v14 = vpop.permute.xlu0 %682 }
 0x4aa   :  { %3279 = vmatmul.mubr.msk.bf16.vlgmr.msra.gmra.mrb[8].mxu1 %vm335_vm1, %v447_v6  ;;  %v802_v15 = vpop.permute.xlu0 %801 }
 0x4ab   :  { %v807_v16 = vsel %vm335_vm1, %v802_v15, 0  ;;  %3303 = vmatmul.mubr.msk.bf16.vlgmr.msra.gmra.mrb[8].mxu0 %vm335_vm1, %v683_v14  ;;  %3284 = vmatprep.mubr.msk.bf16.mxu1 %vm3908_vm0, %v3907_v1 }
 0x4ac   :  { %3313 = vmatpush3.bf16.xpose.msra.mxu0 %v807_v16  ;;  %3314 = vmatprep.mubr.msk.bf16.mxu0 %vm3908_vm0, %v3907_v1 }
 0x4ad   :  { %3324 = vmatprep.subr.bf16.mxu0 %v3907_v1 }
 0x4ae   :  { %v912_v20 = vpop.permute.xlu0 %911 }
 0x4b2   :  { %v1028_v24 = vpop.permute.xlu0 %1027 }
 0x4b3   :  { %3315 = vmatmul.mubr.msk.bf16.vlgmr.msra.gmra.mrb[12].mxu0 %vm335_vm1, %v4131_v59 }
 0x4b4   :  { %3325 = vmatpush3.bf16.xpose.msra.mxu0 %v919_v18  ;;  %3326 = vmatprep.mubr.msk.bf16.mxu0 %vm3908_vm0, %v3907_v1 }
 0x4b5   :  { %3336 = vmatprep.subr.bf16.mxu0 %v3907_v1 }
 0x4b6   :  { %v1144_v26 = vpop.permute.xlu0 %1143 }
 0x4bb   :  { %3327 = vmatmul.mubr.msk.bf16.vlgmr.msra.gmra.mrb[16].mxu0 %vm335_vm1, %v912_v20 }
 0x4bc   :  { %3337 = vmatpush3.bf16.xpose.msra.mxu0 %v1035_v22  ;;  %3338 = vmatprep.mubr.msk.bf16.mxu0 %vm3908_vm0, %v3907_v1 }
 0x4bd   :  { %3348 = vmatprep.subr.bf16.mxu0 %v3907_v1 }
 0x4c3   :  { %3339 = vmatmul.mubr.msk.bf16.vlgmr.msra.gmra.mrb[20].mxu0 %vm335_vm1, %v1028_v24 }
 0x4c4   :  { %3349 = vmatpush3.bf16.xpose.msra.mxu0 %v1151_v25  ;;  %3350 = vmatprep.mubr.msk.bf16.mxu0 %vm3908_vm0, %v3907_v1 }
 0x4c5   :  { %3360 = vmatprep.subr.bf16.mxu0 %v3907_v1 }
 0x4cb   :  { %3351 = vmatmul.mubr.msk.bf16.vlgmr.msra.gmra.mrb[24].mxu0 %vm335_vm1, %v1144_v26 }
 0x4cc   :  { %3364 = vmatprep.mubr.msk.bf16.mxu0 %vm3908_vm0, %v3907_v1 }
 0x572   :  { %v608_v28 = vpop.f32.mrb[4].mxu0 }
 0x573   :  { %v609_v29 = vadd.f32 %v608_v28, %v563_v27  ;;  %v3292_v30 = vpop.f32.mrb[5].mxu0 }
 0x574   :  { %v611_v31 = vpop.f32.mrb[6].mxu0 }
 0x575   :  { %v437_v32 = vpop.f32.mrb[4].mxu1  ;;  %v3293_v33 = vpop.f32.mrb[7].mxu0  ;;  %v614_v34 = vsel %vm335_vm1, %v609_v29, -inf }
 0x576   :  { %443 = vst.msk [vmem:[#allocation3] sm:$0xff] %vm335_vm1, %v437_v32  ;;  %v3274_v35 = vpop.f32.mrb[5].mxu1  ;;  %615 = vmax.xlane.f32.xlu0 %v614_v34 }
 0x577   :  { %v440_v36 = vpop.f32.mrb[6].mxu1 }
 0x578   :  { %v3275_v37 = vpop.f32.mrb[7].mxu1 }
 0x57d   :  { %v490_v40 = vpop.f32.mrb[8].mxu1 }
 0x57e   :  { %v4199_v41 = vadd.f32 %v490_v40, %v445_v38  ;;  %v3280_v42 = vpop.f32.mrb[9].mxu1  ;;  %v726_v43 = vpop.f32.mrb[8].mxu0 }
 0x57f   :  { %v727_v45 = vadd.f32 %v726_v43, %v681_v39  ;;  %v493_v46 = vpop.f32.mrb[10].mxu1  ;;  %v3304_v47 = vpop.f32.mrb[9].mxu0 }
 0x580   :  { %v3281_v48 = vpop.f32.mrb[11].mxu1  ;;  %v729_v49 = vpop.f32.mrb[10].mxu0  ;;  %v496_v50 = vsel %vm335_vm1, %v4199_v41, -inf }
 0x581   :  { %497 = vmax.xlane.f32.xlu1 %v496_v50  ;;  %v3305_v51 = vpop.f32.mrb[11].mxu0  ;;  %v732_v53 = vsel %vm335_vm1, %v727_v45, -inf }
 0x582   :  { %733 = vmax.xlane.f32.xlu0 %v732_v53 }
 0x586   :  { %v843_v54 = vpop.f32.mrb[12].mxu0 }
 0x587   :  { %v844_v55 = vadd.f32 %v843_v54, %v4125_v52  ;;  %v3316_v56 = vpop.f32.mrb[13].mxu0 }
 0x588   :  { %v846_v57 = vpop.f32.mrb[14].mxu0 }
 0x589   :  { %v3317_v58 = vpop.f32.mrb[15].mxu0  ;;  %v849_v60 = vsel %vm335_vm1, %v844_v55, -inf }
 0x58a   :  { %850 = vmax.xlane.f32.xlu0 %v849_v60 }
 0x58e   :  { %v955_v61 = vpop.f32.mrb[16].mxu0 }
 0x58f   :  { %v956_v62 = vadd.f32 %v955_v61, %v445_v38  ;;  %v3328_v63 = vpop.f32.mrb[17].mxu0 }
 0x590   :  { %v958_v0 = vpop.f32.mrb[18].mxu0 }
 0x591   :  { %v3329_v2 = vpop.f32.mrb[19].mxu0  ;;  %v961_v3 = vsel %vm335_vm1, %v956_v62, -inf }
 0x592   :  { %962 = vmax.xlane.f32.xlu1 %v961_v3 }
 0x596   :  { %v1071_v4 = vpop.f32.mrb[20].mxu0 }
 0x597   :  { %v1072_v5 = vadd.f32 %v1071_v4, %v563_v27  ;;  %v3340_v6 = vpop.f32.mrb[21].mxu0 }
 0x598   :  { %v1074_v7 = vpop.f32.mrb[22].mxu0 }
 0x599   :  { %v3341_v8 = vpop.f32.mrb[23].mxu0  ;;  %v1077_v52 = vsel %vm335_vm1, %v1072_v5, -inf }
 0x59a   :  { %1078 = vmax.xlane.f32.xlu0 %v1077_v52 }
 0x59e   :  { %v1187_v9 = vpop.f32.mrb[24].mxu0 }
 0x59f   :  { %v1188_v10 = vadd.f32 %v1187_v9, %v681_v39  ;;  %v3352_v11 = vpop.f32.mrb[25].mxu0 }
 0x5a0   :  { %v1190_v12 = vpop.f32.mrb[26].mxu0 }
 0x5a1   :  { %v3353_v13 = vpop.f32.mrb[27].mxu0  ;;  %v1193_v14 = vsel %vm335_vm1, %v1188_v10, -inf }
 0x5a2   :  { %1194 = vmax.xlane.f32.xlu1 %v1193_v14 }
 0x603   :  { %v616_v15 = vpop.xlane.xlu0 %615 }
 0x604   :  { %v617_v16 = vsub.f32 %v609_v29, %v616_v15 }
 0x606   :  { %v618_v17 = vmul.f32 1.442695, %v617_v16 }
 0x608   :  { %3657 = vpow2.f32 %v618_v17 }
 0x60e   :  { %v498_v27 = vpop.xlane.xlu1 %497 }
 0x60f   :  { %v734_v18 = vpop.xlane.xlu0 %733  ;;  %v499_v37 = vsub.f32 %v4199_v41, %v498_v27 }
 0x610   :  { %v735_v19 = vsub.f32 %v727_v45, %v734_v18 }
 0x611   :  { %v500_v38 = vmul.f32 1.442695, %v499_v37 }
 0x612   :  { %v4209_v20 = vpop.eup %3657  ;;  %v736_v22 = vmul.f32 1.442695, %v735_v19 }
 0x613   :  { %v620_v23 = vsel %vm335_vm1, %v4209_v20, 0.0 }
 0x614   :  { %3659 = vpow2.f32 %v736_v22  ;;  %621 = vadd.xlane.f32.xlu1 %v620_v23 }
 0x617   :  { %v851_v24 = vpop.xlane.xlu0 %850 }
 0x618   :  { %v852_v25 = vsub.f32 %v844_v55, %v851_v24 }
 0x61a   :  { %v853_v26 = vmul.f32 1.442695, %v852_v25 }
 0x61c   :  { %3661 = vpow2.f32 %v853_v26 }
 0x61e   :  { %v4213_v28 = vpop.eup %3659 }
 0x61f   :  { %v963_v29 = vpop.xlane.xlu1 %962  ;;  %v738_v30 = vsel %vm335_vm1, %v4213_v28, 0.0 }
 0x620   :  { %v964_v31 = vsub.f32 %v956_v62, %v963_v29  ;;  %739 = vadd.xlane.f32.xlu0 %v738_v30 }
 0x622   :  { %v965_v32 = vmul.f32 1.442695, %v964_v31 }
 0x624   :  { %3663 = vpow2.f32 %v965_v32 }
 0x625   :  { %3665 = vpow2.f32 %v500_v38 }
 0x626   :  { %v4217_v33 = vpop.eup %3661 }
 0x627   :  { %v855_v34 = vsel %vm335_vm1, %v4217_v33, 0.0  ;;  %v1079_v39 = vpop.xlane.xlu0 %1078 }
 0x628   :  { %856 = vadd.xlane.f32.xlu1 %v855_v34  ;;  %v1080_v40 = vsub.f32 %v1072_v5, %v1079_v39 }
 0x62a   :  { %v1081_v43 = vmul.f32 1.442695, %v1080_v40 }
 0x62c   :  { %3667 = vpow2.f32 %v1081_v43 }
 0x62e   :  { %v4221_v35 = vpop.eup %3663 }
 0x62f   :  { %v967_v36 = vsel %vm335_vm1, %v4221_v35, 0.0  ;;  %v3666_v42 = vpop.eup %3665  ;;  %v1195_v41 = vpop.xlane.xlu1 %1194 }
 0x630   :  { %968 = vadd.xlane.f32.xlu1 %v967_v36  ;;  %v502_v45 = vsel %vm335_vm1, %v3666_v42, 0.0  ;;  %v1196_v48 = vsub.f32 %v1188_v10, %v1195_v41 }
 0x632   :  { %v1197_v49 = vmul.f32 1.442695, %v1196_v48 }
 0x634   :  { %3669 = vpow2.f32 %v1197_v49 }
 0x636   :  { %508 = vrot.lane.b32.xlu0 %v4111_v44, %s3916_s22  ;;  %v4231_v46 = vpop.eup %3667 }
 0x637   :  { %v1083_v47 = vsel %vm335_vm1, %v4231_v46, 0.0 }
 0x63e   :  { %v4243_v50 = vpop.eup %3669 }
 0x63f   :  { %v1199_v51 = vsel %vm335_vm1, %v4243_v50, 0.0 }
 0x641   :  { %626 = vrot.lane.b32.xlu1 %v4111_v44, %s3917_s25 }
 0x655   :  { %503 = vadd.xlane.f32.xlu0 %v502_v45 }
 0x665   :  { %1084 = vadd.xlane.f32.xlu1 %v1083_v47 }
 0x66b   :  { %744 = vrot.lane.b32.xlu0 %v4111_v44, %s3918_s26 }
 0x676   :  { %973 = vrot.lane.b32.xlu1 %v4131_v59, %s3916_s22 }
 0x67a   :  { %1089 = vrot.lane.b32.xlu1 %v4131_v59, %s3917_s25 }
 0x67e   :  { %1205 = vrot.lane.b32.xlu1 %v4131_v59, %s3918_s26 }
 0x68a   :  { %1200 = vadd.xlane.f32.xlu0 %v1199_v51 }
 0x6a0   :  { %861 = vrot.lane.b32.xlu0 %v4131_v59, %s3900_s0 }
 0x6a1   :  { %v622_v55 = vpop.xlane.xlu1 %621 }
 0x6ad   :  { %v740_v44 = vpop.xlane.xlu0 %739 }
 0x6b1   :  { %v509_v53 = vpop.permute.xlu0 %508 }
 0x6b2   :  { %v514_v54 = vsel %vm399_vm2, %v509_v53, 0  ;;  %v3606_v53 = vld [vmem:[#allocation11 + $0x8] sm:$0xff]  }
 0x6b3   :  { %3283 = vmatpush3.bf16.msra.mxu1 %v514_v54 }
 0x6b4   :  { %3294 = vmatprep.subr.bf16.mxu1 %v3907_v1 }
 0x6b5   :  { %v857_v57 = vpop.xlane.xlu1 %856 }
 0x6bd   :  { %v969_v58 = vpop.xlane.xlu1 %968 }
 0x6c1   :  { %v627_v62 = vpop.permute.xlu1 %626 }
 0x6c2   :  { %v632_v59 = vsel %vm399_vm2, %v627_v62, 0 }
 0x6e2   :  { %v504_v56 = vpop.xlane.xlu0 %503 }
 0x6e3   :  { %3671 = vrcp.f32 %v504_v56 }
 0x6e4   :  { %3673 = vrcp.f32 %v622_v55 }
 0x6e5   :  { %3675 = vrcp.f32 %v740_v44  ;;  %v3605_v44 = vld [vmem:[#allocation11] sm:$0xff]  }
 0x6e6   :  { %v745_v3 = vpop.permute.xlu0 %744  ;;  %3677 = vrcp.f32 %v857_v57  ;;  %3361 = vmatpush3.bf16.msra.mxu0 %v3605_v44 }
 0x6e7   :  { %v750_v6 = vsel %vm399_vm2, %v745_v3, 0  ;;  %3679 = vrcp.f32 %v969_v58  ;;  %3362 = vmatprep.subr.bf16.mxu0 %v3907_v1 }
 0x6ea   :  { %3363 = vmatpush3.bf16.msra.mxu0 %v3606_v53 }
 0x6eb   :  { %3388 = vmatprep.subr.bf16.mxu0 %v3907_v1 }
 0x6ed   :  { %v3672_v60 = vpop.eup %3671 }
 0x6ee   :  { %v506_v61 = vmul.f32 %v3672_v60, %v3666_v42  ;;  %v3674_v0 = vpop.eup %3673 }
 0x6ef   :  { %v624_v2 = vmul.f32 %v3674_v0, %v4209_v20  ;;  %v3676_v5 = vpop.eup %3675 }
 0x6f0   :  { %v507_v63 = vpack.c.bf16 %v506_v61, %v506_v61  ;;  %v742_v7 = vmul.f32 %v3676_v5, %v4213_v28  ;;  %v3678_v52 = vpop.eup %3677 }
 0x6f1   :  { %v625_v4 = vpack.c.bf16 %v624_v2, %v624_v2  ;;  %v859_v11 = vmul.f32 %v3678_v52, %v4217_v33  ;;  %v3680_v16 = vpop.eup %3679  ;;  %v3608_v52 = vld [vmem:[#allocation13 + $0x8] sm:$0xff]  }
 0x6f2   :  { %3285 = vmatmul.mubr.msk.bf16.vlgmr.msra.gmra.mrb[12].mxu1 %vm335_vm1, %v507_v63  ;;  %v743_v8 = vpack.c.bf16 %v742_v7, %v742_v7  ;;  %v1085_v9 = vpop.xlane.xlu1 %1084  ;;  %v971_v18 = vmul.f32 %v3680_v16, %v4221_v35 }
 0x6f3   :  { %3295 = vmatpush3.bf16.msra.mxu1 %v632_v59  ;;  %3296 = vmatprep.mubr.msk.bf16.mxu1 %vm3908_vm0, %v3907_v1  ;;  %3681 = vrcp.f32 %v1085_v9  ;;  %v860_v15 = vpack.c.bf16 %v859_v11, %v859_v11 }
 0x6f4   :  { %3306 = vmatprep.subr.bf16.mxu1 %v3907_v1  ;;  %v972_v20 = vpack.c.bf16 %v971_v18, %v971_v18  ;;  %v3609_v18 = vld [vmem:[#allocation13 + $0x10] sm:$0xff]  }
 0x6f6   :  { %v974_v14 = vpop.permute.xlu1 %973 }
 0x6f7   :  { %v979_v17 = vsel %vm399_vm2, %v974_v14, 0 }
 0x6fa   :  { %3297 = vmatmul.mubr.msk.bf16.vlgmr.msra.gmra.mrb[16].mxu1 %vm335_vm1, %v625_v4  ;;  %v1090_v19 = vpop.permute.xlu1 %1089 }
 0x6fb   :  { %3307 = vmatpush3.bf16.msra.mxu1 %v750_v6  ;;  %3308 = vmatprep.mubr.msk.bf16.mxu1 %vm3908_vm0, %v3907_v1  ;;  %v1095_v23 = vsel %vm399_vm2, %v1090_v19, 0  ;;  %v3610_v19 = vld [vmem:[#allocation13 + $0x18] sm:$0xff]  }
 0x6fc   :  { %3318 = vmatprep.subr.bf16.mxu1 %v3907_v1 }
 0x6fd   :  { %v3682_v22 = vpop.eup %3681 }
 0x6fe   :  { %v1087_v24 = vmul.f32 %v3682_v22, %v4231_v46  ;;  %v1206_v25 = vpop.permute.xlu1 %1205  ;;  %v3613_v22 = vld [vmem:[#allocation13 + $0x30] sm:$0xff]  }
 0x6ff   :  { %v1211_v28 = vsel %vm399_vm2, %v1206_v25, 0 }
 0x700   :  { %v1088_v26 = vpack.c.bf16 %v1087_v24, %v1087_v24 }
 0x702   :  { %3309 = vmatmul.mubr.msk.bf16.vlgmr.msra.gmra.mrb[20].mxu1 %vm335_vm1, %v743_v8  ;;  %v3607_v8 = vld [vmem:[#allocation13] sm:$0xff]  }
 0x703   :  { %3320 = vmatprep.mubr.msk.bf16.mxu1 %vm3908_vm0, %v3907_v1 }
 0x717   :  { %v1201_v10 = vpop.xlane.xlu0 %1200 }
 0x718   :  { %3683 = vrcp.f32 %v1201_v10  ;;  %v3741_v10 = vld [vmem:[#allocation2] sm:$0xff] }
 0x71b   :  { %v862_v12 = vpop.permute.xlu0 %861 }
 0x71c   :  { %v867_v13 = vsel %vm399_vm2, %v862_v12, 0 }
 0x71d   :  { %3319 = vmatpush3.bf16.msra.mxu1 %v867_v13 }
 0x71e   :  { %3330 = vmatprep.subr.bf16.mxu1 %v3907_v1 }
 0x720   :  { %3321 = vmatmul.mubr.msk.bf16.vlgmr.msra.gmra.mrb[24].mxu1 %vm335_vm1, %v860_v15 }
 0x721   :  { %3331 = vmatpush3.bf16.msra.mxu1 %v979_v17  ;;  %3332 = vmatprep.mubr.msk.bf16.mxu1 %vm3908_vm0, %v3907_v1 }
 0x722   :  { %3342 = vmatprep.subr.bf16.mxu1 %v3907_v1  ;;  %v3684_v27 = vpop.eup %3683 }
 0x723   :  { %v1203_v29 = vmul.f32 %v3684_v27, %v4243_v50 }
 0x725   :  { %v1204_v30 = vpack.c.bf16 %v1203_v29, %v1203_v29 }
 0x728   :  { %3333 = vmatmul.mubr.msk.bf16.vlgmr.msra.gmra.mrb[28].mxu1 %vm335_vm1, %v972_v20  ;;  %v3611_v20 = vld [vmem:[#allocation13 + $0x20] sm:$0xff]  }
 0x729   :  { %3343 = vmatpush3.bf16.msra.mxu1 %v1095_v23  ;;  %3344 = vmatprep.mubr.msk.bf16.mxu1 %vm3908_vm0, %v3907_v1  ;;  %v3614_v23 = vld [vmem:[#allocation13 + $0x38] sm:$0xff]  }
 0x72a   :  { %3354 = vmatprep.subr.bf16.mxu1 %v3907_v1 }
 0x730   :  { %3345 = vmatmul.mubr.msk.bf16.vlgmr.msra.gmra.mrb[32].mxu1 %vm335_vm1, %v1088_v26 }
 0x731   :  { %3355 = vmatpush3.bf16.msra.mxu1 %v1211_v28  ;;  %3356 = vmatprep.mubr.msk.bf16.mxu1 %vm3908_vm0, %v3907_v1 }
 0x732   :  { %3368 = vmatprep.subr.bf16.mxu1 %v3907_v1 }
 0x738   :  { %3357 = vmatmul.mubr.msk.bf16.vlgmr.msra.gmra.mrb[36].mxu1 %vm335_vm1, %v1204_v30 }
 0x739   :  { %3384 = vmatprep.mubr.msk.bf16.mxu1 %vm3908_vm0, %v3907_v1  ;;  %3369 = vmatpush3.bf16.msra.mxu1 %v3607_v8 }
 0x73a   :  { %3370 = vmatprep.subr.bf16.mxu1 %v3907_v1 }
 0x73d   :  { %3371 = vmatpush3.bf16.msra.mxu1 %v3608_v52 }
 0x73e   :  { %3372 = vmatprep.subr.bf16.mxu1 %v3907_v1 }
 0x741   :  { %3373 = vmatpush3.bf16.msra.mxu1 %v3609_v18 }
 0x742   :  { %3374 = vmatprep.subr.bf16.mxu1 %v3907_v1 }
 0x745   :  { %3375 = vmatpush3.bf16.msra.mxu1 %v3610_v19 }
 0x746   :  { %3376 = vmatprep.subr.bf16.mxu1 %v3907_v1 }
 0x749   :  { %3377 = vmatpush3.bf16.msra.mxu1 %v3611_v20 }
 0x74a   :  { %3378 = vmatprep.subr.bf16.mxu1 %v3907_v1 }
 0x7c5   :  { %v550_v31 = vpop.f32.mrb[12].mxu1 }
 0x7c6   :  { %v3286_v32 = vpop.f32.mrb[13].mxu1  ;;  %557 = vrot.lane.b32.xlu0 %v550_v31, %s3898_s24 }
 0x7c7   :  { %v553_v33 = vpop.f32.mrb[14].mxu1 }
 0x7c8   :  { %v3287_v34 = vpop.f32.mrb[15].mxu1  ;;  %v3055_v33 = vld [vmem:[%s4614_s6] ss:$0 sm:$0xff] }
 0x7cd   :  { %v668_v35 = vpop.f32.mrb[16].mxu1 }
 0x7ce   :  { %675 = vrot.lane.b32.xlu0 %v668_v35, %s3919_s29  ;;  %v3298_v36 = vpop.f32.mrb[17].mxu1 }
 0x7cf   :  { %v671_v37 = vpop.f32.mrb[18].mxu1 }
 0x7d0   :  { %v3299_v38 = vpop.f32.mrb[19].mxu1 }
 0x7d1   :  { %v3615_v38 = vld [vmem:[#allocation14] sm:$0xff]  }
 0x7d5   :  { %v786_v39 = vpop.f32.mrb[20].mxu1 }
 0x7d6   :  { %793 = vrot.lane.b32.xlu0 %v786_v39, %s3920_s12  ;;  %v3310_v40 = vpop.f32.mrb[21].mxu1  ;;  %v3616_v39 = vld [vmem:[#allocation14 + $0x8] sm:$0xff]  }
 0x7d7   :  { %v789_v42 = vpop.f32.mrb[22].mxu1  ;;  %v3617_v40 = vld [vmem:[#allocation14 + $0x10] sm:$0xff]  }
 0x7d8   :  { %v3311_v43 = vpop.f32.mrb[23].mxu1  ;;  %v3618_v42 = vld [vmem:[#allocation14 + $0x18] sm:$0xff]  }
 0x7d9   :  { %v3619_v43 = vld [vmem:[#allocation14 + $0x20] sm:$0xff]  }
 0x7f3   :  { %v903_v45 = vpop.f32.mrb[24].mxu1 }
 0x7f4   :  { %909 = vst.msk [vmem:[#allocation3 + $0x8] sm:$0xff] %vm335_vm1, %v903_v45  ;;  %v3322_v46 = vpop.f32.mrb[25].mxu1  ;;  %v3620_v45 = vld [vmem:[#allocation14 + $0x28] sm:$0xff]  }
 0x7f5   :  { %v906_v47 = vpop.f32.mrb[26].mxu1  ;;  %v3621_v46 = vld [vmem:[#allocation14 + $0x30] sm:$0xff]  }
 0x7f6   :  { %v3323_v41 = vpop.f32.mrb[27].mxu1  ;;  %v3622_v47 = vld [vmem:[#allocation14 + $0x38] sm:$0xff]  }
 0x7fb   :  { %v1015_v48 = vpop.f32.mrb[28].mxu1 }
 0x7fc   :  { %1022 = vrot.lane.b32.xlu1 %v1015_v48, %s3898_s24  ;;  %v3334_v49 = vpop.f32.mrb[29].mxu1 }
 0x7fd   :  { %v1018_v50 = vpop.f32.mrb[30].mxu1 }
 0x7fe   :  { %v3335_v51 = vpop.f32.mrb[31].mxu1 }
 0x803   :  { %v1131_v54 = vpop.f32.mrb[32].mxu1 }
 0x804   :  { %1138 = vrot.lane.b32.xlu1 %v1131_v54, %s3919_s29  ;;  %v3346_v55 = vpop.f32.mrb[33].mxu1 }
 0x805   :  { %v1134_v56 = vpop.f32.mrb[34].mxu1 }
 0x806   :  { %v3347_v57 = vpop.f32.mrb[35].mxu1 }
 0x80b   :  { %v1247_v58 = vpop.f32.mrb[36].mxu1 }
 0x80c   :  { %1254 = vrot.lane.b32.xlu1 %v1247_v58, %s3920_s12  ;;  %v3358_v60 = vpop.f32.mrb[37].mxu1 }
 0x80d   :  { %v1250_v61 = vpop.f32.mrb[38].mxu1 }
 0x80e   :  { %v3359_v62 = vpop.f32.mrb[39].mxu1 }
 0x838   :  { %v558_v63 = vpop.permute.xlu0 %557 }
 0x839   :  { %561 = vst.msk [vmem:[#allocation3] sm:$0xff] %vm560_vm3, %v558_v63 }
 0x840   :  { %v676_v0 = vpop.permute.xlu0 %675 }
 0x841   :  { %679 = vst.msk [vmem:[#allocation3] sm:$0xff] %vm678_vm4, %v676_v0 }
 0x848   :  { %v794_v59 = vpop.permute.xlu0 %793 }
 0x849   :  { %797 = vst.msk [vmem:[#allocation3] sm:$0xff] %vm796_vm5, %v794_v59 }
 0x850   :  { %v1258_v5 = vld [vmem:[#allocation3] sm:$0xff] }
 0x86e   :  { %v1023_v2 = vpop.permute.xlu1 %1022 }
 0x86f   :  { %1025 = vst.msk [vmem:[#allocation3 + $0x8] sm:$0xff] %vm560_vm3, %v1023_v2 }
 0x876   :  { %v1139_v3 = vpop.permute.xlu1 %1138 }
 0x877   :  { %1141 = vst.msk [vmem:[#allocation3 + $0x8] sm:$0xff] %vm678_vm4, %v1139_v3 }
 0x87e   :  { %v1255_v4 = vpop.permute.xlu1 %1254 }
 0x87f   :  { %1257 = vst.msk [vmem:[#allocation3 + $0x8] sm:$0xff] %vm796_vm5, %v1255_v4 }
 0x886   :  { %v1259_v6 = vld [vmem:[#allocation3 + $0x8] sm:$0xff] }
 0x887   :  { %v1260_v7 = vpack.c.bf16 %v1259_v6, %v1258_v5 }
 0x889   :  { %3365 = vmatmul.mubr.msk.bf16.vlgmr.msra.gmra.mrb[28].mxu0 %vm1273_vm6, %v1260_v7 }
 0x88a   :  { %3404 = vmatprep.mubr.msk.bf16.mxu0 %vm3908_vm0, %v3907_v1  ;;  %3389 = vmatpush3.bf16.msra.mxu0 %v3615_v38 }
 0x88b   :  { %3390 = vmatprep.subr.bf16.mxu0 %v3907_v1 }
 0x88e   :  { %3391 = vmatpush3.bf16.msra.mxu0 %v3616_v39 }
 0x88f   :  { %3392 = vmatprep.subr.bf16.mxu0 %v3907_v1 }
 0x892   :  { %3393 = vmatpush3.bf16.msra.mxu0 %v3617_v40 }
 0x893   :  { %3394 = vmatprep.subr.bf16.mxu0 %v3907_v1 }
 0x896   :  { %3395 = vmatpush3.bf16.msra.mxu0 %v3618_v42 }
 0x897   :  { %3396 = vmatprep.subr.bf16.mxu0 %v3907_v1 }
 0x89a   :  { %3397 = vmatpush3.bf16.msra.mxu0 %v3619_v43 }
 0x89b   :  { %3398 = vmatprep.subr.bf16.mxu0 %v3907_v1 }
 0x89e   :  { %3399 = vmatpush3.bf16.msra.mxu0 %v3620_v45 }
 0x89f   :  { %3400 = vmatprep.subr.bf16.mxu0 %v3907_v1 }
 0x8a2   :  { %3401 = vmatpush3.bf16.msra.mxu0 %v3621_v46 }
 0x8a3   :  { %3402 = vmatprep.subr.bf16.mxu0 %v3907_v1 }
 0x8a6   :  { %3403 = vmatpush3.bf16.msra.mxu0 %v3622_v47 }
 0x8a7   :  { %3428 = vmatprep.subr.bf16.mxu0 %v3907_v1 }
 0x95c   :  { %v1311_v9 = vpop.f32.mrb[28].mxu0 }
 0x95d   :  { %v4310_v11 = vadd.f32 %v3741_v10, %v1311_v9  ;;  %v3366_v12 = vpop.f32.mrb[29].mxu0  ;;  %v3623_v10 = vld [vmem:[#allocation10 + $0x40] sm:$0xff]  }
 0x95e   :  { %v1314_v13 = vpop.f32.mrb[30].mxu0  ;;  %v3624_v12 = vld [vmem:[#allocation10 + $0x48] sm:$0xff]  }
 0x95f   :  { %v4313_v14 = vadd.f32 %v1314_v13, %v4091_v21  ;;  %v3367_v15 = vpop.f32.mrb[31].mxu0  ;;  %v1321_v16 = vmul.f32 %v4310_v11, %v4310_v11  ;;  %v3612_v21 = vld [vmem:[#allocation13 + $0x28] sm:$0xff]  }
 0x960   :  { %3379 = vmatpush3.bf16.msra.mxu1 %v3612_v21 }
 0x961   :  { %1323 = vadd.xlane.f32.xlu0 %v1321_v16  ;;  %v1322_v17 = vmul.f32 %v4313_v14, %v4313_v14  ;;  %3380 = vmatprep.subr.bf16.mxu1 %v3907_v1 }
 0x963   :  { %1325 = vadd.xlane.f32.xlu1 %v1322_v17 }
 0x964   :  { %3381 = vmatpush3.bf16.msra.mxu1 %v3613_v22  ;;  %v3625_v22 = vld [vmem:[#allocation10 + $0x50] sm:$0xff]  }
 0x965   :  { %3382 = vmatprep.subr.bf16.mxu1 %v3907_v1 }
 0x968   :  { %3383 = vmatpush3.bf16.msra.mxu1 %v3614_v23  ;;  %v3627_v23 = vld [vmem:[#allocation10 + $0x60] sm:$0xff]  }
 0x969   :  { %3408 = vmatprep.subr.bf16.mxu1 %v3907_v1 }
 0x9ee   :  { %v1324_v24 = vpop.xlane.xlu0 %1323 }
 0x9ef   :  { %v1327_v25 = vmul.f32 0.03125, %v1324_v24  ;;  %v3629_v24 = vld [vmem:[#allocation10 + $0x70] sm:$0xff]  }
 0x9f0   :  { %v1326_v26 = vpop.xlane.xlu1 %1325 }
 0x9f1   :  { %v1329_v27 = vadd.f32 1e-06, %v1327_v25  ;;  %v1328_v28 = vmul.f32 0.03125, %v1326_v26  ;;  %v3630_v25 = vld [vmem:[#allocation10 + $0x78] sm:$0xff]  }
 0x9f3   :  { %3685 = vrsqrt.f32 %v1329_v27  ;;  %v1330_v29 = vadd.f32 1e-06, %v1328_v28 }
 0x9f5   :  { %3687 = vrsqrt.f32 %v1330_v29 }
 0x9fd   :  { %v3686_v30 = vpop.eup %3685 }
 0x9fe   :  { %v1333_v31 = vmul.f32 %v3686_v30, %v4310_v11 }
 0x9ff   :  { %v3688_v32 = vpop.eup %3687 }
 0xa00   :  { %v1334_v34 = vmul.f32 %v3688_v32, %v4313_v14  ;;  %v1341_v35 = vmul.f32 %v3055_v33, %v1333_v31 }
 0xa02   :  { %v1342_v36 = vmul.f32 %v3055_v33, %v1334_v34 }
 0xa04   :  { %v1343_v37 = vpack.c.bf16 %v1342_v36, %v1341_v35  ;;  %v3073_v35 = vld [vmem:[%s4611_s3 + $0x1] ss:$0 sm:$0xff] }
 0xa06   :  { %3385 = vmatmul.mubr.bf16.vlgmr.msra.gmra.mrb[40].mxu1 %v1343_v37 }
 0xa07   :  { %3424 = vmatprep.mubr.msk.bf16.mxu1 %vm3908_vm0, %v3907_v1  ;;  %3409 = vmatpush3.bf16.msra.mxu1 %v3623_v10 }
 0xa08   :  { %3410 = vmatprep.subr.bf16.mxu1 %v3907_v1 }
 0xa0b   :  { %3411 = vmatpush3.bf16.msra.mxu1 %v3624_v12 }
 0xa0c   :  { %3412 = vmatprep.subr.bf16.mxu1 %v3907_v1 }
 0xa0f   :  { %3413 = vmatpush3.bf16.msra.mxu1 %v3625_v22 }
 0xa10   :  { %3414 = vmatprep.subr.bf16.mxu1 %v3907_v1 }
 0xad9   :  { %v1442_v41 = vpop.f32.mrb[40].mxu1 }
 0xada   :  { %1467 = vrot.lane.b32.xlu0 %v1442_v41, %s3900_s0  ;;  %v3386_v48 = vpop.f32.mrb[41].mxu1  ;;  %v1449_v51 = vmul.f32 %v1442_v41, %v1442_v41 }
 0xadb   :  { %v1445_v49 = vpop.f32.mrb[42].mxu1 }
 0xadc   :  { %1469 = vrot.lane.b32.xlu1 %v1445_v49, %s3900_s0  ;;  %v3387_v50 = vpop.f32.mrb[43].mxu1  ;;  %v1450_v44 = vmul.f32 %v1445_v49, %v1445_v49  ;;  %v1451_v53 = vmul.f32 %v1449_v51, %v1442_v41 }
 0xade   :  { %v1452_v54 = vmul.f32 %v1450_v44, %v1445_v49  ;;  %v1453_v55 = vmul.f32 0.044715, %v1451_v53  ;;  %v4399_v53 = vld [vmem:[#allocation8] sm:$0xff] }
 0xae0   :  { %v1454_v56 = vmul.f32 0.044715, %v1452_v54  ;;  %v1455_v57 = vadd.f32 %v1453_v55, %v1442_v41 }
 0xae2   :  { %v1456_v58 = vadd.f32 %v1454_v56, %v1445_v49  ;;  %v1457_v60 = vmul.f32 0.7978846, %v1455_v57 }
 0xae4   :  { %v1458_v61 = vmul.f32 0.7978846, %v1456_v58  ;;  %3689 = vtanh.f32 %v1457_v60 }
 0xae6   :  { %3691 = vtanh.f32 %v1458_v61 }
 0xaee   :  { %v3690_v62 = vpop.eup %3689 }
 0xaef   :  { %v1461_v0 = vadd.f32 1.0, %v3690_v62 }
 0xaf0   :  { %v3692_v63 = vpop.eup %3691 }
 0xaf1   :  { %v1462_v59 = vadd.f32 1.0, %v3692_v63  ;;  %v1463_v2 = vmul.f32 0.5, %v1461_v0 }
 0xaf3   :  { %v1464_v3 = vmul.f32 0.5, %v1462_v59  ;;  %v1465_v5 = vmul.f32 %v1463_v2, %v1442_v41 }
 0xaf5   :  { %v1466_v6 = vmul.f32 %v1464_v3, %v1445_v49 }
 0xb4c   :  { %v1468_v4 = vpop.permute.xlu0 %1467 }
 0xb4d   :  { %v1471_v8 = vmul.f32 %v1468_v4, %v1465_v5 }
 0xb4e   :  { %v1470_v7 = vpop.permute.xlu1 %1469 }
 0xb4f   :  { %v1472_v52 = vmul.f32 %v1470_v7, %v1466_v6 }
 0xb51   :  { %v1473_v9 = vpack.c.bf16 %v1472_v52, %v1471_v8 }
 0xb53   :  { %3405 = vmatmul.mubr.bf16.vlgmr.msra.gmra.mrb[32].mxu0 %v1473_v9 }
 0xb54   :  { %3430 = vmatprep.mubr.msk.bf16.mxu0 %vm3908_vm0, %v3907_v1 }
 0xc26   :  { %v1572_v13 = vpop.f32.mrb[32].mxu0 }
 0xc27   :  { %v4347_v15 = vadd.f32 %v1572_v13, %v4310_v11  ;;  %v3406_v16 = vpop.f32.mrb[33].mxu0  ;;  %v3626_v11 = vld [vmem:[#allocation10 + $0x58] sm:$0xff]  }
 0xc28   :  { %v1575_v17 = vpop.f32.mrb[34].mxu0  ;;  %3415 = vmatpush3.bf16.msra.mxu1 %v3626_v11 }
 0xc29   :  { %v4350_v18 = vadd.f32 %v1575_v17, %v4313_v14  ;;  %v3407_v19 = vpop.f32.mrb[35].mxu0  ;;  %v1583_v20 = vmul.f32 %v4347_v15, %v4347_v15  ;;  %3416 = vmatprep.subr.bf16.mxu1 %v3907_v1  ;;  %v3628_v14 = vld [vmem:[#allocation10 + $0x68] sm:$0xff]  }
 0xc2b   :  { %1585 = vadd.xlane.f32.xlu0 %v1583_v20  ;;  %v1584_v21 = vmul.f32 %v4350_v18, %v4350_v18 }
 0xc2c   :  { %3417 = vmatpush3.bf16.msra.mxu1 %v3627_v23 }
 0xc2d   :  { %1587 = vadd.xlane.f32.xlu1 %v1584_v21  ;;  %3418 = vmatprep.subr.bf16.mxu1 %v3907_v1 }
 0xc30   :  { %3419 = vmatpush3.bf16.msra.mxu1 %v3628_v14 }
 0xc31   :  { %3420 = vmatprep.subr.bf16.mxu1 %v3907_v1 }
 0xc34   :  { %3421 = vmatpush3.bf16.msra.mxu1 %v3629_v24 }
 0xc35   :  { %3422 = vmatprep.subr.bf16.mxu1 %v3907_v1 }
 0xc38   :  { %3423 = vmatpush3.bf16.msra.mxu1 %v3630_v25  ;;  %v1945_v25 = vld [vmem:[#allocation8 + $0x10] sm:$0xff] }
 0xc39   :  { %3452 = vmatprep.subr.bf16.mxu1 %v3907_v1 }
 0xcb8   :  { %v1586_v26 = vpop.xlane.xlu0 %1585 }
 0xcb9   :  { %v1589_v27 = vmul.f32 0.03125, %v1586_v26 }
 0xcba   :  { %v1588_v28 = vpop.xlane.xlu1 %1587 }
 0xcbb   :  { %v1591_v29 = vadd.f32 1e-06, %v1589_v27  ;;  %v1590_v30 = vmul.f32 0.03125, %v1588_v28 }
 0xcbd   :  { %3693 = vrsqrt.f32 %v1591_v29  ;;  %v1592_v31 = vadd.f32 1e-06, %v1590_v30 }
 0xcbf   :  { %3695 = vrsqrt.f32 %v1592_v31 }
 0xcc7   :  { %v3694_v32 = vpop.eup %3693 }
 0xcc8   :  { %v1595_v33 = vmul.f32 %v3694_v32, %v4347_v15  ;;  %v2061_v32 = vld [vmem:[#allocation8 + $0x18] sm:$0xff] }
 0xcc9   :  { %v3696_v34 = vpop.eup %3695 }
 0xcca   :  { %v1596_v36 = vmul.f32 %v3696_v34, %v4350_v18  ;;  %v1603_v37 = vmul.f32 %v3073_v35, %v1595_v33 }
 0xccc   :  { %v1604_v38 = vmul.f32 %v3073_v35, %v1596_v36 }
 0xcce   :  { %v1605_v39 = vpack.c.bf16 %v1604_v38, %v1603_v37 }
 0xcd0   :  { %3425 = vmatmul.mubr.bf16.vlgmr.msra.gmra.mrb[44].mxu1 %v1605_v39 }
 0xcd1   :  { %3454 = vmatprep.mubr.msk.bf16.mxu1 %vm3908_vm0, %v3907_v1 }
 0xda3   :  { %v1705_v40 = vpop.f32.mrb[44].mxu1 }
 0xda4   :  { %v4369_v42 = vpack.c.bf16 %v1705_v40, %v1705_v40  ;;  %v3426_v43 = vpop.f32.mrb[45].mxu1 }
 0xda5   :  { %v1708_v45 = vpop.f32.mrb[46].mxu1 }
 0xda6   :  { %1720 = vrot.lane.b32.xlu0 %v4369_v42, %s3909_s18  ;;  %v3427_v46 = vpop.f32.mrb[47].mxu1  ;;  %v4381_v47 = vpack.c.bf16 %v1708_v45, %v1708_v45 }
 0xda7   :  { %v1829_v46 = vld [vmem:[#allocation8 + $0x8] sm:$0xff] }
 0xdaa   :  { %1832 = vrot.lane.b32.xlu0 %v4369_v42, %s3911_s2 }
 0xdae   :  { %1830 = vrot.lane.b32.xlu0 %v4369_v42, %s3913_s30 }
 0xdb2   :  { %1948 = vrot.lane.b32.xlu0 %v4369_v42, %s3910_s19 }
 0xdb6   :  { %2064 = vrot.lane.b32.xlu0 %v4369_v42, %s3912_s4 }
 0xdba   :  { %2180 = vrot.lane.b32.xlu0 %v4381_v47, %s3909_s18 }
 0xdbe   :  { %2290 = vrot.lane.b32.xlu0 %v4381_v47, %s3913_s30 }
 0xdc2   :  { %2406 = vrot.lane.b32.xlu0 %v4381_v47, %s3914_s20 }
 0xdc6   :  { %2522 = vrot.lane.b32.xlu0 %v4381_v47, %s3915_s21 }
 0xe18   :  { %v1721_v41 = vpop.permute.xlu0 %1720 }
 0xe19   :  { %v1726_v48 = vsel %vm335_vm1, %v1721_v41, 0 }
 0xe1a   :  { %3429 = vmatpush3.bf16.xpose.msra.mxu0 %v1726_v48 }
 0xe1b   :  { %3434 = vmatprep.subr.bf16.mxu0 %v3907_v1 }
 0xe1c   :  { %v1833_v49 = vpop.permute.xlu0 %1832 }
 0xe1d   :  { %v1838_v12 = vsel %vm335_vm1, %v1833_v49, 0 }
 0xe20   :  { %v1831_v50 = vpop.permute.xlu0 %1830 }
 0xe21   :  { %3431 = vmatmul.mubr.msk.bf16.vlgmr.msra.gmra.mrb[36].mxu0 %vm335_vm1, %v4369_v42 }
 0xe22   :  { %3436 = vmatprep.mubr.msk.bf16.mxu0 %vm3908_vm0, %v3907_v1 }
 0xe24   :  { %v1949_v51 = vpop.permute.xlu0 %1948 }
 0xe25   :  { %v1954_v44 = vsel %vm335_vm1, %v1949_v51, 0 }
 0xe26   :  { %3453 = vmatpush3.bf16.xpose.msra.mxu1 %v1954_v44 }
 0xe27   :  { %3464 = vmatprep.subr.bf16.mxu1 %v3907_v1 }
 0xe28   :  { %v2065_v5 = vpop.permute.xlu0 %2064 }
 0xe29   :  { %v2070_v7 = vsel %vm335_vm1, %v2065_v5, 0 }
 0xe2c   :  { %v2181_v9 = vpop.permute.xlu0 %2180 }
 0xe2d   :  { %v2186_v16 = vsel %vm335_vm1, %v2181_v9, 0 }
 0xe30   :  { %v2291_v21 = vpop.permute.xlu0 %2290 }
 0xe34   :  { %v2407_v23 = vpop.permute.xlu0 %2406 }
 0xe38   :  { %v2523_v24 = vpop.permute.xlu0 %2522 }
 0xef4   :  { %v1762_v54 = vpop.f32.mrb[36].mxu0 }
 0xef5   :  { %v1763_v55 = vadd.f32 %v1762_v54, %v4399_v53  ;;  %v3432_v56 = vpop.f32.mrb[37].mxu0 }
 0xef6   :  { %v1765_v57 = vpop.f32.mrb[38].mxu0 }
 0xef7   :  { %v3433_v58 = vpop.f32.mrb[39].mxu0  ;;  %v1768_v60 = vsel %vm335_vm1, %v1763_v55, -inf }
 0xef8   :  { %1769 = vmax.xlane.f32.xlu1 %v1768_v60 }
 0xf85   :  { %v1770_v61 = vpop.xlane.xlu1 %1769 }
 0xf86   :  { %v1771_v62 = vsub.f32 %v1763_v55, %v1770_v61 }
 0xf88   :  { %v1772_v63 = vmul.f32 1.442695, %v1771_v62 }
 0xf8a   :  { %3697 = vpow2.f32 %v1772_v63 }
 0xf94   :  { %v3698_v0 = vpop.eup %3697 }
 0xf95   :  { %v1774_v59 = vsel %vm335_vm1, %v3698_v0, 0.0 }
 0xf96   :  { %1775 = vadd.xlane.f32.xlu1 %v1774_v59 }
 0xfa7   :  { %1780 = vrot.lane.b32.xlu1 %v4369_v42, %s3900_s0 }
 0xfab   :  { %1946 = vrot.lane.b32.xlu1 %v4369_v42, %s3914_s20 }
 0xfaf   :  { %2062 = vrot.lane.b32.xlu1 %v4369_v42, %s3915_s21 }
 0xfb3   :  { %2292 = vrot.lane.b32.xlu1 %v4381_v47, %s3911_s2 }
 0xfb7   :  { %2408 = vrot.lane.b32.xlu1 %v4381_v47, %s3910_s19 }
 0xfbb   :  { %2524 = vrot.lane.b32.xlu1 %v4381_v47, %s3912_s4 }
0x1023   :  { %v1776_v2 = vpop.xlane.xlu1 %1775 }
0x1024   :  { %3699 = vrcp.f32 %v1776_v2 }
0x1027   :  { %v1781_v3 = vpop.permute.xlu1 %1780 }
0x1028   :  { %v1786_v4 = vsel %vm399_vm2, %v1781_v3, 0 }
0x1029   :  { %3435 = vmatpush3.bf16.msra.mxu0 %v1786_v4 }
0x102a   :  { %3440 = vmatprep.subr.bf16.mxu0 %v3907_v1 }
0x102b   :  { %v1947_v6 = vpop.permute.xlu1 %1946 }
0x102c   :  { %3455 = vmatmul.mubr.msk.bf16.vlgmr.msra.gmra.mrb[48].mxu1 %vm335_vm1, %v1947_v6 }
0x102d   :  { %3465 = vmatpush3.bf16.xpose.msra.mxu1 %v2070_v7  ;;  %3466 = vmatprep.mubr.msk.bf16.mxu1 %vm3908_vm0, %v3907_v1 }
0x102e   :  { %v3700_v8 = vpop.eup %3699  ;;  %3476 = vmatprep.subr.bf16.mxu1 %v3907_v1 }
0x102f   :  { %v1778_v52 = vmul.f32 %v3700_v8, %v3698_v0  ;;  %v2063_v13 = vpop.permute.xlu1 %2062 }
0x1031   :  { %v1779_v10 = vpack.c.bf16 %v1778_v52, %v1778_v52 }
0x1033   :  { %3437 = vmatmul.mubr.msk.bf16.vlgmr.msra.gmra.mrb[40].mxu0 %vm335_vm1, %v1779_v10  ;;  %v2293_v17 = vpop.permute.xlu1 %2292 }
0x1034   :  { %3441 = vmatpush3.bf16.xpose.msra.mxu0 %v1838_v12  ;;  %3467 = vmatmul.mubr.msk.bf16.vlgmr.msra.gmra.mrb[52].mxu1 %vm335_vm1, %v2063_v13  ;;  %v2298_v19 = vsel %vm335_vm1, %v2293_v17, 0 }
0x1035   :  { %3477 = vmatpush3.bf16.xpose.msra.mxu1 %v2186_v16  ;;  %3442 = vmatprep.mubr.msk.bf16.mxu0 %vm3908_vm0, %v3907_v1 }
0x1036   :  { %3478 = vmatprep.mubr.msk.bf16.mxu1 %vm3908_vm0, %v3907_v1  ;;  %3488 = vmatprep.subr.bf16.mxu1 %v3907_v1 }
0x1037   :  { %3446 = vmatprep.subr.bf16.mxu0 %v3907_v1  ;;  %v2409_v20 = vpop.permute.xlu1 %2408 }
0x1038   :  { %v2414_v22 = vsel %vm335_vm1, %v2409_v20, 0 }
0x103b   :  { %3443 = vmatmul.mubr.msk.bf16.vlgmr.msra.gmra.mrb[44].mxu0 %vm335_vm1, %v1831_v50  ;;  %v2525_v11 = vpop.permute.xlu1 %2524 }
0x103c   :  { %3479 = vmatmul.mubr.msk.bf16.vlgmr.msra.gmra.mrb[56].mxu1 %vm335_vm1, %v4381_v47  ;;  %3448 = vmatprep.mubr.msk.bf16.mxu0 %vm3908_vm0, %v3907_v1  ;;  %v2530_v14 = vsel %vm335_vm1, %v2525_v11, 0 }
0x103d   :  { %3489 = vmatpush3.bf16.xpose.msra.mxu1 %v2298_v19  ;;  %3490 = vmatprep.mubr.msk.bf16.mxu1 %vm3908_vm0, %v3907_v1 }
0x103e   :  { %3500 = vmatprep.subr.bf16.mxu1 %v3907_v1 }
0x1044   :  { %3491 = vmatmul.mubr.msk.bf16.vlgmr.msra.gmra.mrb[60].mxu1 %vm335_vm1, %v2291_v21 }
0x1045   :  { %3501 = vmatpush3.bf16.xpose.msra.mxu1 %v2414_v22  ;;  %3502 = vmatprep.mubr.msk.bf16.mxu1 %vm3908_vm0, %v3907_v1 }
0x1046   :  { %3512 = vmatprep.subr.bf16.mxu1 %v3907_v1 }
0x104c   :  { %3503 = vmatmul.mubr.msk.bf16.vlgmr.msra.gmra.mrb[64].mxu1 %vm335_vm1, %v2407_v23 }
0x104d   :  { %3513 = vmatpush3.bf16.xpose.msra.mxu1 %v2530_v14  ;;  %3514 = vmatprep.mubr.msk.bf16.mxu1 %vm3908_vm0, %v3907_v1 }
0x104e   :  { %3524 = vmatprep.subr.bf16.mxu1 %v3907_v1 }
0x1054   :  { %3515 = vmatmul.mubr.msk.bf16.vlgmr.msra.gmra.mrb[68].mxu1 %vm335_vm1, %v2523_v24 }
0x1055   :  { %3528 = vmatprep.mubr.msk.bf16.mxu1 %vm3908_vm0, %v3907_v1 }
0x10ff   :  { %v1990_v26 = vpop.f32.mrb[48].mxu1 }
0x1100   :  { %v1991_v27 = vadd.f32 %v1990_v26, %v1945_v25  ;;  %v3456_v28 = vpop.f32.mrb[49].mxu1 }
0x1101   :  { %v1993_v29 = vpop.f32.mrb[50].mxu1 }
0x1102   :  { %v3457_v30 = vpop.f32.mrb[51].mxu1  ;;  %v1996_v31 = vsel %vm335_vm1, %v1991_v27, -inf }
0x1103   :  { %1997 = vmax.xlane.f32.xlu0 %v1996_v31 }
0x1106   :  { %v1822_v33 = vpop.f32.mrb[40].mxu0 }
0x1107   :  { %1828 = vst.msk [vmem:[#allocation3] sm:$0xff] %vm335_vm1, %v1822_v33  ;;  %v3438_v34 = vpop.f32.mrb[41].mxu0  ;;  %v2106_v35 = vpop.f32.mrb[52].mxu1 }
0x1108   :  { %v2107_v36 = vadd.f32 %v2106_v35, %v2061_v32  ;;  %v1825_v37 = vpop.f32.mrb[42].mxu0  ;;  %v3468_v38 = vpop.f32.mrb[53].mxu1 }
0x1109   :  { %v3439_v39 = vpop.f32.mrb[43].mxu0  ;;  %v2109_v40 = vpop.f32.mrb[54].mxu1 }
0x110a   :  { %v3469_v43 = vpop.f32.mrb[55].mxu1  ;;  %v2112_v45 = vsel %vm335_vm1, %v2107_v36, -inf }
0x110b   :  { %2113 = vmax.xlane.f32.xlu0 %v2112_v45 }
0x110e   :  { %v1874_v41 = vpop.f32.mrb[44].mxu0 }
0x110f   :  { %v4458_v48 = vadd.f32 %v1874_v41, %v1829_v46  ;;  %v3444_v49 = vpop.f32.mrb[45].mxu0  ;;  %v2222_v50 = vpop.f32.mrb[56].mxu1 }
0x1110   :  { %v2223_v51 = vadd.f32 %v2222_v50, %v4399_v53  ;;  %v1877_v44 = vpop.f32.mrb[46].mxu0  ;;  %v3480_v54 = vpop.f32.mrb[57].mxu1 }
0x1111   :  { %v3445_v55 = vpop.f32.mrb[47].mxu0  ;;  %v2225_v56 = vpop.f32.mrb[58].mxu1  ;;  %v1880_v57 = vsel %vm335_vm1, %v4458_v48, -inf }
0x1112   :  { %v3481_v58 = vpop.f32.mrb[59].mxu1  ;;  %1881 = vmax.xlane.f32.xlu1 %v1880_v57  ;;  %v2228_v60 = vsel %vm335_vm1, %v2223_v51, -inf }
0x1113   :  { %2229 = vmax.xlane.f32.xlu0 %v2228_v60 }
0x1117   :  { %v2334_v61 = vpop.f32.mrb[60].mxu1 }
0x1118   :  { %v2335_v62 = vadd.f32 %v2334_v61, %v1829_v46  ;;  %v3492_v63 = vpop.f32.mrb[61].mxu1 }
0x1119   :  { %v2337_v0 = vpop.f32.mrb[62].mxu1 }
0x111a   :  { %v3493_v59 = vpop.f32.mrb[63].mxu1  ;;  %v2340_v2 = vsel %vm335_vm1, %v2335_v62, -inf }
0x111b   :  { %2341 = vmax.xlane.f32.xlu1 %v2340_v2 }
0x111f   :  { %v2450_v53 = vpop.f32.mrb[64].mxu1 }
0x1120   :  { %v2451_v3 = vadd.f32 %v2450_v53, %v1945_v25  ;;  %v3504_v4 = vpop.f32.mrb[65].mxu1 }
0x1121   :  { %v2453_v5 = vpop.f32.mrb[66].mxu1 }
0x1122   :  { %v3505_v6 = vpop.f32.mrb[67].mxu1  ;;  %v2456_v7 = vsel %vm335_vm1, %v2451_v3, -inf }
0x1123   :  { %2457 = vmax.xlane.f32.xlu0 %v2456_v7 }
0x1127   :  { %v2566_v8 = vpop.f32.mrb[68].mxu1 }
0x1128   :  { %v2567_v52 = vadd.f32 %v2566_v8, %v2061_v32  ;;  %v3516_v9 = vpop.f32.mrb[69].mxu1 }
0x1129   :  { %v2569_v10 = vpop.f32.mrb[70].mxu1 }
0x112a   :  { %v3517_v12 = vpop.f32.mrb[71].mxu1  ;;  %v2572_v13 = vsel %vm335_vm1, %v2567_v52, -inf }
0x112b   :  { %2573 = vmax.xlane.f32.xlu1 %v2572_v13 }
0x1190   :  { %v1998_v16 = vpop.xlane.xlu0 %1997 }
0x1191   :  { %v1999_v17 = vsub.f32 %v1991_v27, %v1998_v16 }
0x1193   :  { %v2000_v19 = vmul.f32 1.442695, %v1999_v17 }
0x1195   :  { %3701 = vpow2.f32 %v2000_v19 }
0x1198   :  { %v2114_v20 = vpop.xlane.xlu0 %2113 }
0x1199   :  { %v2115_v21 = vsub.f32 %v2107_v36, %v2114_v20 }
0x119b   :  { %v2116_v22 = vmul.f32 1.442695, %v2115_v21 }
0x119d   :  { %3703 = vpow2.f32 %v2116_v22 }
0x119f   :  { %v4467_v11 = vpop.eup %3701  ;;  %v1882_v26 = vpop.xlane.xlu1 %1881 }
0x11a0   :  { %v2230_v23 = vpop.xlane.xlu0 %2229  ;;  %v2002_v14 = vsel %vm335_vm1, %v4467_v11, 0.0  ;;  %v1883_v36 = vsub.f32 %v4458_v48, %v1882_v26 }
0x11a1   :  { %v2231_v24 = vsub.f32 %v2223_v51, %v2230_v23  ;;  %2003 = vadd.xlane.f32.xlu1 %v2002_v14 }
0x11a2   :  { %v1884_v37 = vmul.f32 1.442695, %v1883_v36 }
0x11a3   :  { %v2232_v25 = vmul.f32 1.442695, %v2231_v24 }
0x11a5   :  { %3705 = vpow2.f32 %v2232_v25 }
0x11a7   :  { %v4471_v28 = vpop.eup %3703 }
0x11a8   :  { %v2342_v27 = vpop.xlane.xlu1 %2341  ;;  %v2118_v29 = vsel %vm335_vm1, %v4471_v28, 0.0 }
0x11a9   :  { %v2343_v30 = vsub.f32 %v2335_v62, %v2342_v27  ;;  %2119 = vadd.xlane.f32.xlu0 %v2118_v29 }
0x11ab   :  { %v2344_v31 = vmul.f32 1.442695, %v2343_v30 }
0x11ad   :  { %3707 = vpow2.f32 %v2344_v31 }
0x11ae   :  { %3709 = vpow2.f32 %v1884_v37 }
0x11af   :  { %v4475_v32 = vpop.eup %3705 }
0x11b0   :  { %v2234_v33 = vsel %vm335_vm1, %v4475_v32, 0.0  ;;  %v2458_v38 = vpop.xlane.xlu0 %2457 }
0x11b1   :  { %2235 = vadd.xlane.f32.xlu1 %v2234_v33  ;;  %v2459_v39 = vsub.f32 %v2451_v3, %v2458_v38 }
0x11b3   :  { %v2460_v43 = vmul.f32 1.442695, %v2459_v39 }
0x11b5   :  { %3711 = vpow2.f32 %v2460_v43 }
0x11b7   :  { %v4479_v34 = vpop.eup %3707 }
0x11b8   :  { %v2346_v35 = vsel %vm335_vm1, %v4479_v34, 0.0  ;;  %v3710_v40 = vpop.eup %3709  ;;  %v2574_v48 = vpop.xlane.xlu1 %2573 }
0x11b9   :  { %2347 = vadd.xlane.f32.xlu1 %v2346_v35  ;;  %v1886_v45 = vsel %vm335_vm1, %v3710_v40, 0.0  ;;  %v2575_v49 = vsub.f32 %v2567_v52, %v2574_v48 }
0x11bb   :  { %v2576_v50 = vmul.f32 1.442695, %v2575_v49 }
0x11bd   :  { %3713 = vpow2.f32 %v2576_v50 }
0x11bf   :  { %1892 = vrot.lane.b32.xlu0 %v4369_v42, %s3916_s22  ;;  %v4489_v46 = vpop.eup %3711 }
0x11c0   :  { %v2462_v41 = vsel %vm335_vm1, %v4489_v46, 0.0 }
0x11c7   :  { %v4501_v51 = vpop.eup %3713 }
0x11c8   :  { %v2578_v44 = vsel %vm335_vm1, %v4501_v51, 0.0 }
0x11ca   :  { %2008 = vrot.lane.b32.xlu1 %v4369_v42, %s3917_s25 }
0x11de   :  { %1887 = vadd.xlane.f32.xlu0 %v1886_v45 }
0x11ee   :  { %2463 = vadd.xlane.f32.xlu1 %v2462_v41 }
0x11f4   :  { %2124 = vrot.lane.b32.xlu0 %v4369_v42, %s3918_s26 }
0x11ff   :  { %2352 = vrot.lane.b32.xlu1 %v4381_v47, %s3916_s22 }
0x1203   :  { %2468 = vrot.lane.b32.xlu1 %v4381_v47, %s3917_s25 }
0x1207   :  { %2584 = vrot.lane.b32.xlu1 %v4381_v47, %s3918_s26 }
0x1213   :  { %2579 = vadd.xlane.f32.xlu0 %v2578_v44 }
0x1229   :  { %2240 = vrot.lane.b32.xlu0 %v4381_v47, %s3900_s0 }
0x122e   :  { %v2004_v56 = vpop.xlane.xlu1 %2003 }
0x1236   :  { %v2120_v42 = vpop.xlane.xlu0 %2119 }
0x123a   :  { %v1893_v54 = vpop.permute.xlu0 %1892 }
0x123b   :  { %v1898_v55 = vsel %vm399_vm2, %v1893_v54, 0  ;;  %v3631_v54 = vld [vmem:[#allocation11 + $0x10] sm:$0xff]  }
0x123c   :  { %3447 = vmatpush3.bf16.msra.mxu0 %v1898_v55  ;;  %3525 = vmatpush3.bf16.msra.mxu1 %v3631_v54  ;;  %v3632_v55 = vld [vmem:[#allocation11 + $0x18] sm:$0xff]  }
0x123d   :  { %3458 = vmatprep.subr.bf16.mxu0 %v3907_v1  ;;  %3526 = vmatprep.subr.bf16.mxu1 %v3907_v1 }
0x123e   :  { %v2236_v58 = vpop.xlane.xlu1 %2235 }
0x1240   :  { %3527 = vmatpush3.bf16.msra.mxu1 %v3632_v55 }
0x1241   :  { %3552 = vmatprep.subr.bf16.mxu1 %v3907_v1 }
0x1246   :  { %v2348_v60 = vpop.xlane.xlu1 %2347 }
0x124a   :  { %v2009_v63 = vpop.permute.xlu1 %2008 }
0x124b   :  { %v2014_v47 = vsel %vm399_vm2, %v2009_v63, 0 }
0x126b   :  { %v1888_v57 = vpop.xlane.xlu0 %1887 }
0x126c   :  { %3715 = vrcp.f32 %v1888_v57 }
0x126d   :  { %3717 = vrcp.f32 %v2004_v56 }
0x126e   :  { %3719 = vrcp.f32 %v2120_v42 }
0x126f   :  { %v2125_v53 = vpop.permute.xlu0 %2124  ;;  %3721 = vrcp.f32 %v2236_v58 }
0x1270   :  { %v2130_v5 = vsel %vm399_vm2, %v2125_v53, 0  ;;  %3723 = vrcp.f32 %v2348_v60 }
0x1276   :  { %v3716_v61 = vpop.eup %3715 }
0x1277   :  { %v1890_v62 = vmul.f32 %v3716_v61, %v3710_v40  ;;  %v3718_v59 = vpop.eup %3717 }
0x1278   :  { %v2006_v2 = vmul.f32 %v3718_v59, %v4467_v11  ;;  %v3720_v4 = vpop.eup %3719 }
0x1279   :  { %v1891_v0 = vpack.c.bf16 %v1890_v62, %v1890_v62  ;;  %v2122_v6 = vmul.f32 %v3720_v4, %v4471_v28  ;;  %v3722_v8 = vpop.eup %3721 }
0x127a   :  { %v2007_v3 = vpack.c.bf16 %v2006_v2, %v2006_v2  ;;  %v2238_v10 = vmul.f32 %v3722_v8, %v4475_v32  ;;  %v3724_v19 = vpop.eup %3723  ;;  %v3633_v8 = vld [vmem:[#allocation13 + $0x40] sm:$0xff]  }
0x127b   :  { %3449 = vmatmul.mubr.msk.bf16.vlgmr.msra.gmra.mrb[48].mxu0 %vm335_vm1, %v1891_v0  ;;  %v2123_v7 = vpack.c.bf16 %v2122_v6, %v2122_v6  ;;  %v2464_v52 = vpop.xlane.xlu1 %2463  ;;  %v2350_v21 = vmul.f32 %v3724_v19, %v4479_v34 }
0x127c   :  { %3459 = vmatpush3.bf16.msra.mxu0 %v2014_v47  ;;  %3460 = vmatprep.mubr.msk.bf16.mxu0 %vm3908_vm0, %v3907_v1  ;;  %3725 = vrcp.f32 %v2464_v52  ;;  %v2239_v17 = vpack.c.bf16 %v2238_v10, %v2238_v10  ;;  %v3634_v52 = vld [vmem:[#allocation13 + $0x48] sm:$0xff]  }
0x127d   :  { %3470 = vmatprep.subr.bf16.mxu0 %v3907_v1  ;;  %v2351_v11 = vpack.c.bf16 %v2350_v21, %v2350_v21  ;;  %v3635_v21 = vld [vmem:[#allocation13 + $0x50] sm:$0xff]  }
0x127f   :  { %v2353_v16 = vpop.permute.xlu1 %2352 }
0x1280   :  { %v2358_v20 = vsel %vm399_vm2, %v2353_v16, 0 }
0x1283   :  { %3461 = vmatmul.mubr.msk.bf16.vlgmr.msra.gmra.mrb[52].mxu0 %vm335_vm1, %v2007_v3  ;;  %v2469_v22 = vpop.permute.xlu1 %2468 }
0x1284   :  { %3471 = vmatpush3.bf16.msra.mxu0 %v2130_v5  ;;  %3472 = vmatprep.mubr.msk.bf16.mxu0 %vm3908_vm0, %v3907_v1  ;;  %v2474_v14 = vsel %vm399_vm2, %v2469_v22, 0  ;;  %v3637_v22 = vld [vmem:[#allocation13 + $0x60] sm:$0xff]  }
0x1285   :  { %3482 = vmatprep.subr.bf16.mxu0 %v3907_v1 }
0x1286   :  { %v3726_v23 = vpop.eup %3725 }
0x1287   :  { %v2466_v24 = vmul.f32 %v3726_v23, %v4489_v46  ;;  %v2585_v25 = vpop.permute.xlu1 %2584  ;;  %v3640_v23 = vld [vmem:[#allocation13 + $0x78] sm:$0xff]  }
0x1288   :  { %v2590_v27 = vsel %vm399_vm2, %v2585_v25, 0 }
0x1289   :  { %v2467_v26 = vpack.c.bf16 %v2466_v24, %v2466_v24 }
0x128b   :  { %3473 = vmatmul.mubr.msk.bf16.vlgmr.msra.gmra.mrb[56].mxu0 %vm335_vm1, %v2123_v7 }
0x128c   :  { %3484 = vmatprep.mubr.msk.bf16.mxu0 %vm3908_vm0, %v3907_v1 }
0x12a0   :  { %v2580_v9 = vpop.xlane.xlu0 %2579 }
0x12a1   :  { %3727 = vrcp.f32 %v2580_v9 }
0x12a4   :  { %v2241_v12 = vpop.permute.xlu0 %2240 }
0x12a5   :  { %v2246_v13 = vsel %vm399_vm2, %v2241_v12, 0 }
0x12a6   :  { %3483 = vmatpush3.bf16.msra.mxu0 %v2246_v13 }
0x12a7   :  { %3494 = vmatprep.subr.bf16.mxu0 %v3907_v1 }
0x12a9   :  { %3485 = vmatmul.mubr.msk.bf16.vlgmr.msra.gmra.mrb[60].mxu0 %vm335_vm1, %v2239_v17 }
0x12aa   :  { %3495 = vmatpush3.bf16.msra.mxu0 %v2358_v20  ;;  %3496 = vmatprep.mubr.msk.bf16.mxu0 %vm3908_vm0, %v3907_v1 }
0x12ab   :  { %3506 = vmatprep.subr.bf16.mxu0 %v3907_v1  ;;  %v3728_v28 = vpop.eup %3727 }
0x12ac   :  { %v2582_v29 = vmul.f32 %v3728_v28, %v4501_v51 }
0x12ae   :  { %v2583_v30 = vpack.c.bf16 %v2582_v29, %v2582_v29 }
0x12b1   :  { %3497 = vmatmul.mubr.msk.bf16.vlgmr.msra.gmra.mrb[64].mxu0 %vm335_vm1, %v2351_v11  ;;  %v3639_v11 = vld [vmem:[#allocation13 + $0x70] sm:$0xff]  }
0x12b2   :  { %3507 = vmatpush3.bf16.msra.mxu0 %v2474_v14  ;;  %3508 = vmatprep.mubr.msk.bf16.mxu0 %vm3908_vm0, %v3907_v1 }
0x12b3   :  { %3518 = vmatprep.subr.bf16.mxu0 %v3907_v1 }
0x12b9   :  { %3509 = vmatmul.mubr.msk.bf16.vlgmr.msra.gmra.mrb[68].mxu0 %vm335_vm1, %v2467_v26 }
0x12ba   :  { %3519 = vmatpush3.bf16.msra.mxu0 %v2590_v27  ;;  %3520 = vmatprep.mubr.msk.bf16.mxu0 %vm3908_vm0, %v3907_v1 }
0x12bb   :  { %3532 = vmatprep.subr.bf16.mxu0 %v3907_v1 }
0x12c1   :  { %3521 = vmatmul.mubr.msk.bf16.vlgmr.msra.gmra.mrb[72].mxu0 %vm335_vm1, %v2583_v30 }
0x12c2   :  { %3548 = vmatprep.mubr.msk.bf16.mxu0 %vm3908_vm0, %v3907_v1  ;;  %3533 = vmatpush3.bf16.msra.mxu0 %v3633_v8 }
0x12c3   :  { %3534 = vmatprep.subr.bf16.mxu0 %v3907_v1 }
0x12c6   :  { %3535 = vmatpush3.bf16.msra.mxu0 %v3634_v52 }
0x12c7   :  { %3536 = vmatprep.subr.bf16.mxu0 %v3907_v1 }
0x12ca   :  { %3537 = vmatpush3.bf16.msra.mxu0 %v3635_v21 }
0x12cb   :  { %3538 = vmatprep.subr.bf16.mxu0 %v3907_v1 }
0x134e   :  { %v1934_v31 = vpop.f32.mrb[48].mxu0 }
0x134f   :  { %1941 = vrot.lane.b32.xlu0 %v1934_v31, %s3898_s24  ;;  %v3450_v32 = vpop.f32.mrb[49].mxu0 }
0x1350   :  { %v1937_v33 = vpop.f32.mrb[50].mxu0  ;;  %v3102_v32 = vld [vmem:[%s4614_s6 + $0x1] ss:$0 sm:$0xff] }
0x1351   :  { %v3451_v34 = vpop.f32.mrb[51].mxu0 }
0x1356   :  { %v2050_v35 = vpop.f32.mrb[52].mxu0 }
0x1357   :  { %2057 = vrot.lane.b32.xlu0 %v2050_v35, %s3919_s29  ;;  %v3462_v36 = vpop.f32.mrb[53].mxu0 }
0x1358   :  { %v2053_v37 = vpop.f32.mrb[54].mxu0 }
0x1359   :  { %v3463_v38 = vpop.f32.mrb[55].mxu0  ;;  %v3641_v37 = vld [vmem:[#allocation14 + $0x40] sm:$0xff]  }
0x135a   :  { %v3642_v38 = vld [vmem:[#allocation14 + $0x48] sm:$0xff]  }
0x135e   :  { %v2166_v39 = vpop.f32.mrb[56].mxu0 }
0x135f   :  { %2173 = vrot.lane.b32.xlu0 %v2166_v39, %s3920_s12  ;;  %v3474_v40 = vpop.f32.mrb[57].mxu0  ;;  %v3643_v39 = vld [vmem:[#allocation14 + $0x50] sm:$0xff]  }
0x1360   :  { %v2169_v43 = vpop.f32.mrb[58].mxu0  ;;  %v3644_v40 = vld [vmem:[#allocation14 + $0x58] sm:$0xff]  }
0x1361   :  { %v3475_v45 = vpop.f32.mrb[59].mxu0  ;;  %v3645_v43 = vld [vmem:[#allocation14 + $0x60] sm:$0xff]  }
0x1362   :  { %v3646_v45 = vld [vmem:[#allocation14 + $0x68] sm:$0xff]  }
0x137c   :  { %v2282_v46 = vpop.f32.mrb[60].mxu0 }
0x137d   :  { %2288 = vst.msk [vmem:[#allocation3 + $0x8] sm:$0xff] %vm335_vm1, %v2282_v46  ;;  %v3486_v41 = vpop.f32.mrb[61].mxu0  ;;  %v3647_v46 = vld [vmem:[#allocation14 + $0x70] sm:$0xff]  }
0x137e   :  { %v2285_v48 = vpop.f32.mrb[62].mxu0  ;;  %v3648_v41 = vld [vmem:[#allocation14 + $0x78] sm:$0xff]  }
0x137f   :  { %v3487_v49 = vpop.f32.mrb[63].mxu0 }
0x1384   :  { %v2394_v50 = vpop.f32.mrb[64].mxu0 }
0x1385   :  { %2401 = vrot.lane.b32.xlu1 %v2394_v50, %s3898_s24  ;;  %v3498_v51 = vpop.f32.mrb[65].mxu0 }
0x1386   :  { %v2397_v44 = vpop.f32.mrb[66].mxu0 }
0x1387   :  { %v3499_v42 = vpop.f32.mrb[67].mxu0 }
0x138c   :  { %v2510_v56 = vpop.f32.mrb[68].mxu0 }
0x138d   :  { %2517 = vrot.lane.b32.xlu1 %v2510_v56, %s3919_s29  ;;  %v3510_v57 = vpop.f32.mrb[69].mxu0 }
0x138e   :  { %v2513_v58 = vpop.f32.mrb[70].mxu0 }
0x138f   :  { %v3511_v60 = vpop.f32.mrb[71].mxu0 }
0x1394   :  { %v2626_v61 = vpop.f32.mrb[72].mxu0 }
0x1395   :  { %2633 = vrot.lane.b32.xlu1 %v2626_v61, %s3920_s12  ;;  %v3522_v62 = vpop.f32.mrb[73].mxu0 }
0x1396   :  { %v2629_v63 = vpop.f32.mrb[74].mxu0 }
0x1397   :  { %v3523_v0 = vpop.f32.mrb[75].mxu0 }
0x13c1   :  { %v1942_v59 = vpop.permute.xlu0 %1941 }
0x13c2   :  { %1944 = vst.msk [vmem:[#allocation3] sm:$0xff] %vm560_vm3, %v1942_v59 }
0x13c9   :  { %v2058_v47 = vpop.permute.xlu0 %2057 }
0x13ca   :  { %2060 = vst.msk [vmem:[#allocation3] sm:$0xff] %vm678_vm4, %v2058_v47 }
0x13d1   :  { %v2174_v2 = vpop.permute.xlu0 %2173 }
0x13d2   :  { %2176 = vst.msk [vmem:[#allocation3] sm:$0xff] %vm796_vm5, %v2174_v2 }
0x13d9   :  { %v2637_v5 = vld [vmem:[#allocation3] sm:$0xff] }
0x13f7   :  { %v2402_v53 = vpop.permute.xlu1 %2401 }
0x13f8   :  { %2404 = vst.msk [vmem:[#allocation3 + $0x8] sm:$0xff] %vm560_vm3, %v2402_v53 }
0x13ff   :  { %v2518_v3 = vpop.permute.xlu1 %2517 }
0x1400   :  { %2520 = vst.msk [vmem:[#allocation3 + $0x8] sm:$0xff] %vm678_vm4, %v2518_v3 }
0x1407   :  { %v2634_v4 = vpop.permute.xlu1 %2633 }
0x1408   :  { %2636 = vst.msk [vmem:[#allocation3 + $0x8] sm:$0xff] %vm796_vm5, %v2634_v4 }
0x140f   :  { %v2638_v6 = vld [vmem:[#allocation3 + $0x8] sm:$0xff] }
0x1410   :  { %v2639_v7 = vpack.c.bf16 %v2638_v6, %v2637_v5 }
0x1412   :  { %3529 = vmatmul.mubr.msk.bf16.vlgmr.msra.gmra.mrb[72].mxu1 %vm1273_vm6, %v2639_v7 }
0x1413   :  { %3568 = vmatprep.mubr.msk.bf16.mxu1 %vm3908_vm0, %v3907_v1  ;;  %3553 = vmatpush3.bf16.msra.mxu1 %v3641_v37 }
0x1414   :  { %3554 = vmatprep.subr.bf16.mxu1 %v3907_v1 }
0x1417   :  { %3555 = vmatpush3.bf16.msra.mxu1 %v3642_v38 }
0x1418   :  { %3556 = vmatprep.subr.bf16.mxu1 %v3907_v1 }
0x141b   :  { %3557 = vmatpush3.bf16.msra.mxu1 %v3643_v39 }
0x141c   :  { %3558 = vmatprep.subr.bf16.mxu1 %v3907_v1 }
0x141f   :  { %3559 = vmatpush3.bf16.msra.mxu1 %v3644_v40 }
0x1420   :  { %3560 = vmatprep.subr.bf16.mxu1 %v3907_v1 }
0x1423   :  { %3561 = vmatpush3.bf16.msra.mxu1 %v3645_v43 }
0x1424   :  { %3562 = vmatprep.subr.bf16.mxu1 %v3907_v1 }
0x1427   :  { %3563 = vmatpush3.bf16.msra.mxu1 %v3646_v45 }
0x1428   :  { %3564 = vmatprep.subr.bf16.mxu1 %v3907_v1 }
0x142b   :  { %3565 = vmatpush3.bf16.msra.mxu1 %v3647_v46 }
0x142c   :  { %3566 = vmatprep.subr.bf16.mxu1 %v3907_v1 }
0x142f   :  { %3567 = vmatpush3.bf16.msra.mxu1 %v3648_v41 }
0x14e5   :  { %v2689_v9 = vpop.f32.mrb[72].mxu1 }
0x14e6   :  { %v4569_v10 = vadd.f32 %v2689_v9, %v4347_v15  ;;  %v3530_v12 = vpop.f32.mrb[73].mxu1  ;;  %v3636_v15 = vld [vmem:[#allocation13 + $0x58] sm:$0xff]  }
0x14e7   :  { %v2692_v13 = vpop.f32.mrb[74].mxu1  ;;  %3539 = vmatpush3.bf16.msra.mxu0 %v3636_v15 }
0x14e8   :  { %v4572_v16 = vadd.f32 %v2692_v13, %v4350_v18  ;;  %v3531_v17 = vpop.f32.mrb[75].mxu1  ;;  %v2700_v19 = vmul.f32 %v4569_v10, %v4569_v10  ;;  %3540 = vmatprep.subr.bf16.mxu0 %v3907_v1  ;;  %v3638_v18 = vld [vmem:[#allocation13 + $0x68] sm:$0xff]  }
0x14ea   :  { %2702 = vadd.xlane.f32.xlu0 %v2700_v19  ;;  %v2701_v20 = vmul.f32 %v4572_v16, %v4572_v16 }
0x14eb   :  { %3541 = vmatpush3.bf16.msra.mxu0 %v3637_v22 }
0x14ec   :  { %2704 = vadd.xlane.f32.xlu1 %v2701_v20  ;;  %3542 = vmatprep.subr.bf16.mxu0 %v3907_v1 }
0x14ef   :  { %3543 = vmatpush3.bf16.msra.mxu0 %v3638_v18 }
0x14f0   :  { %3544 = vmatprep.subr.bf16.mxu0 %v3907_v1 }
0x14f3   :  { %3545 = vmatpush3.bf16.msra.mxu0 %v3639_v11 }
0x14f4   :  { %3546 = vmatprep.subr.bf16.mxu0 %v3907_v1 }
0x14f7   :  { %3547 = vmatpush3.bf16.msra.mxu0 %v3640_v23 }
0x1577   :  { %v2703_v14 = vpop.xlane.xlu0 %2702 }
0x1578   :  { %v2706_v24 = vmul.f32 0.03125, %v2703_v14 }
0x1579   :  { %v2705_v25 = vpop.xlane.xlu1 %2704 }
0x157a   :  { %v2708_v26 = vadd.f32 1e-06, %v2706_v24  ;;  %v2707_v28 = vmul.f32 0.03125, %v2705_v25 }
0x157c   :  { %3729 = vrsqrt.f32 %v2708_v26  ;;  %v2709_v27 = vadd.f32 1e-06, %v2707_v28 }
0x157e   :  { %3731 = vrsqrt.f32 %v2709_v27 }
0x1586   :  { %v3730_v29 = vpop.eup %3729 }
0x1587   :  { %v2712_v30 = vmul.f32 %v3730_v29, %v4569_v10 }
0x1588   :  { %v3732_v31 = vpop.eup %3731 }
0x1589   :  { %v2713_v33 = vmul.f32 %v3732_v31, %v4572_v16  ;;  %v2720_v34 = vmul.f32 %v3102_v32, %v2712_v30 }
0x158b   :  { %v2721_v35 = vmul.f32 %v3102_v32, %v2713_v33 }
0x158d   :  { %v2722_v36 = vpack.c.bf16 %v2721_v35, %v2720_v34 }
0x158f   :  { %3549 = vmatmul.mubr.bf16.vlgmr.msra.gmra.mrb[76].mxu0 %v2722_v36 }
0x1662   :  { %v2822_v48 = vpop.f32.mrb[76].mxu0 }
0x1663   :  { %2847 = vrot.lane.b32.xlu0 %v2822_v48, %s3900_s0  ;;  %v3550_v49 = vpop.f32.mrb[77].mxu0  ;;  %v2829_v44 = vmul.f32 %v2822_v48, %v2822_v48 }
0x1664   :  { %v2825_v50 = vpop.f32.mrb[78].mxu0 }
0x1665   :  { %2849 = vrot.lane.b32.xlu1 %v2825_v50, %s3900_s0  ;;  %v3551_v51 = vpop.f32.mrb[79].mxu0  ;;  %v2830_v42 = vmul.f32 %v2825_v50, %v2825_v50  ;;  %v2831_v54 = vmul.f32 %v2829_v44, %v2822_v48 }
0x1667   :  { %v2832_v55 = vmul.f32 %v2830_v42, %v2825_v50  ;;  %v2833_v56 = vmul.f32 0.044715, %v2831_v54 }
0x1669   :  { %v2834_v57 = vmul.f32 0.044715, %v2832_v55  ;;  %v2835_v58 = vadd.f32 %v2833_v56, %v2822_v48 }
0x166b   :  { %v2836_v60 = vadd.f32 %v2834_v57, %v2825_v50  ;;  %v2837_v61 = vmul.f32 0.7978846, %v2835_v58 }
0x166d   :  { %v2838_v1 = vmul.f32 0.7978846, %v2836_v60  ;;  %3733 = vtanh.f32 %v2837_v61 }
0x166f   :  { %3735 = vtanh.f32 %v2838_v1 }
0x1677   :  { %v3734_v62 = vpop.eup %3733 }
0x1678   :  { %v2841_v0 = vadd.f32 1.0, %v3734_v62 }
0x1679   :  { %v3736_v63 = vpop.eup %3735 }
0x167a   :  { %v2842_v59 = vadd.f32 1.0, %v3736_v63  ;;  %v2843_v47 = vmul.f32 0.5, %v2841_v0 }
0x167c   :  { %v2844_v2 = vmul.f32 0.5, %v2842_v59  ;;  %v2845_v3 = vmul.f32 %v2843_v47, %v2822_v48 }
0x167e   :  { %v2846_v4 = vmul.f32 %v2844_v2, %v2825_v50 }
0x16d5   :  { %v2848_v53 = vpop.permute.xlu0 %2847 }
0x16d6   :  { %v2851_v6 = vmul.f32 %v2848_v53, %v2845_v3 }
0x16d7   :  { %v2850_v5 = vpop.permute.xlu1 %2849 }
0x16d8   :  { %v2852_v7 = vmul.f32 %v2850_v5, %v2846_v4 }
0x16da   :  { %v2853_v8 = vpack.c.bf16 %v2852_v7, %v2851_v6 }
0x16dc   :  { %3569 = vmatmul.mubr.bf16.vlgmr.msra.gmra.mrb[76].mxu1 %v2853_v8 }
0x17af   :  { %v2953_v52 = vpop.f32.mrb[76].mxu1 }
0x17b0   :  { %v2960_v9 = vadd.f32 %v2953_v52, %v4569_v10  ;;  %v3570_v12 = vpop.f32.mrb[77].mxu1  ;;  %v3119_v10 = vld [vmem:[%s4617_s9] ss:$0 sm:$0xff] }
0x17b1   :  { %v2956_v13 = vpop.f32.mrb[78].mxu1 }
0x17b2   :  { %v2963_v17 = vmul.f32 %v2960_v9, %v2960_v9  ;;  %v2961_v19 = vadd.f32 %v2956_v13, %v4572_v16  ;;  %v3571_v20 = vpop.f32.mrb[79].mxu1 }
0x17b4   :  { %2965 = vadd.xlane.f32.xlu0 %v2963_v17  ;;  %v2964_v21 = vmul.f32 %v2961_v19, %v2961_v19 }
0x17b6   :  { %2967 = vadd.xlane.f32.xlu1 %v2964_v21 }
0x1841   :  { %v2966_v15 = vpop.xlane.xlu0 %2965 }
0x1842   :  { %v2969_v22 = vmul.f32 0.03125, %v2966_v15 }
0x1843   :  { %v2968_v18 = vpop.xlane.xlu1 %2967 }
0x1844   :  { %v2971_v11 = vadd.f32 1e-06, %v2969_v22  ;;  %v2970_v23 = vmul.f32 0.03125, %v2968_v18 }
0x1846   :  { %3737 = vrsqrt.f32 %v2971_v11  ;;  %v2972_v14 = vadd.f32 1e-06, %v2970_v23 }
0x1848   :  { %3739 = vrsqrt.f32 %v2972_v14 }
0x1850   :  { %v3738_v24 = vpop.eup %3737 }
0x1851   :  { %v2975_v25 = vmul.f32 %v3738_v24, %v2960_v9 }
0x1852   :  { %v3740_v26 = vpop.eup %3739 }
0x1853   :  { %v2983_v16 = vmul.f32 %v3119_v10, %v2975_v25  ;;  %v2976_v28 = vmul.f32 %v3740_v26, %v2961_v19 }
0x1855   :  { %2985 = vst [vmem:[%s4618_s10] sm:$0xff] %v2983_v16  ;;  %v2984_v27 = vmul.f32 %v3119_v10, %v2976_v28 }
0x1857   :  { %2986 = vst [vmem:[%s4618_s10 + $0x8] sm:$0xff] %v2984_v27 }
0x1858   :  { %2991 = vsyncpa [#allocation5], 1 }
0x1859   :  { %2992 = vsyncpa [#allocation9], 1 }
0x185a   :  { %2993 = vsyncpa [#allocation12], 1 }
0x185b   :  { %2994 = vsyncpa [#allocation15], 1 }
0x185c   :  { %2995 = vsyncpa [#allocation6], 1 }

</bundles_post_ra>
